<compile_context>
chip_gen: v7x
topology: tpu7x:2x2x1
jax: 0.10.0
libtpu: 0.0.40
codegen_flags: <defaults>
</compile_context>

<pallas_src>
import jax
import jax.numpy as jnp
from jax.experimental import pallas as pl
from jax.experimental.pallas import tpu as pltpu  # noqa: F401  (TPU backend)

N = 128      # number of nodes
F = 100      # node_features_count (PCA components)
FP = 128     # padded feature width (lane-aligned)
H = 64       # hidden / out channels of GraphSAGE
E = 512      # number of edges


# ---------------------------------------------------------------------------
# LSTM gate helper (gate order i, f, g, o — matches torch.nn.LSTM)
# ---------------------------------------------------------------------------
def _lstm_gates(g, c_prev):
    """g: (N, 4H) pre-activation gates. c_prev=None means first timestep."""
    i = jax.nn.sigmoid(g[:, 0 * H:1 * H])
    gg = jnp.tanh(g[:, 2 * H:3 * H])
    o = jax.nn.sigmoid(g[:, 3 * H:4 * H])
    if c_prev is None:
        c = i * gg
    else:
        f = jax.nn.sigmoid(g[:, 1 * H:2 * H])
        c = f * c_prev + i * gg
    h = o * jnp.tanh(c)
    return h, c


# ---------------------------------------------------------------------------
# Fused forward kernel (runs once, everything VMEM-resident)
# ---------------------------------------------------------------------------
def _gsage_kernel(a_ref, x_ref,
                  w1_ref, b1_ref, w2_ref, b2_ref,
                  wihf_ref, whhf_ref, bf_ref,
                  wihb_ref, whhb_ref, bb_ref,
                  awf_ref, awb_ref, ab_ref,
                  wh_ref, bh_ref, w2r_ref, b2o_ref,
                  o_ref):
    a = a_ref[...]          # (N, N) row-normalized adjacency
    x = x_ref[...]          # (N, FP) padded node features

    # ---- SAGE layer 1: relu(A @ (X @ Wl) + X @ Wr + b)   [reassociated] ----
    xw = jnp.dot(x, w1_ref[...], preferred_element_type=jnp.float32)   # (N, 2H)
    h1 = jnp.maximum(
        jnp.dot(a, xw[:, :H], preferred_element_type=jnp.float32)
        + xw[:, H:] + b1_ref[...], 0.0)
    # TODO(synk): dropout p=0.1 between GraphSAGE layers treated as identity (eval mode).

    # ---- SAGE layer 2 ----
    hw = jnp.dot(h1, w2_ref[...], preferred_element_type=jnp.float32)  # (N, 2H)
    h2 = jnp.maximum(
        jnp.dot(a, hw[:, :H], preferred_element_type=jnp.float32)
        + hw[:, H:] + b2_ref[...], 0.0)

    # ---- JumpingKnowledge 'lstm': bidirectional LSTM over the sequence [h1, h2] ----
    bf = bf_ref[...]
    bb = bb_ref[...]
    # forward direction (t=1 then t=2); h0 = c0 = 0 so skip the Whh matmul at t=1
    hf1, cf1 = _lstm_gates(
        jnp.dot(h1, wihf_ref[...], preferred_element_type=jnp.float32) + bf, None)
    hf2, _ = _lstm_gates(
        jnp.dot(h2, wihf_ref[...], preferred_element_type=jnp.float32)
        + jnp.dot(hf1, whhf_ref[...], preferred_element_type=jnp.float32) + bf, cf1)
    # backward direction (t=2 then t=1)
    hb2, cb2 = _lstm_gates(
        jnp.dot(h2, wihb_ref[...], preferred_element_type=jnp.float32) + bb, None)
    hb1, _ = _lstm_gates(
        jnp.dot(h1, wihb_ref[...], preferred_element_type=jnp.float32)
        + jnp.dot(hb2, whhb_ref[...], preferred_element_type=jnp.float32) + bb, cb2)

    # attention scores att(concat(h_fw, h_bw)) as VPU mul + lane reduce
    # (avoids N=1, >99%-masked MXU matmuls)
    awf = awf_ref[...]      # (1, H)
    awb = awb_ref[...]      # (1, H)
    ab = ab_ref[...]        # (1, 1)
    s1 = jnp.sum(hf1 * awf + hb1 * awb, axis=-1, keepdims=True) + ab
    s2 = jnp.sum(hf2 * awf + hb2 * awb, axis=-1, keepdims=True) + ab
    m = jnp.maximum(s1, s2)
    e1 = jnp.exp(s1 - m)
    e2 = jnp.exp(s2 - m)
    inv = 1.0 / (e1 + e2)
    jk = (e1 * inv) * h1 + (e2 * inv) * h2

    # ---- head: (post-JK Linear folded into linear1) + relu + linear2 + relu ----
    y = jnp.maximum(
        jnp.dot(jk, wh_ref[...], preferred_element_type=jnp.float32) + bh_ref[...],
        0.0)
    # TODO(synk): functional dropout(p=0.2) treated as identity (eval mode).
    out = jnp.sum(y * w2r_ref[...], axis=-1, keepdims=True) + b2o_ref[...]
    o_ref[...] = jnp.maximum(out, 0.0)


def gsage_fused(a, xp, fp):
    n = a.shape[0]
    return pl.pallas_call(
        _gsage_kernel,
        out_shape=jax.ShapeDtypeStruct((n, 1), jnp.float32),
    )(a, xp,
      fp["w1cat"], fp["b1"], fp["w2cat"], fp["b2"],
      fp["wih_f"], fp["whh_f"], fp["b_f"],
      fp["wih_b"], fp["whh_b"], fp["b_b"],
      fp["attw_f"], fp["attw_b"], fp["attb"],
      fp["whead"], fp["bhead"], fp["w2row"], fp["b2out"])


# ---------------------------------------------------------------------------
# Parameter setup (same semantics as before) + fusion/padding prep
# ---------------------------------------------------------------------------
def init_params(key):
    def dense(k, fan_in, fan_out):
        s = 1.0 / jnp.sqrt(jnp.float32(fan_in))
        return jax.random.uniform(k, (fan_in, fan_out), jnp.float32, -s, s)

    ks = jax.random.split(key, 24)
    p = {}
    # SAGEConv1: lin_l (with bias) on aggregated, lin_r (no bias) on root
    p["w1l"] = dense(ks[0], F, H)
    p["b1l"] = dense(ks[1], 1, H)
    p["w1r"] = dense(ks[2], F, H)
    # SAGEConv2
    p["w2l"] = dense(ks[3], H, H)
    p["b2l"] = dense(ks[4], 1, H)
    p["w2r"] = dense(ks[5], H, H)
    # JK bidirectional LSTM (input 64, hidden 64), gate order i,f,g,o
    p["wih_f"] = dense(ks[6], H, 4 * H)
    p["whh_f"] = dense(ks[7], H, 4 * H)
    p["bf"] = dense(ks[8], 1, 4 * H) + dense(ks[9], 1, 4 * H)   # b_ih + b_hh
    p["wih_b"] = dense(ks[10], H, 4 * H)
    p["whh_b"] = dense(ks[11], H, 4 * H)
    p["bb"] = dense(ks[12], 1, 4 * H) + dense(ks[13], 1, 4 * H)
    # JK attention Linear(128, 1) split into fwd/bwd halves
    p["attw_f"] = dense(ks[14], H, 1)
    p["attw_b"] = dense(ks[15], H, 1)
    p["attb"] = dense(ks[16], 1, 1)
    # GraphSAGE post-JK projection Linear(64, 64)
    p["wjk"] = dense(ks[17], H, H)
    p["bjk"] = dense(ks[18], 1, H)
    # head linear1 (64->64), linear2 (64->1)
    p["w1"] = dense(ks[19], H, H)
    p["b1"] = dense(ks[20], 1, H)
    p["w2"] = dense(ks[21], H, 1)
    p["b2"] = dense(ks[22], 1, 1)
    return p


def prepare_params(p):
    """One-time weight fusion / padding done outside the kernel."""
    fp = {}
    # Layer 1: pad the F dim to FP and concat [Wl | Wr] -> (FP, 2H)
    w1cat = jnp.zeros((FP, 2 * H), jnp.float32)
    w1cat = w1cat.at[:F, :H].set(p["w1l"]).at[:F, H:].set(p["w1r"])
    fp["w1cat"] = w1cat
    fp["b1"] = p["b1l"]
    # Layer 2: concat [Wl | Wr] -> (H, 2H)
    fp["w2cat"] = jnp.concatenate([p["w2l"], p["w2r"]], axis=1)
    fp["b2"] = p["b2l"]
    # JK LSTM weights (already [in, 4H]); biases (1, 4H)
    fp["wih_f"], fp["whh_f"], fp["b_f"] = p["wih_f"], p["whh_f"], p["bf"]
    fp["wih_b"], fp["whh_b"], fp["b_b"] = p["wih_b"], p["whh_b"], p["bb"]
    # attention weights as row vectors for VPU mul + lane reduce
    fp["attw_f"] = p["attw_f"].T        # (1, H)
    fp["attw_b"] = p["attw_b"].T        # (1, H)
    fp["attb"] = p["attb"]              # (1, 1)
    # fold post-JK projection Linear(64,64) into head linear1 (no nonlinearity between)
    fp["whead"] = p["wjk"] @ p["w1"]                # (H, H)
    fp["bhead"] = p["bjk"] @ p["w1"] + p["b1"]      # (1, H)
    # head linear2 as a row vector for VPU mul + lane reduce
    fp["w2row"] = p["w2"].T             # (1, H)
    fp["b2out"] = p["b2"]               # (1, 1)
    return fp


def build_adjacency(edge_index, n):
    src, dst = edge_index[0], edge_index[1]
    a = jnp.zeros((n, n), jnp.float32).at[dst, src].add(1.0)
    deg = jnp.sum(a, axis=1, keepdims=True)
    return a / jnp.maximum(deg, 1.0)   # row-normalized: mean aggregation


@jax.jit
def gsage_forward(x, a_norm, fp):
    xp = jnp.pad(x, ((0, 0), (0, FP - F)))     # zero-pad features 100 -> 128
    return gsage_fused(a_norm, xp, fp)


if __name__ == "__main__":
    key = jax.random.PRNGKey(0)
    k_x, k_src, k_dst, k_par = jax.random.split(key, 4)

    x = jax.random.normal(k_x, (N, F), jnp.float32)
    edge_index = jnp.stack([
        jax.random.randint(k_src, (E,), 0, N),
        jax.random.randint(k_dst, (E,), 0, N),
    ])
    a_norm = build_adjacency(edge_index, N)
    params = init_params(k_par)
    fused_params = prepare_params(params)

    out = gsage_forward(x, a_norm, fused_params)
    jax.block_until_ready(out)
    assert out.shape == (N, 1) and out.dtype == jnp.float32
    assert bool(jnp.all(out >= 0.0))   # final ReLU
    print("KERNEL_OK")
</pallas_src>

<mosaic_0001>
module attributes {stable_mosaic.version = 11 : i64} {
  func.func @_gsage_kernel(%arg0: memref<128x128xf32, #tpu.memory_space<vmem>>, %arg1: memref<128x128xf32, #tpu.memory_space<vmem>>, %arg2: memref<128x128xf32, #tpu.memory_space<vmem>>, %arg3: memref<1x64xf32, #tpu.memory_space<vmem>>, %arg4: memref<64x128xf32, #tpu.memory_space<vmem>>, %arg5: memref<1x64xf32, #tpu.memory_space<vmem>>, %arg6: memref<64x256xf32, #tpu.memory_space<vmem>>, %arg7: memref<64x256xf32, #tpu.memory_space<vmem>>, %arg8: memref<1x256xf32, #tpu.memory_space<vmem>>, %arg9: memref<64x256xf32, #tpu.memory_space<vmem>>, %arg10: memref<64x256xf32, #tpu.memory_space<vmem>>, %arg11: memref<1x256xf32, #tpu.memory_space<vmem>>, %arg12: memref<1x64xf32, #tpu.memory_space<vmem>>, %arg13: memref<1x64xf32, #tpu.memory_space<vmem>>, %arg14: memref<1x1xf32, #tpu.memory_space<vmem>>, %arg15: memref<64x64xf32, #tpu.memory_space<vmem>>, %arg16: memref<1x64xf32, #tpu.memory_space<vmem>>, %arg17: memref<1x64xf32, #tpu.memory_space<vmem>>, %arg18: memref<1x1xf32, #tpu.memory_space<vmem>>, %arg19: memref<128x1xf32, #tpu.memory_space<vmem>>) attributes {dimension_semantics = [], scalar_prefetch = 0 : i64, scratch_operands = 0 : i64, tpu.core_type = #tpu.core_type<tc>} {
    %c0 = arith.constant 0 : index
    %c0_0 = arith.constant 0 : index
    %0 = vector.load %arg0[%c0, %c0_0] : memref<128x128xf32, #tpu.memory_space<vmem>>, vector<128x128xf32>
    %c0_1 = arith.constant 0 : index
    %c0_2 = arith.constant 0 : index
    %1 = vector.load %arg1[%c0_1, %c0_2] : memref<128x128xf32, #tpu.memory_space<vmem>>, vector<128x128xf32>
    %c0_3 = arith.constant 0 : index
    %c0_4 = arith.constant 0 : index
    %2 = vector.load %arg2[%c0_3, %c0_4] : memref<128x128xf32, #tpu.memory_space<vmem>>, vector<128x128xf32>
    %cst = arith.constant dense<0.000000e+00> : vector<128x128xf32>
    %3 = tpu.matmul %1, %2, %cst {dimension_numbers = #tpu.dot_dimension_numbers<[1], [0], [0], [1], [0, 0, 1, 1], [], []>} : vector<128x128xf32>, vector<128x128xf32>, vector<128x128xf32> -> vector<128x128xf32>
    %4 = vector.extract_strided_slice %3 {offsets = [0, 0], sizes = [128, 64], strides = [1, 1]} : vector<128x128xf32> to vector<128x64xf32>
    %cst_5 = arith.constant dense<0.000000e+00> : vector<128x64xf32>
    %5 = tpu.matmul %0, %4, %cst_5 {dimension_numbers = #tpu.dot_dimension_numbers<[1], [0], [0], [1], [0, 0, 1, 1], [], []>} : vector<128x128xf32>, vector<128x64xf32>, vector<128x64xf32> -> vector<128x64xf32>
    %6 = vector.extract_strided_slice %3 {offsets = [0, 64], sizes = [128, 64], strides = [1, 1]} : vector<128x128xf32> to vector<128x64xf32>
    %7 = arith.addf %5, %6 : vector<128x64xf32>
    %c0_6 = arith.constant 0 : index
    %c0_7 = arith.constant 0 : index
    %8 = vector.load %arg3[%c0_6, %c0_7] : memref<1x64xf32, #tpu.memory_space<vmem>>, vector<1x64xf32>
    %9 = vector.broadcast %8 : vector<1x64xf32> to vector<128x64xf32>
    %10 = arith.addf %7, %9 : vector<128x64xf32>
    %cst_8 = arith.constant 0.000000e+00 : f32
    %11 = vector.broadcast %cst_8 : f32 to vector<128x64xf32>
    %12 = arith.maximumf %10, %11 : vector<128x64xf32>
    %c0_9 = arith.constant 0 : index
    %c0_10 = arith.constant 0 : index
    %13 = vector.load %arg4[%c0_9, %c0_10] : memref<64x128xf32, #tpu.memory_space<vmem>>, vector<64x128xf32>
    %cst_11 = arith.constant dense<0.000000e+00> : vector<128x128xf32>
    %14 = tpu.matmul %12, %13, %cst_11 {dimension_numbers = #tpu.dot_dimension_numbers<[1], [0], [0], [1], [0, 0, 1, 1], [], []>} : vector<128x64xf32>, vector<64x128xf32>, vector<128x128xf32> -> vector<128x128xf32>
    %15 = vector.extract_strided_slice %14 {offsets = [0, 0], sizes = [128, 64], strides = [1, 1]} : vector<128x128xf32> to vector<128x64xf32>
    %cst_12 = arith.constant dense<0.000000e+00> : vector<128x64xf32>
    %16 = tpu.matmul %0, %15, %cst_12 {dimension_numbers = #tpu.dot_dimension_numbers<[1], [0], [0], [1], [0, 0, 1, 1], [], []>} : vector<128x128xf32>, vector<128x64xf32>, vector<128x64xf32> -> vector<128x64xf32>
    %17 = vector.extract_strided_slice %14 {offsets = [0, 64], sizes = [128, 64], strides = [1, 1]} : vector<128x128xf32> to vector<128x64xf32>
    %18 = arith.addf %16, %17 : vector<128x64xf32>
    %c0_13 = arith.constant 0 : index
    %c0_14 = arith.constant 0 : index
    %19 = vector.load %arg5[%c0_13, %c0_14] : memref<1x64xf32, #tpu.memory_space<vmem>>, vector<1x64xf32>
    %20 = vector.broadcast %19 : vector<1x64xf32> to vector<128x64xf32>
    %21 = arith.addf %18, %20 : vector<128x64xf32>
    %cst_15 = arith.constant 0.000000e+00 : f32
    %22 = vector.broadcast %cst_15 : f32 to vector<128x64xf32>
    %23 = arith.maximumf %21, %22 : vector<128x64xf32>
    %c0_16 = arith.constant 0 : index
    %c0_17 = arith.constant 0 : index
    %24 = vector.load %arg8[%c0_16, %c0_17] : memref<1x256xf32, #tpu.memory_space<vmem>>, vector<1x256xf32>
    %c0_18 = arith.constant 0 : index
    %c0_19 = arith.constant 0 : index
    %25 = vector.load %arg11[%c0_18, %c0_19] : memref<1x256xf32, #tpu.memory_space<vmem>>, vector<1x256xf32>
    %c0_20 = arith.constant 0 : index
    %c0_21 = arith.constant 0 : index
    %26 = vector.load %arg6[%c0_20, %c0_21] : memref<64x256xf32, #tpu.memory_space<vmem>>, vector<64x256xf32>
    %cst_22 = arith.constant dense<0.000000e+00> : vector<128x256xf32>
    %27 = tpu.matmul %12, %26, %cst_22 {dimension_numbers = #tpu.dot_dimension_numbers<[1], [0], [0], [1], [0, 0, 1, 1], [], []>} : vector<128x64xf32>, vector<64x256xf32>, vector<128x256xf32> -> vector<128x256xf32>
    %28 = vector.broadcast %24 : vector<1x256xf32> to vector<128x256xf32>
    %29 = arith.addf %27, %28 : vector<128x256xf32>
    %30 = vector.extract_strided_slice %29 {offsets = [0, 0], sizes = [128, 64], strides = [1, 1]} : vector<128x256xf32> to vector<128x64xf32>
    %31 = arith.negf %30 : vector<128x64xf32>
    %32 = math.exp %31 : vector<128x64xf32>
    %cst_23 = arith.constant 1.000000e+00 : f32
    %33 = vector.broadcast %cst_23 : f32 to vector<128x64xf32>
    %34 = arith.addf %33, %32 : vector<128x64xf32>
    %35 = arith.divf %33, %34 : vector<128x64xf32>
    %36 = vector.extract_strided_slice %29 {offsets = [0, 128], sizes = [128, 64], strides = [1, 1]} : vector<128x256xf32> to vector<128x64xf32>
    %37 = math.tanh %36 : vector<128x64xf32>
    %38 = vector.extract_strided_slice %29 {offsets = [0, 192], sizes = [128, 64], strides = [1, 1]} : vector<128x256xf32> to vector<128x64xf32>
    %39 = arith.negf %38 : vector<128x64xf32>
    %40 = math.exp %39 : vector<128x64xf32>
    %cst_24 = arith.constant 1.000000e+00 : f32
    %41 = vector.broadcast %cst_24 : f32 to vector<128x64xf32>
    %42 = arith.addf %41, %40 : vector<128x64xf32>
    %43 = arith.divf %41, %42 : vector<128x64xf32>
    %44 = arith.mulf %35, %37 : vector<128x64xf32>
    %45 = math.tanh %44 : vector<128x64xf32>
    %46 = arith.mulf %43, %45 : vector<128x64xf32>
    %c0_25 = arith.constant 0 : index
    %c0_26 = arith.constant 0 : index
    %47 = vector.load %arg6[%c0_25, %c0_26] : memref<64x256xf32, #tpu.memory_space<vmem>>, vector<64x256xf32>
    %cst_27 = arith.constant dense<0.000000e+00> : vector<128x256xf32>
    %48 = tpu.matmul %23, %47, %cst_27 {dimension_numbers = #tpu.dot_dimension_numbers<[1], [0], [0], [1], [0, 0, 1, 1], [], []>} : vector<128x64xf32>, vector<64x256xf32>, vector<128x256xf32> -> vector<128x256xf32>
    %c0_28 = arith.constant 0 : index
    %c0_29 = arith.constant 0 : index
    %49 = vector.load %arg7[%c0_28, %c0_29] : memref<64x256xf32, #tpu.memory_space<vmem>>, vector<64x256xf32>
    %cst_30 = arith.constant dense<0.000000e+00> : vector<128x256xf32>
    %50 = tpu.matmul %46, %49, %cst_30 {dimension_numbers = #tpu.dot_dimension_numbers<[1], [0], [0], [1], [0, 0, 1, 1], [], []>} : vector<128x64xf32>, vector<64x256xf32>, vector<128x256xf32> -> vector<128x256xf32>
    %51 = arith.addf %48, %50 : vector<128x256xf32>
    %52 = vector.broadcast %24 : vector<1x256xf32> to vector<128x256xf32>
    %53 = arith.addf %51, %52 : vector<128x256xf32>
    %54 = vector.extract_strided_slice %53 {offsets = [0, 0], sizes = [128, 64], strides = [1, 1]} : vector<128x256xf32> to vector<128x64xf32>
    %55 = arith.negf %54 : vector<128x64xf32>
    %56 = math.exp %55 : vector<128x64xf32>
    %cst_31 = arith.constant 1.000000e+00 : f32
    %57 = vector.broadcast %cst_31 : f32 to vector<128x64xf32>
    %58 = arith.addf %57, %56 : vector<128x64xf32>
    %59 = arith.divf %57, %58 : vector<128x64xf32>
    %60 = vector.extract_strided_slice %53 {offsets = [0, 128], sizes = [128, 64], strides = [1, 1]} : vector<128x256xf32> to vector<128x64xf32>
    %61 = math.tanh %60 : vector<128x64xf32>
    %62 = vector.extract_strided_slice %53 {offsets = [0, 192], sizes = [128, 64], strides = [1, 1]} : vector<128x256xf32> to vector<128x64xf32>
    %63 = arith.negf %62 : vector<128x64xf32>
    %64 = math.exp %63 : vector<128x64xf32>
    %cst_32 = arith.constant 1.000000e+00 : f32
    %65 = vector.broadcast %cst_32 : f32 to vector<128x64xf32>
    %66 = arith.addf %65, %64 : vector<128x64xf32>
    %67 = arith.divf %65, %66 : vector<128x64xf32>
    %68 = vector.extract_strided_slice %53 {offsets = [0, 64], sizes = [128, 64], strides = [1, 1]} : vector<128x256xf32> to vector<128x64xf32>
    %69 = arith.negf %68 : vector<128x64xf32>
    %70 = math.exp %69 : vector<128x64xf32>
    %cst_33 = arith.constant 1.000000e+00 : f32
    %71 = vector.broadcast %cst_33 : f32 to vector<128x64xf32>
    %72 = arith.addf %71, %70 : vector<128x64xf32>
    %73 = arith.divf %71, %72 : vector<128x64xf32>
    %74 = arith.mulf %73, %44 : vector<128x64xf32>
    %75 = arith.mulf %59, %61 : vector<128x64xf32>
    %76 = arith.addf %74, %75 : vector<128x64xf32>
    %77 = math.tanh %76 : vector<128x64xf32>
    %78 = arith.mulf %67, %77 : vector<128x64xf32>
    %c0_34 = arith.constant 0 : index
    %c0_35 = arith.constant 0 : index
    %79 = vector.load %arg9[%c0_34, %c0_35] : memref<64x256xf32, #tpu.memory_space<vmem>>, vector<64x256xf32>
    %cst_36 = arith.constant dense<0.000000e+00> : vector<128x256xf32>
    %80 = tpu.matmul %23, %79, %cst_36 {dimension_numbers = #tpu.dot_dimension_numbers<[1], [0], [0], [1], [0, 0, 1, 1], [], []>} : vector<128x64xf32>, vector<64x256xf32>, vector<128x256xf32> -> vector<128x256xf32>
    %81 = vector.broadcast %25 : vector<1x256xf32> to vector<128x256xf32>
    %82 = arith.addf %80, %81 : vector<128x256xf32>
    %83 = vector.extract_strided_slice %82 {offsets = [0, 0], sizes = [128, 64], strides = [1, 1]} : vector<128x256xf32> to vector<128x64xf32>
    %84 = arith.negf %83 : vector<128x64xf32>
    %85 = math.exp %84 : vector<128x64xf32>
    %cst_37 = arith.constant 1.000000e+00 : f32
    %86 = vector.broadcast %cst_37 : f32 to vector<128x64xf32>
    %87 = arith.addf %86, %85 : vector<128x64xf32>
    %88 = arith.divf %86, %87 : vector<128x64xf32>
    %89 = vector.extract_strided_slice %82 {offsets = [0, 128], sizes = [128, 64], strides = [1, 1]} : vector<128x256xf32> to vector<128x64xf32>
    %90 = math.tanh %89 : vector<128x64xf32>
    %91 = vector.extract_strided_slice %82 {offsets = [0, 192], sizes = [128, 64], strides = [1, 1]} : vector<128x256xf32> to vector<128x64xf32>
    %92 = arith.negf %91 : vector<128x64xf32>
    %93 = math.exp %92 : vector<128x64xf32>
    %cst_38 = arith.constant 1.000000e+00 : f32
    %94 = vector.broadcast %cst_38 : f32 to vector<128x64xf32>
    %95 = arith.addf %94, %93 : vector<128x64xf32>
    %96 = arith.divf %94, %95 : vector<128x64xf32>
    %97 = arith.mulf %88, %90 : vector<128x64xf32>
    %98 = math.tanh %97 : vector<128x64xf32>
    %99 = arith.mulf %96, %98 : vector<128x64xf32>
    %c0_39 = arith.constant 0 : index
    %c0_40 = arith.constant 0 : index
    %100 = vector.load %arg9[%c0_39, %c0_40] : memref<64x256xf32, #tpu.memory_space<vmem>>, vector<64x256xf32>
    %cst_41 = arith.constant dense<0.000000e+00> : vector<128x256xf32>
    %101 = tpu.matmul %12, %100, %cst_41 {dimension_numbers = #tpu.dot_dimension_numbers<[1], [0], [0], [1], [0, 0, 1, 1], [], []>} : vector<128x64xf32>, vector<64x256xf32>, vector<128x256xf32> -> vector<128x256xf32>
    %c0_42 = arith.constant 0 : index
    %c0_43 = arith.constant 0 : index
    %102 = vector.load %arg10[%c0_42, %c0_43] : memref<64x256xf32, #tpu.memory_space<vmem>>, vector<64x256xf32>
    %cst_44 = arith.constant dense<0.000000e+00> : vector<128x256xf32>
    %103 = tpu.matmul %99, %102, %cst_44 {dimension_numbers = #tpu.dot_dimension_numbers<[1], [0], [0], [1], [0, 0, 1, 1], [], []>} : vector<128x64xf32>, vector<64x256xf32>, vector<128x256xf32> -> vector<128x256xf32>
    %104 = arith.addf %101, %103 : vector<128x256xf32>
    %105 = vector.broadcast %25 : vector<1x256xf32> to vector<128x256xf32>
    %106 = arith.addf %104, %105 : vector<128x256xf32>
    %107 = vector.extract_strided_slice %106 {offsets = [0, 0], sizes = [128, 64], strides = [1, 1]} : vector<128x256xf32> to vector<128x64xf32>
    %108 = arith.negf %107 : vector<128x64xf32>
    %109 = math.exp %108 : vector<128x64xf32>
    %cst_45 = arith.constant 1.000000e+00 : f32
    %110 = vector.broadcast %cst_45 : f32 to vector<128x64xf32>
    %111 = arith.addf %110, %109 : vector<128x64xf32>
    %112 = arith.divf %110, %111 : vector<128x64xf32>
    %113 = vector.extract_strided_slice %106 {offsets = [0, 128], sizes = [128, 64], strides = [1, 1]} : vector<128x256xf32> to vector<128x64xf32>
    %114 = math.tanh %113 : vector<128x64xf32>
    %115 = vector.extract_strided_slice %106 {offsets = [0, 192], sizes = [128, 64], strides = [1, 1]} : vector<128x256xf32> to vector<128x64xf32>
    %116 = arith.negf %115 : vector<128x64xf32>
    %117 = math.exp %116 : vector<128x64xf32>
    %cst_46 = arith.constant 1.000000e+00 : f32
    %118 = vector.broadcast %cst_46 : f32 to vector<128x64xf32>
    %119 = arith.addf %118, %117 : vector<128x64xf32>
    %120 = arith.divf %118, %119 : vector<128x64xf32>
    %121 = vector.extract_strided_slice %106 {offsets = [0, 64], sizes = [128, 64], strides = [1, 1]} : vector<128x256xf32> to vector<128x64xf32>
    %122 = arith.negf %121 : vector<128x64xf32>
    %123 = math.exp %122 : vector<128x64xf32>
    %cst_47 = arith.constant 1.000000e+00 : f32
    %124 = vector.broadcast %cst_47 : f32 to vector<128x64xf32>
    %125 = arith.addf %124, %123 : vector<128x64xf32>
    %126 = arith.divf %124, %125 : vector<128x64xf32>
    %127 = arith.mulf %126, %97 : vector<128x64xf32>
    %128 = arith.mulf %112, %114 : vector<128x64xf32>
    %129 = arith.addf %127, %128 : vector<128x64xf32>
    %130 = math.tanh %129 : vector<128x64xf32>
    %131 = arith.mulf %120, %130 : vector<128x64xf32>
    %c0_48 = arith.constant 0 : index
    %c0_49 = arith.constant 0 : index
    %132 = vector.load %arg12[%c0_48, %c0_49] : memref<1x64xf32, #tpu.memory_space<vmem>>, vector<1x64xf32>
    %c0_50 = arith.constant 0 : index
    %c0_51 = arith.constant 0 : index
    %133 = vector.load %arg13[%c0_50, %c0_51] : memref<1x64xf32, #tpu.memory_space<vmem>>, vector<1x64xf32>
    %c0_52 = arith.constant 0 : index
    %c0_53 = arith.constant 0 : index
    %134 = vector.load %arg14[%c0_52, %c0_53] : memref<1x1xf32, #tpu.memory_space<vmem>>, vector<1x1xf32>
    %135 = vector.broadcast %132 : vector<1x64xf32> to vector<128x64xf32>
    %136 = arith.mulf %46, %135 : vector<128x64xf32>
    %137 = vector.broadcast %133 : vector<1x64xf32> to vector<128x64xf32>
    %138 = arith.mulf %131, %137 : vector<128x64xf32>
    %139 = arith.addf %136, %138 : vector<128x64xf32>
    %cst_54 = arith.constant dense<0.000000e+00> : vector<128xf32>
    %140 = vector.multi_reduction <add>, %139, %cst_54 [1] : vector<128x64xf32> to vector<128xf32>
    %141 = vector.shape_cast %140 : vector<128xf32> to vector<128x1xf32>
    %142 = vector.broadcast %134 : vector<1x1xf32> to vector<128x1xf32>
    %143 = arith.addf %141, %142 : vector<128x1xf32>
    %144 = vector.broadcast %132 : vector<1x64xf32> to vector<128x64xf32>
    %145 = arith.mulf %78, %144 : vector<128x64xf32>
    %146 = vector.broadcast %133 : vector<1x64xf32> to vector<128x64xf32>
    %147 = arith.mulf %99, %146 : vector<128x64xf32>
    %148 = arith.addf %145, %147 : vector<128x64xf32>
    %cst_55 = arith.constant dense<0.000000e+00> : vector<128xf32>
    %149 = vector.multi_reduction <add>, %148, %cst_55 [1] : vector<128x64xf32> to vector<128xf32>
    %150 = vector.shape_cast %149 : vector<128xf32> to vector<128x1xf32>
    %151 = vector.broadcast %134 : vector<1x1xf32> to vector<128x1xf32>
    %152 = arith.addf %150, %151 : vector<128x1xf32>
    %153 = arith.maximumf %143, %152 : vector<128x1xf32>
    %154 = arith.subf %143, %153 : vector<128x1xf32>
    %155 = math.exp %154 : vector<128x1xf32>
    %156 = arith.subf %152, %153 : vector<128x1xf32>
    %157 = math.exp %156 : vector<128x1xf32>
    %158 = arith.addf %155, %157 : vector<128x1xf32>
    %cst_56 = arith.constant 1.000000e+00 : f32
    %159 = vector.broadcast %cst_56 : f32 to vector<128x1xf32>
    %160 = arith.divf %159, %158 : vector<128x1xf32>
    %161 = arith.mulf %155, %160 : vector<128x1xf32>
    %162 = vector.broadcast %161 : vector<128x1xf32> to vector<128x64xf32>
    %163 = arith.mulf %162, %12 : vector<128x64xf32>
    %164 = arith.mulf %157, %160 : vector<128x1xf32>
    %165 = vector.broadcast %164 : vector<128x1xf32> to vector<128x64xf32>
    %166 = arith.mulf %165, %23 : vector<128x64xf32>
    %167 = arith.addf %163, %166 : vector<128x64xf32>
    %c0_57 = arith.constant 0 : index
    %c0_58 = arith.constant 0 : index
    %168 = vector.load %arg15[%c0_57, %c0_58] : memref<64x64xf32, #tpu.memory_space<vmem>>, vector<64x64xf32>
    %cst_59 = arith.constant dense<0.000000e+00> : vector<128x64xf32>
    %169 = tpu.matmul %167, %168, %cst_59 {dimension_numbers = #tpu.dot_dimension_numbers<[1], [0], [0], [1], [0, 0, 1, 1], [], []>} : vector<128x64xf32>, vector<64x64xf32>, vector<128x64xf32> -> vector<128x64xf32>
    %c0_60 = arith.constant 0 : index
    %c0_61 = arith.constant 0 : index
    %170 = vector.load %arg16[%c0_60, %c0_61] : memref<1x64xf32, #tpu.memory_space<vmem>>, vector<1x64xf32>
    %171 = vector.broadcast %170 : vector<1x64xf32> to vector<128x64xf32>
    %172 = arith.addf %169, %171 : vector<128x64xf32>
    %cst_62 = arith.constant 0.000000e+00 : f32
    %173 = vector.broadcast %cst_62 : f32 to vector<128x64xf32>
    %174 = arith.maximumf %172, %173 : vector<128x64xf32>
    %c0_63 = arith.constant 0 : index
    %c0_64 = arith.constant 0 : index
    %175 = vector.load %arg17[%c0_63, %c0_64] : memref<1x64xf32, #tpu.memory_space<vmem>>, vector<1x64xf32>
    %176 = vector.broadcast %175 : vector<1x64xf32> to vector<128x64xf32>
    %177 = arith.mulf %174, %176 : vector<128x64xf32>
    %cst_65 = arith.constant dense<0.000000e+00> : vector<128xf32>
    %178 = vector.multi_reduction <add>, %177, %cst_65 [1] : vector<128x64xf32> to vector<128xf32>
    %179 = vector.shape_cast %178 : vector<128xf32> to vector<128x1xf32>
    %c0_66 = arith.constant 0 : index
    %c0_67 = arith.constant 0 : index
    %180 = vector.load %arg18[%c0_66, %c0_67] : memref<1x1xf32, #tpu.memory_space<vmem>>, vector<1x1xf32>
    %181 = vector.broadcast %180 : vector<1x1xf32> to vector<128x1xf32>
    %182 = arith.addf %179, %181 : vector<128x1xf32>
    %cst_68 = arith.constant 0.000000e+00 : f32
    %183 = vector.broadcast %cst_68 : f32 to vector<128x1xf32>
    %184 = arith.maximumf %182, %183 : vector<128x1xf32>
    %c0_69 = arith.constant 0 : index
    %c0_70 = arith.constant 0 : index
    %185 = vector.load %arg19[%c0_69, %c0_70] : memref<128x1xf32, #tpu.memory_space<vmem>>, vector<128x1xf32>
    tpu.vector_store %arg19[%c0_69, %c0_70], %184 {strides = array<i32>} : memref<128x1xf32, #tpu.memory_space<vmem>>, vector<128x1xf32>,
    return
  }
}

</mosaic_0001>

<bundles_post_ra>
// kernel: gsage_forward.1
= control target key start
LH: loop header
LB: loop body
LE: loop exit
PB: predicated region body
PF: predicated region fallthrough
CT: control target
= control target key end

     0   :  { %s9690_s0 = inlined_call_operand.vmem [shape: f32[128,128], index: 0, kind: input, shape index: {}]   ;;  %s9691_s1 = inlined_call_operand.vmem [shape: f32[128,128], index: 1, kind: input, shape index: {}]   ;;  %s9692_s2 = inlined_call_operand.vmem [shape: f32[128,128], index: 2, kind: input, shape index: {}]   ;;  %s9693_s3 = inlined_call_operand.vmem [shape: f32[1,64], index: 3, kind: input, shape index: {}]   ;;  %s9694_s4 = inlined_call_operand.hbm [shape: f32[64,128], index: 4, kind: input, shape index: {}]   ;;  %s9695_s5 = inlined_call_operand.vmem [shape: f32[1,64], index: 5, kind: input, shape index: {}]   ;;  %s9696_s6 = inlined_call_operand.vmem [shape: f32[64,256], index: 6, kind: input, shape index: {}]   ;;  %s9697_s7 = inlined_call_operand.vmem [shape: f32[64,256], index: 7, kind: input, shape index: {}]   ;;  %s9698_s8 = inlined_call_operand.vmem [shape: f32[1,256], index: 8, kind: input, shape index: {}]   ;;  %s9699_s9 = inlined_call_operand.hbm [shape: f32[64,256], index: 9, kind: input, shape index: {}]   ;;  %s9700_s10 = inlined_call_operand.hbm [shape: f32[64,256], index: 10, kind: input, shape index: {}]   ;;  %s9701_s11 = inlined_call_operand.vmem [shape: f32[1,256], index: 11, kind: input, shape index: {}]   ;;  %s9702_s12 = inlined_call_operand.vmem [shape: f32[1,64], index: 12, kind: input, shape index: {}]   ;;  %s9703_s13 = inlined_call_operand.hbm [shape: f32[1,64], index: 13, kind: input, shape index: {}]   ;;  %s9704_s14 = inlined_call_operand.<no memory space> [shape: f32[1,1], index: 14, kind: input, shape index: {}]   ;;  %s9705_s15 = inlined_call_operand.hbm [shape: f32[64,64], index: 15, kind: input, shape index: {}]   ;;  %s9706_s16 = inlined_call_operand.vmem [shape: f32[1,64], index: 16, kind: input, shape index: {}]   ;;  %s9707_s17 = inlined_call_operand.vmem [shape: f32[1,64], index: 17, kind: input, shape index: {}]   ;;  %s9708_s19 = inlined_call_operand.vmem [shape: f32[128,1], index: 19, kind: output, shape index: {}]   ;;  %s9709_s18 = inlined_call_operand.<no memory space> [shape: f32[1,1], index: 18, kind: input, shape index: {}]  }
   0x1   :  { %9876 = sst [smem:[#allocation123_spill]] %s9690_s0  ;;  %v24_v0 = vstv %s9704_s14  ;;  %v26_v1 = vstv %s9709_s18 }
   0x2   :  { %9877 = sst [smem:[#allocation124_spill]] %s9691_s1  ;;  %25 = vst [vmem:[#allocation2] sm:$0x1] %v24_v0  ;;  %27 = vst [vmem:[#allocation3] sm:$0x1] %v26_v1 }
   0x3   :  { %9878 = sst [smem:[#allocation125_spill]] %s9692_s2 }
   0x4   :  { %9879 = sst [smem:[#allocation126_spill]] %s9693_s3 }
   0x5   :  { %28 = vsyncpa [#allocation5], 0 }
   0x6   :  { %29 = vsyncpa [#allocation7], 0 }
   0x7   :  { %30 = vsyncpa [#allocation10], 0  ;;  %s6894_s1 = smov [#allocation6]   ;;  %s6778_s24 = scalar_lea.hbm %s9699_s9, 2048 }
   0x8   :  { %s64_s22 = sshll.u32 %s6894_s1, 4  ;;  %p6779_p0 = scmp.ne.s32.totalorder %s9699_s9, %s6778_s24  ;;  %s65_s22 = int_to_ptr.vmem [resolvable:$true] %s64_s22 }
   0x9   :  { %p6782_p1 = scmp.lt.u32.totalorder %s6778_s24, %s9699_s9 }
   0xb   :  { %p6784_p2 = pnand %p6782_p1, %p6779_p0 }
   0xd   :  { %6787 = shalt.err (!%p6784_p2)
}
   0xe   :  { %s6788_s18 = scalar_lea.vmem %s65_s22, 2048  ;;  %p6793_p4 = scmp.lt.s32.totalorder %s65_s22, %s65_s22 }
   0xf   :  { %p6789_p3 = scmp.ne.s32.totalorder %s65_s22, %s6788_s18  ;;  %p6794_p5 = scmp.lt.s32.totalorder %s6788_s18, %s6788_s18 }
  0x11   :  { %p6795_p6 = por %p6794_p5, %p6793_p4 }
  0x13   :  { %p6796_p7 = pnand %p6795_p6, %p6789_p3 }
  0x15   :  { %6799 = shalt.err (!%p6796_p7)
}
  0x16   :  { %s6895_s27 = smov 256   ;;  %s6896_s28 = smov 16  }
  0x17   :  { %70 = dma.hbm_to_vmem [thread:$0]  %s9699_s9, 2048, %s65_s22, [#allocation7], %s6895_s27, %s6895_s27, %s6896_s28  }
  0x18   :  { %s6897_s30 = smov [#allocation9]   ;;  %s6898_s21 = smov [#allocation4]  }
  0x19   :  { %s93_s20 = sshll.u32 %s6897_s30, 4  ;;  %s44_s1 = sshll.u32 %s6898_s21, 4  ;;  %s94_s20 = int_to_ptr.vmem [resolvable:$true] %s93_s20  ;;  %s45_s1 = int_to_ptr.vmem [resolvable:$true] %s44_s1 }
  0x1a   :  { %s6800_s24 = scalar_lea.hbm %s9703_s13, 16 }
  0x1b   :  { %p6801_p8 = scmp.ne.s32.totalorder %s9703_s13, %s6800_s24  ;;  %p6804_p9 = scmp.lt.u32.totalorder %s6800_s24, %s9703_s13 }
  0x1d   :  { %p6806_p10 = pnand %p6804_p9, %p6801_p8 }
  0x1f   :  { %6809 = shalt.err (!%p6806_p10)
}
  0x20   :  { %s6810_s9 = scalar_lea.vmem %s94_s20, 16  ;;  %s6814_s22 = scalar_lea.vmem %s94_s20, 32 }
  0x21   :  { %p6811_p11 = scmp.ne.s32.totalorder %s94_s20, %s6810_s9  ;;  %p6815_p12 = scmp.lt.s32.totalorder %s94_s20, %s94_s20 }
  0x22   :  { %p6816_p13 = scmp.lt.s32.totalorder %s6814_s22, %s6810_s9 }
  0x24   :  { %p6817_p0 = por %p6816_p13, %p6815_p12 }
  0x26   :  { %p6818_p1 = pnand %p6817_p0, %p6811_p11 }
  0x28   :  { %6821 = shalt.err (!%p6818_p1)
}
  0x29   :  { %96 = dma.hbm_to_vmem [thread:$0]  %s9703_s13, 16, %s94_s20, [#allocation10]  }
  0x2a   :  { %s6822_s21 = scalar_lea.hbm %s9694_s4, 1024 }
  0x2b   :  { %p6823_p2 = scmp.ne.s32.totalorder %s9694_s4, %s6822_s21  ;;  %p6826_p3 = scmp.lt.u32.totalorder %s6822_s21, %s9694_s4 }
  0x2d   :  { %p6828_p4 = pnand %p6826_p3, %p6823_p2 }
  0x2f   :  { %6831 = shalt.err (!%p6828_p4)
}
  0x30   :  { %s6832_s3 = scalar_lea.vmem %s45_s1, 1024  ;;  %p6837_p6 = scmp.lt.s32.totalorder %s45_s1, %s45_s1 }
  0x31   :  { %p6833_p5 = scmp.ne.s32.totalorder %s45_s1, %s6832_s3  ;;  %p6838_p7 = scmp.lt.s32.totalorder %s6832_s3, %s6832_s3 }
  0x33   :  { %p6839_p8 = por %p6838_p7, %p6837_p6 }
  0x35   :  { %p6840_p9 = pnand %p6839_p8, %p6833_p5 }
  0x37   :  { %6843 = shalt.err (!%p6840_p9)
}
  0x38   :  { %s6899_s13 = smov 128   ;;  %s6900_s20 = smov 8  }
  0x39   :  { %50 = dma.hbm_to_vmem [thread:$0]  %s9694_s4, 1024, %s45_s1, [#allocation5], %s6899_s13, %s6899_s13, %s6900_s20  }
  0x3a   :  { %s6901_s9 = smov [#allocation8]   ;;  %s6902_s18 = smov [#allocation11]  }
  0x3b   :  { %s76_s22 = sshll.u32 %s6901_s9, 4  ;;  %s104_s29 = sshll.u32 %s6902_s18, 4  ;;  %s77_s22 = int_to_ptr.vmem [resolvable:$true] %s76_s22  ;;  %s105_s29 = int_to_ptr.vmem [resolvable:$true] %s104_s29 }
  0x3c   :  { %s6844_s21 = scalar_lea.hbm %s9700_s10, 2048 }
  0x3d   :  { %p6845_p10 = scmp.ne.s32.totalorder %s9700_s10, %s6844_s21  ;;  %p6848_p11 = scmp.lt.u32.totalorder %s6844_s21, %s9700_s10 }
  0x3f   :  { %p6850_p12 = pnand %p6848_p11, %p6845_p10 }
  0x41   :  { %6853 = shalt.err (!%p6850_p12)
}
  0x42   :  { %s6854_s4 = scalar_lea.vmem %s77_s22, 2048  ;;  %p6859_p0 = scmp.lt.s32.totalorder %s77_s22, %s77_s22 }
  0x43   :  { %p6855_p13 = scmp.ne.s32.totalorder %s77_s22, %s6854_s4  ;;  %p6860_p1 = scmp.lt.s32.totalorder %s6854_s4, %s6854_s4 }
  0x45   :  { %p6861_p2 = por %p6860_p1, %p6859_p0 }
  0x47   :  { %p6862_p3 = pnand %p6861_p2, %p6855_p13 }
  0x49   :  { %6865 = shalt.err (!%p6862_p3)
}
  0x4a   :  { %82 = dma.hbm_to_vmem [thread:$0]  %s9700_s10, 2048, %s77_s22, [#allocation7], %s6895_s27, %s6895_s27, %s6896_s28  }
  0x4b   :  { %s6866_s9 = scalar_lea.hbm %s9705_s15, 1024 }
  0x4c   :  { %p6867_p4 = scmp.ne.s32.totalorder %s9705_s15, %s6866_s9  ;;  %p6870_p5 = scmp.lt.u32.totalorder %s6866_s9, %s9705_s15 }
  0x4e   :  { %p6872_p6 = pnand %p6870_p5, %p6867_p4 }
  0x50   :  { %6875 = shalt.err (!%p6872_p6)
}
  0x51   :  { %s6876_s2 = scalar_lea.vmem %s105_s29, 1024  ;;  %p6881_p8 = scmp.lt.s32.totalorder %s105_s29, %s105_s29 }
  0x52   :  { %p6877_p7 = scmp.ne.s32.totalorder %s105_s29, %s6876_s2  ;;  %p6882_p9 = scmp.lt.s32.totalorder %s6876_s2, %s6876_s2 }
  0x54   :  { %p6883_p10 = por %p6882_p9, %p6881_p8 }
  0x56   :  { %p6884_p11 = pnand %p6883_p10, %p6877_p7 }
  0x58   :  { %6887 = shalt.err (!%p6884_p11)
}
  0x59   :  { %110 = dma.hbm_to_vmem [thread:$0]  %s9705_s15, 1024, %s105_s29, [#allocation10], %s6899_s13, %s6899_s13, %s6900_s20  }
  0x5a   :  { %6888 = dma.done.wait [#allocation5], 1024  }
  0x5b   :  { %6889 = vsyncadd [#allocation5], 4294966272 }
  0x5c   :  { %6890 = dma.done.wait [#allocation7], 4096  }
  0x5d   :  { %6891 = vsyncadd [#allocation7], 4294963200 }
  0x5e   :  { %6892 = dma.done.wait [#allocation10], 1040  }
  0x5f   :  { %6893 = vsyncadd [#allocation10], 4294966256  ;;  %s9880_s23 = sld [smem:[#allocation125_spill]]  ;;  %s9881_s18 = sld [smem:[#allocation124_spill]]  ;;  %v573_v59 = vld [vmem:[#allocation4] sm:$0xff]  ;;  %v574_v60 = vld [vmem:[#allocation4 + $0x8] sm:$0xff] }
  0x60   :  { %s9882_s4 = sld [smem:[#allocation123_spill]]  ;;  %s6903_s1 = smov 64   ;;  %v575_v61 = vld [vmem:[#allocation4 + $0x10] sm:$0xff]  ;;  %v5676_v63 = vpack.c.bf16 %v574_v60, %v573_v59  ;;  %v576_v0 = vld [vmem:[#allocation4 + $0x18] sm:$0xff]  ;;  %vm581_vm0 = vcmask 523264   ;;  %vm4932_vm1 = vcmask 7168  }
  0x62   :  { %5677 = vmatprep.subr.bf16.mxu0 %v5676_v63 }
  0x63   :  { %5679 = vmatpush3.bf16.msra.mxu0 %v5676_v63 }
  0x65   :  { %v164_v2 = vld [vmem:[%s9880_s23] sm:$0xff]  ;;  %v165_v3 = vld [vmem:[%s9880_s23 + $0x8] sm:$0xff]  ;;  %v166_v4 = vld [vmem:[%s9880_s23 + $0x10] sm:$0xff] }
  0x66   :  { %v5612_v5 = vpack.c.bf16 %v165_v3, %v164_v2  ;;  %v167_v6 = vld [vmem:[%s9880_s23 + $0x18] sm:$0xff]  ;;  %v168_v8 = vld [vmem:[%s9880_s23 + $0x20] sm:$0xff]  ;;  %v169_v9 = vld [vmem:[%s9880_s23 + $0x28] sm:$0xff]  ;;  %v5680_v2 = vpack.c.bf16 %v576_v0, %v575_v61 }
  0x67   :  { %v5616_v7 = vpack.c.bf16 %v167_v6, %v166_v4  ;;  %v5620_v10 = vpack.c.bf16 %v169_v9, %v168_v8  ;;  %v148_v11 = vld [vmem:[%s9881_s18] sm:$0xff]  ;;  %v170_v12 = vld [vmem:[%s9880_s23 + $0x30] sm:$0xff]  ;;  %v171_v13 = vld [vmem:[%s9880_s23 + $0x38] sm:$0xff] }
  0x68   :  { %5613 = vmatprep.subr.bf16.mxu1 %v5612_v5  ;;  %5396 = vmatprep.mubr.f32.mxu1 %v148_v11  ;;  %v5624_v14 = vpack.c.bf16 %v171_v13, %v170_v12  ;;  %v172_v15 = vld [vmem:[%s9880_s23 + $0x40] sm:$0xff]  ;;  %v173_v16 = vld [vmem:[%s9880_s23 + $0x48] sm:$0xff]  ;;  %v174_v18 = vld [vmem:[%s9880_s23 + $0x50] sm:$0xff] }
  0x69   :  { %5615 = vmatpush3.bf16.msra.mxu1 %v5612_v5  ;;  %v5628_v17 = vpack.c.bf16 %v173_v16, %v172_v15  ;;  %v175_v19 = vld [vmem:[%s9880_s23 + $0x58] sm:$0xff]  ;;  %v176_v21 = vld [vmem:[%s9880_s23 + $0x60] sm:$0xff]  ;;  %v177_v22 = vld [vmem:[%s9880_s23 + $0x68] sm:$0xff]  ;;  %5681 = vmatprep.subr.bf16.mxu0 %v5680_v2 }
  0x6a   :  { %5617 = vmatprep.subr.bf16.mxu1 %v5616_v7  ;;  %v5632_v20 = vpack.c.bf16 %v175_v19, %v174_v18  ;;  %v5636_v23 = vpack.c.bf16 %v177_v22, %v176_v21  ;;  %v178_v24 = vld [vmem:[%s9880_s23 + $0x70] sm:$0xff]  ;;  %v179_v25 = vld [vmem:[%s9880_s23 + $0x78] sm:$0xff]  ;;  %v149_v27 = vld [vmem:[%s9881_s18 + $0x8] sm:$0xff]  ;;  %5683 = vmatpush3.bf16.msra.mxu0 %v5680_v2  ;;  %s9883_s23 = sld [smem:[#allocation126_spill]] }
  0x6b   :  { %v5640_v26 = vpack.c.bf16 %v179_v25, %v178_v24  ;;  %v150_v28 = vld [vmem:[%s9881_s18 + $0x10] sm:$0xff]  ;;  %v151_v29 = vld [vmem:[%s9881_s18 + $0x18] sm:$0xff]  ;;  %v152_v30 = vld [vmem:[%s9881_s18 + $0x20] sm:$0xff] }
  0x6c   :  { %v153_v31 = vld [vmem:[%s9881_s18 + $0x28] sm:$0xff]  ;;  %v154_v32 = vld [vmem:[%s9881_s18 + $0x30] sm:$0xff]  ;;  %v155_v33 = vld [vmem:[%s9881_s18 + $0x38] sm:$0xff] }
  0x6d   :  { %5619 = vmatpush3.bf16.msra.mxu1 %v5616_v7  ;;  %v156_v34 = vld [vmem:[%s9881_s18 + $0x40] sm:$0xff]  ;;  %v157_v35 = vld [vmem:[%s9881_s18 + $0x48] sm:$0xff]  ;;  %v158_v36 = vld [vmem:[%s9881_s18 + $0x50] sm:$0xff] }
  0x6e   :  { %5621 = vmatprep.subr.bf16.mxu1 %v5620_v10  ;;  %v159_v37 = vld [vmem:[%s9881_s18 + $0x58] sm:$0xff]  ;;  %v160_v38 = vld [vmem:[%s9881_s18 + $0x60] sm:$0xff]  ;;  %v161_v39 = vld [vmem:[%s9881_s18 + $0x68] sm:$0xff] }
  0x6f   :  { %v162_v40 = vld [vmem:[%s9881_s18 + $0x70] sm:$0xff]  ;;  %v163_v41 = vld [vmem:[%s9881_s18 + $0x78] sm:$0xff]  ;;  %v7183_v42 = vld [vmem:[%s9882_s4] sm:$0xff] }
  0x70   :  { %v7204_v9 = vld [vmem:[%s9882_s4 + $0x8] sm:$0xff]  ;;  %v7217_v11 = vld [vmem:[%s9882_s4 + $0x18] sm:$0xff]  ;;  %v7222_v12 = vld [vmem:[%s9882_s4 + $0x20] sm:$0xff] }
  0x71   :  { %5623 = vmatpush3.bf16.msra.mxu1 %v5620_v10  ;;  %v7210_v10 = vld [vmem:[%s9882_s4 + $0x10] sm:$0xff]  ;;  %v7229_v13 = vld [vmem:[%s9882_s4 + $0x28] sm:$0xff]  ;;  %v7241_v15 = vld [vmem:[%s9882_s4 + $0x38] sm:$0xff] }
  0x72   :  { %5625 = vmatprep.subr.bf16.mxu1 %v5624_v14  ;;  %v7246_v16 = vld [vmem:[%s9882_s4 + $0x40] sm:$0xff]  ;;  %v7258_v18 = vld [vmem:[%s9882_s4 + $0x50] sm:$0xff]  ;;  %v7265_v19 = vld [vmem:[%s9882_s4 + $0x58] sm:$0xff] }
  0x73   :  { %v7277_v21 = vld [vmem:[%s9882_s4 + $0x68] sm:$0xff]  ;;  %v7282_v22 = vld [vmem:[%s9882_s4 + $0x70] sm:$0xff]  ;;  %v1029_v61 = vld [vmem:[%s9696_s6 + $0x20] sm:$0xff] }
  0x74   :  { %v577_v24 = vld [vmem:[#allocation4 + $0x20] sm:$0xff]  ;;  %v578_v25 = vld [vmem:[#allocation4 + $0x28] sm:$0xff]  ;;  %v1036_v2 = vld [vmem:[%s9696_s6 + $0x58] sm:$0xff] }
  0x75   :  { %5627 = vmatpush3.bf16.msra.mxu1 %v5624_v14  ;;  %v7234_v14 = vld [vmem:[%s9882_s4 + $0x30] sm:$0xff] }
  0x76   :  { %5629 = vmatprep.subr.bf16.mxu1 %v5628_v17 }
  0x79   :  { %5631 = vmatpush3.bf16.msra.mxu1 %v5628_v17  ;;  %v7253_v17 = vld [vmem:[%s9882_s4 + $0x48] sm:$0xff] }
  0x7a   :  { %5633 = vmatprep.subr.bf16.mxu1 %v5632_v20 }
  0x7d   :  { %5635 = vmatpush3.bf16.msra.mxu1 %v5632_v20  ;;  %v7270_v20 = vld [vmem:[%s9882_s4 + $0x60] sm:$0xff] }
  0x7e   :  { %5637 = vmatprep.subr.bf16.mxu1 %v5636_v23 }
  0x81   :  { %5639 = vmatpush3.bf16.msra.mxu1 %v5636_v23  ;;  %v7289_v23 = vld [vmem:[%s9882_s4 + $0x78] sm:$0xff] }
  0x82   :  { %5641 = vmatprep.subr.bf16.mxu1 %v5640_v26 }
  0x85   :  { %5643 = vmatpush3.bf16.msra.mxu1 %v5640_v26  ;;  %v5684_v26 = vpack.c.bf16 %v578_v25, %v577_v24 }
  0x87   :  { %5685 = vmatprep.subr.bf16.mxu0 %v5684_v26 }
  0x88   :  { %5397 = vmatmul.mubr.f32.vlgmr.msra.gmra.mrb[0].mxu1 %v149_v27  ;;  %5687 = vmatpush3.bf16.msra.mxu0 %v5684_v26  ;;  %v579_v27 = vld [vmem:[#allocation4 + $0x30] sm:$0xff] }
  0x89   :  { %5399 = vmatprep.mubr.f32.mxu1 %v150_v28  ;;  %v580_v28 = vld [vmem:[#allocation4 + $0x38] sm:$0xff] }
  0x8c   :  { %5400 = vmatmul.mubr.f32.gmra.mrb[2].mxu1 %v151_v29  ;;  %v5688_v29 = vpack.c.bf16 %v580_v28, %v579_v27  ;;  %v1033_v28 = vld [vmem:[%s9696_s6 + $0x40] sm:$0xff] }
  0x8d   :  { %5402 = vmatprep.mubr.f32.mxu1 %v152_v30  ;;  %v1026_v30 = vld [vmem:[%s9696_s6 + $0x8] sm:$0xff] }
  0x8e   :  { %5689 = vmatprep.subr.bf16.mxu0 %v5688_v29 }
  0x8f   :  { %5691 = vmatpush3.bf16.msra.mxu0 %v5688_v29  ;;  %v1035_v29 = vld [vmem:[%s9696_s6 + $0x50] sm:$0xff] }
  0x90   :  { %5403 = vmatmul.mubr.f32.gmra.mrb[4].mxu1 %v153_v31  ;;  %v1028_v31 = vld [vmem:[%s9696_s6 + $0x18] sm:$0xff] }
  0x91   :  { %5405 = vmatprep.mubr.f32.mxu1 %v154_v32  ;;  %v7299_v32 = vpack.c.bf16 %v1028_v31, %v1026_v30 }
  0x93   :  { %5725 = vmatprep.subr.bf16.mxu0 %v7299_v32 }
  0x94   :  { %5406 = vmatmul.mubr.f32.gmra.mrb[6].mxu1 %v155_v33 }
  0x95   :  { %5408 = vmatprep.mubr.f32.mxu1 %v156_v34 }
  0x98   :  { %5409 = vmatmul.mubr.f32.gmra.mrb[8].mxu1 %v157_v35 }
  0x99   :  { %5411 = vmatprep.mubr.f32.mxu1 %v158_v36 }
  0x9c   :  { %5412 = vmatmul.mubr.f32.gmra.mrb[10].mxu1 %v159_v37 }
  0x9d   :  { %5414 = vmatprep.mubr.f32.mxu1 %v160_v38 }
  0xa0   :  { %5415 = vmatmul.mubr.f32.gmra.mrb[12].mxu1 %v161_v39 }
  0xa1   :  { %5417 = vmatprep.mubr.f32.mxu1 %v162_v40  ;;  %v7305_v40 = vld [vmem:[%s9883_s23] ss:$0 sm:$0xff] }
  0xa4   :  { %5418 = vmatmul.mubr.f32.gmra.mrb[14].mxu1 %v163_v41 }
  0xa5   :  { %5452 = vmatprep.mubr.f32.mxu1 %v7183_v42 }
 0x15b   :  { %v5398_v43 = vpop.f32.mrb[0].mxu1 }
 0x15c   :  { %v246_v44 = vpop.f32.mrb[1].mxu1 }
 0x15d   :  { %v5644_v45 = vpack.c.bf16 %v5398_v43, %v246_v44  ;;  %341 = vrot.lane.b32.xlu0 %v246_v44, %s6903_s1 }
 0x15f   :  { %v5401_v46 = vpop.f32.mrb[2].mxu1  ;;  %5645 = vmatprep.subr.bf16.mxu1 %v5644_v45 }
 0x160   :  { %v256_v47 = vpop.f32.mrb[3].mxu1  ;;  %5647 = vmatpush3.bf16.msra.mxu1 %v5644_v45  ;;  %v1025_v45 = vld [vmem:[%s9696_s6] sm:$0xff] }
 0x161   :  { %v5648_v48 = vpack.c.bf16 %v5401_v46, %v256_v47  ;;  %343 = vrot.lane.b32.xlu0 %v5398_v43, %s6903_s1  ;;  %345 = vrot.lane.b32.xlu1 %v256_v47, %s6903_s1 }
 0x163   :  { %v5404_v49 = vpop.f32.mrb[4].mxu1  ;;  %5649 = vmatprep.subr.bf16.mxu1 %v5648_v48 }
 0x164   :  { %v266_v50 = vpop.f32.mrb[5].mxu1  ;;  %5651 = vmatpush3.bf16.msra.mxu1 %v5648_v48 }
 0x165   :  { %v5652_v51 = vpack.c.bf16 %v5404_v49, %v266_v50  ;;  %347 = vrot.lane.b32.xlu1 %v5401_v46, %s6903_s1  ;;  %349 = vrot.lane.b32.xlu0 %v266_v50, %s6903_s1  ;;  %v1027_v46 = vld [vmem:[%s9696_s6 + $0x10] sm:$0xff]  ;;  %v1030_v50 = vld [vmem:[%s9696_s6 + $0x28] sm:$0xff] }
 0x167   :  { %v5407_v52 = vpop.f32.mrb[6].mxu1  ;;  %5653 = vmatprep.subr.bf16.mxu1 %v5652_v51 }
 0x168   :  { %v276_v53 = vpop.f32.mrb[7].mxu1  ;;  %5655 = vmatpush3.bf16.msra.mxu1 %v5652_v51  ;;  %v1032_v51 = vld [vmem:[%s9696_s6 + $0x38] sm:$0xff] }
 0x169   :  { %v5656_v54 = vpack.c.bf16 %v5407_v52, %v276_v53  ;;  %351 = vrot.lane.b32.xlu1 %v5404_v49, %s6903_s1  ;;  %353 = vrot.lane.b32.xlu0 %v276_v53, %s6903_s1  ;;  %v7328_v60 = vpack.c.bf16 %v1032_v51, %v1030_v50 }
 0x16b   :  { %v5410_v55 = vpop.f32.mrb[8].mxu1  ;;  %5657 = vmatprep.subr.bf16.mxu1 %v5656_v54 }
 0x16c   :  { %v286_v56 = vpop.f32.mrb[9].mxu1  ;;  %5659 = vmatpush3.bf16.msra.mxu1 %v5656_v54 }
 0x16d   :  { %v5660_v57 = vpack.c.bf16 %v5410_v55, %v286_v56  ;;  %355 = vrot.lane.b32.xlu1 %v5407_v52, %s6903_s1  ;;  %357 = vrot.lane.b32.xlu0 %v286_v56, %s6903_s1 }
 0x16f   :  { %v5413_v58 = vpop.f32.mrb[10].mxu1  ;;  %5661 = vmatprep.subr.bf16.mxu1 %v5660_v57 }
 0x170   :  { %v296_v62 = vpop.f32.mrb[11].mxu1  ;;  %5663 = vmatpush3.bf16.msra.mxu1 %v5660_v57  ;;  %v7323_v57 = vpack.c.bf16 %v1027_v46, %v1025_v45  ;;  %v1039_v45 = vld [vmem:[%s9696_s6 + $0x70] sm:$0xff] }
 0x171   :  { %v5664_v1 = vpack.c.bf16 %v5413_v58, %v296_v62  ;;  %359 = vrot.lane.b32.xlu1 %v5410_v55, %s6903_s1  ;;  %361 = vrot.lane.b32.xlu0 %v296_v62, %s6903_s1  ;;  %v1031_v62 = vld [vmem:[%s9696_s6 + $0x30] sm:$0xff] }
 0x173   :  { %v5416_v3 = vpop.f32.mrb[12].mxu1  ;;  %5665 = vmatprep.subr.bf16.mxu1 %v5664_v1 }
 0x174   :  { %v306_v4 = vpop.f32.mrb[13].mxu1  ;;  %5667 = vmatpush3.bf16.msra.mxu1 %v5664_v1  ;;  %v1034_v1 = vld [vmem:[%s9696_s6 + $0x48] sm:$0xff] }
 0x175   :  { %v5668_v5 = vpack.c.bf16 %v5416_v3, %v306_v4  ;;  %363 = vrot.lane.b32.xlu1 %v5413_v58, %s6903_s1  ;;  %365 = vrot.lane.b32.xlu0 %v306_v4, %s6903_s1  ;;  %v7356_v27 = vpack.c.bf16 %v1036_v2, %v1034_v1 }
 0x177   :  { %v5419_v6 = vpop.f32.mrb[14].mxu1  ;;  %5669 = vmatprep.subr.bf16.mxu1 %v5668_v5 }
 0x178   :  { %v316_v7 = vpop.f32.mrb[15].mxu1  ;;  %5671 = vmatpush3.bf16.msra.mxu1 %v5668_v5 }
 0x179   :  { %v5672_v8 = vpack.c.bf16 %v5419_v6, %v316_v7  ;;  %367 = vrot.lane.b32.xlu1 %v5416_v3, %s6903_s1  ;;  %369 = vrot.lane.b32.xlu0 %v316_v7, %s6903_s1 }
 0x17b   :  { %5673 = vmatprep.subr.bf16.mxu1 %v5672_v8 }
 0x17c   :  { %5675 = vmatpush3.bf16.msra.mxu1 %v5672_v8  ;;  %v7350_v8 = vpack.c.bf16 %v1031_v62, %v1029_v61 }
 0x17d   :  { %371 = vrot.lane.b32.xlu1 %v5419_v6, %s6903_s1 }
 0x17f   :  { %5453 = vmatmul.mubr.f32.vlgmr.msra.gmra.mrb[16].mxu1 %v7204_v9 }
 0x180   :  { %5455 = vmatprep.mubr.f32.mxu1 %v7210_v10 }
 0x183   :  { %5456 = vmatmul.mubr.f32.gmra.mrb[18].mxu1 %v7217_v11 }
 0x184   :  { %5458 = vmatprep.mubr.f32.mxu1 %v7222_v12 }
 0x187   :  { %5459 = vmatmul.mubr.f32.gmra.mrb[20].mxu1 %v7229_v13 }
 0x188   :  { %5461 = vmatprep.mubr.f32.mxu1 %v7234_v14 }
 0x18b   :  { %5462 = vmatmul.mubr.f32.gmra.mrb[22].mxu1 %v7241_v15 }
 0x18c   :  { %5464 = vmatprep.mubr.f32.mxu1 %v7246_v16 }
 0x18f   :  { %5465 = vmatmul.mubr.f32.gmra.mrb[24].mxu1 %v7253_v17 }
 0x190   :  { %5467 = vmatprep.mubr.f32.mxu1 %v7258_v18 }
 0x193   :  { %5468 = vmatmul.mubr.f32.gmra.mrb[26].mxu1 %v7265_v19 }
 0x194   :  { %5470 = vmatprep.mubr.f32.mxu1 %v7270_v20 }
 0x197   :  { %5471 = vmatmul.mubr.f32.gmra.mrb[28].mxu1 %v7277_v21 }
 0x198   :  { %5473 = vmatprep.mubr.f32.mxu1 %v7282_v22 }
 0x19b   :  { %5474 = vmatmul.mubr.f32.gmra.mrb[30].mxu1 %v7289_v23 }
 0x19c   :  { %5548 = vmatprep.mubr.f32.mxu1 %v7183_v42 }
 0x1cf   :  { %v342_v34 = vpop.permute.xlu0 %341 }
 0x1d3   :  { %v346_v33 = vpop.permute.xlu1 %345  ;;  %v344_v36 = vpop.permute.xlu0 %343 }
 0x1d7   :  { %v348_v35 = vpop.permute.xlu1 %347  ;;  %v350_v38 = vpop.permute.xlu0 %349 }
 0x1db   :  { %v352_v37 = vpop.permute.xlu1 %351  ;;  %v354_v52 = vpop.permute.xlu0 %353 }
 0x1df   :  { %v356_v47 = vpop.permute.xlu1 %355  ;;  %v358_v24 = vpop.permute.xlu0 %357 }
 0x1e3   :  { %v360_v5 = vpop.permute.xlu1 %359 }
 0x1e7   :  { %v364_v46 = vpop.permute.xlu1 %363 }
 0x1eb   :  { %v368_v1 = vpop.permute.xlu1 %367 }
 0x252   :  { %v5454_v39 = vpop.f32.mrb[16].mxu1 }
 0x253   :  { %v461_v41 = vadd.f32 %v5454_v39, %v344_v36  ;;  %v455_v42 = vpop.f32.mrb[17].mxu1  ;;  %v7378_v39 = vpack.c.bf16 %v1035_v29, %v1033_v28 }
 0x254   :  { %v456_v43 = vadd.f32 %v455_v42, %v342_v34  ;;  %v1040_v34 = vld [vmem:[%s9696_s6 + $0x78] sm:$0xff] }
 0x255   :  { %v542_v44 = vadd.f32 %v7305_v40, %v461_v41 }
 0x256   :  { %v541_v48 = vadd.f32 %v7305_v40, %v456_v43  ;;  %v5457_v49 = vpop.f32.mrb[18].mxu1 }
 0x257   :  { %v471_v53 = vadd.f32 %v5457_v49, %v348_v35  ;;  %v465_v54 = vpop.f32.mrb[19].mxu1  ;;  %v7325_v58 = vmax.f32 %v542_v44, 0.0  ;;  %v1037_v44 = vld [vmem:[%s9696_s6 + $0x60] sm:$0xff]  ;;  %v362_v49 = vpop.permute.xlu0 %361 }
 0x258   :  { %v7321_v55 = vmax.f32 %v541_v48, 0.0  ;;  %v466_v56 = vadd.f32 %v465_v54, %v346_v33  ;;  %v1038_v33 = vld [vmem:[%s9696_s6 + $0x68] sm:$0xff]  ;;  %v7400_v54 = vpack.c.bf16 %v1039_v45, %v1037_v44 }
 0x259   :  { %9885 = vst [vmem:[#allocation16_spill] sm:$0xff] %v7325_v58  ;;  %v544_v59 = vadd.f32 %v7305_v40, %v471_v53  ;;  %v7384_v43 = vpack.c.bf16 %v1040_v34, %v1038_v33 }
 0x25a   :  { %9884 = vst [vmem:[#allocation15_spill] sm:$0xff] %v7321_v55  ;;  %v543_v63 = vadd.f32 %v7305_v40, %v466_v56  ;;  %v5460_v0 = vpop.f32.mrb[20].mxu1  ;;  %5492 = vmatprep.mubr.msk.f32.mxu0 %vm581_vm0, %v7321_v55 }
 0x25b   :  { %v481_v3 = vadd.f32 %v5460_v0, %v352_v37  ;;  %v475_v4 = vpop.f32.mrb[21].mxu1  ;;  %5493 = vmatmul.mubr.msk.f32.vlgmr.msra.gmra.mrb[0].mxu0 %vm581_vm0, %v7325_v58  ;;  %v7352_v25 = vmax.f32 %v544_v59, 0.0 }
 0x25c   :  { %v7347_v6 = vmax.f32 %v543_v63, 0.0  ;;  %v476_v7 = vadd.f32 %v475_v4, %v350_v38  ;;  %5727 = vmatpush1.bf16.msra.mxu0 %v7323_v57  ;;  %v366_v4 = vpop.permute.xlu0 %365 }
 0x25d   :  { %9887 = vst [vmem:[#allocation18_spill] sm:$0xff] %v7352_v25  ;;  %v546_v26 = vadd.f32 %v7305_v40, %v481_v3  ;;  %5729 = vmatprep.subr.bf16.mxu0 %v7328_v60 }
 0x25e   :  { %9886 = vst [vmem:[#allocation17_spill] sm:$0xff] %v7347_v6  ;;  %v545_v30 = vadd.f32 %v7305_v40, %v476_v7  ;;  %v5463_v31 = vpop.f32.mrb[22].mxu1  ;;  %5495 = vmatprep.mubr.msk.f32.mxu0 %vm581_vm0, %v7347_v6 }
 0x25f   :  { %v491_v35 = vadd.f32 %v5463_v31, %v356_v47  ;;  %v485_v36 = vpop.f32.mrb[23].mxu1  ;;  %5496 = vmatmul.mubr.msk.f32.gmra.mrb[2].mxu0 %vm581_vm0, %v7352_v25  ;;  %v7380_v41 = vmax.f32 %v546_v26, 0.0 }
 0x260   :  { %v7375_v37 = vmax.f32 %v545_v30, 0.0  ;;  %v486_v38 = vadd.f32 %v485_v36, %v354_v52  ;;  %5731 = vmatpush1.bf16.msra.mxu0 %v7350_v8 }
 0x261   :  { %9889 = vst [vmem:[#allocation20_spill] sm:$0xff] %v7380_v41  ;;  %v548_v42 = vadd.f32 %v7305_v40, %v491_v35  ;;  %5733 = vmatprep.subr.bf16.mxu0 %v7356_v27  ;;  %v372_v35 = vpop.permute.xlu1 %371 }
 0x262   :  { %9888 = vst [vmem:[#allocation19_spill] sm:$0xff] %v7375_v37  ;;  %v547_v47 = vadd.f32 %v7305_v40, %v486_v38  ;;  %v5466_v48 = vpop.f32.mrb[24].mxu1  ;;  %5498 = vmatprep.mubr.msk.f32.mxu0 %vm581_vm0, %v7375_v37 }
 0x263   :  { %v501_v50 = vadd.f32 %v5466_v48, %v360_v5  ;;  %v495_v51 = vpop.f32.mrb[25].mxu1  ;;  %5499 = vmatmul.mubr.msk.f32.gmra.mrb[4].mxu0 %vm581_vm0, %v7380_v41  ;;  %v7402_v56 = vmax.f32 %v548_v42, 0.0  ;;  %v370_v42 = vpop.permute.xlu0 %369 }
 0x264   :  { %v7397_v52 = vmax.f32 %v547_v47, 0.0  ;;  %v496_v53 = vadd.f32 %v495_v51, %v358_v24  ;;  %5735 = vmatpush1.bf16.msra.mxu0 %v7378_v39 }
 0x265   :  { %9891 = vst [vmem:[#allocation22_spill] sm:$0xff] %v7402_v56  ;;  %v550_v59 = vadd.f32 %v7305_v40, %v501_v50  ;;  %5737 = vmatprep.subr.bf16.mxu0 %v7384_v43 }
 0x266   :  { %9890 = vst [vmem:[#allocation21_spill] sm:$0xff] %v7397_v52  ;;  %v549_v61 = vadd.f32 %v7305_v40, %v496_v53  ;;  %v5469_v62 = vpop.f32.mrb[26].mxu1  ;;  %5501 = vmatprep.mubr.msk.f32.mxu0 %vm581_vm0, %v7397_v52 }
 0x267   :  { %v511_v63 = vadd.f32 %v5469_v62, %v364_v46  ;;  %v505_v0 = vpop.f32.mrb[27].mxu1  ;;  %5502 = vmatmul.mubr.msk.f32.gmra.mrb[6].mxu0 %vm581_vm0, %v7402_v56  ;;  %v7414_v5 = vmax.f32 %v550_v59, 0.0  ;;  %v9715_v59 = vmov 0.0  }
 0x268   :  { %v7411_v2 = vmax.f32 %v549_v61, 0.0  ;;  %v506_v3 = vadd.f32 %v505_v0, %v362_v49  ;;  %5739 = vmatpush1.bf16.msra.mxu0 %v7400_v54 }
 0x269   :  { %9893 = vst [vmem:[#allocation24_spill] sm:$0xff] %v7414_v5  ;;  %v552_v7 = vadd.f32 %v7305_v40, %v511_v63 }
 0x26a   :  { %9892 = vst [vmem:[#allocation23_spill] sm:$0xff] %v7411_v2  ;;  %v551_v24 = vadd.f32 %v7305_v40, %v506_v3  ;;  %v5472_v26 = vpop.f32.mrb[28].mxu1  ;;  %5504 = vmatprep.mubr.msk.f32.mxu0 %vm581_vm0, %v7411_v2 }
 0x26b   :  { %v521_v28 = vadd.f32 %v5472_v26, %v368_v1  ;;  %v515_v29 = vpop.f32.mrb[29].mxu1  ;;  %5505 = vmatmul.mubr.msk.f32.gmra.mrb[8].mxu0 %vm581_vm0, %v7414_v5  ;;  %v7424_v33 = vmax.f32 %v552_v7, 0.0 }
 0x26c   :  { %v7422_v30 = vmax.f32 %v551_v24, 0.0  ;;  %v516_v31 = vadd.f32 %v515_v29, %v366_v4 }
 0x26d   :  { %9895 = vst [vmem:[#allocation26_spill] sm:$0xff] %v7424_v33  ;;  %v554_v34 = vadd.f32 %v7305_v40, %v521_v28 }
 0x26e   :  { %9894 = vst [vmem:[#allocation25_spill] sm:$0xff] %v7422_v30  ;;  %v553_v36 = vadd.f32 %v7305_v40, %v516_v31  ;;  %v5475_v38 = vpop.f32.mrb[30].mxu1  ;;  %5507 = vmatprep.mubr.msk.f32.mxu0 %vm581_vm0, %v7422_v30 }
 0x26f   :  { %v531_v44 = vadd.f32 %v5475_v38, %v372_v35  ;;  %v525_v45 = vpop.f32.mrb[31].mxu1  ;;  %5508 = vmatmul.mubr.msk.f32.gmra.mrb[10].mxu0 %vm581_vm0, %v7424_v33  ;;  %v7434_v48 = vmax.f32 %v554_v34, 0.0  ;;  %v1042_v34 = vlaneseq }
 0x270   :  { %v7432_v46 = vmax.f32 %v553_v36, 0.0  ;;  %v526_v47 = vadd.f32 %v525_v45, %v370_v42 }
 0x271   :  { %9897 = vst [vmem:[#allocation28_spill] sm:$0xff] %v7434_v48  ;;  %v556_v49 = vadd.f32 %v7305_v40, %v531_v44  ;;  %v7510_v42 = vshrl.u32 %v1042_v34, 7 }
 0x272   :  { %9896 = vst [vmem:[#allocation27_spill] sm:$0xff] %v7432_v46  ;;  %v555_v50 = vadd.f32 %v7305_v40, %v526_v47  ;;  %5510 = vmatprep.mubr.msk.f32.mxu0 %vm581_vm0, %v7432_v46 }
 0x273   :  { %5511 = vmatmul.mubr.msk.f32.gmra.mrb[12].mxu0 %vm581_vm0, %v7434_v48  ;;  %v7444_v53 = vmax.f32 %v556_v49, 0.0  ;;  %v9714_v49 = vsub.s32 0, %v7510_v42 }
 0x274   :  { %v7442_v51 = vmax.f32 %v555_v50, 0.0 }
 0x275   :  { %9899 = vst [vmem:[#allocation30_spill] sm:$0xff] %v7444_v53 }
 0x276   :  { %9898 = vst [vmem:[#allocation29_spill] sm:$0xff] %v7442_v51  ;;  %5513 = vmatprep.mubr.msk.f32.mxu0 %vm581_vm0, %v7442_v51 }
 0x277   :  { %5514 = vmatmul.mubr.msk.f32.gmra.mrb[14].mxu0 %vm581_vm0, %v7444_v53 }
 0x278   :  { %1116 = vmatprep.mubr.f32.mxu0 %v9715_v59 }
 0x27b   :  { %4974 = vmatmul.mubr.msk.f32.vlgmr.msra.gmra.mrb[16].mxu0 %vm581_vm0, %v7321_v55 }
 0x27c   :  { %1122 = vmatprep.mubr.f32.mxu0 %v9715_v59 }
 0x27f   :  { %4975 = vmatmul.mubr.msk.f32.gmra.mrb[18].mxu0 %vm581_vm0, %v7325_v58 }
 0x280   :  { %1128 = vmatprep.mubr.f32.mxu0 %v9715_v59 }
 0x283   :  { %4976 = vmatmul.mubr.msk.f32.gmra.mrb[20].mxu0 %vm581_vm0, %v7347_v6 }
 0x284   :  { %1134 = vmatprep.mubr.f32.mxu0 %v9715_v59 }
 0x287   :  { %4977 = vmatmul.mubr.msk.f32.gmra.mrb[22].mxu0 %vm581_vm0, %v7352_v25 }
 0x288   :  { %1140 = vmatprep.mubr.f32.mxu0 %v9715_v59 }
 0x28b   :  { %4978 = vmatmul.mubr.msk.f32.gmra.mrb[24].mxu0 %vm581_vm0, %v7375_v37 }
 0x28c   :  { %1146 = vmatprep.mubr.f32.mxu0 %v9715_v59 }
 0x28f   :  { %4979 = vmatmul.mubr.msk.f32.gmra.mrb[26].mxu0 %vm581_vm0, %v7380_v41 }
 0x290   :  { %1152 = vmatprep.mubr.f32.mxu0 %v9715_v59 }
 0x293   :  { %4980 = vmatmul.mubr.msk.f32.gmra.mrb[28].mxu0 %vm581_vm0, %v7397_v52 }
 0x294   :  { %1158 = vmatprep.mubr.f32.mxu0 %v9715_v59 }
 0x297   :  { %4981 = vmatmul.mubr.msk.f32.gmra.mrb[30].mxu0 %vm581_vm0, %v7402_v56  ;;  %v9922_v56 = vmov 0.0  }
 0x298   :  { %1164 = vmatprep.mubr.f32.mxu0 %v9715_v59 }
 0x29b   :  { %4982 = vmatmul.mubr.msk.f32.gmra.mrb[32].mxu0 %vm581_vm0, %v7411_v2 }
 0x29c   :  { %1170 = vmatprep.mubr.f32.mxu0 %v9715_v59 }
 0x29f   :  { %4983 = vmatmul.mubr.msk.f32.gmra.mrb[34].mxu0 %vm581_vm0, %v7414_v5 }
 0x2a0   :  { %1176 = vmatprep.mubr.f32.mxu0 %v9715_v59 }
 0x2a3   :  { %4984 = vmatmul.mubr.msk.f32.gmra.mrb[36].mxu0 %vm581_vm0, %v7422_v30 }
 0x2a4   :  { %1182 = vmatprep.mubr.f32.mxu0 %v9715_v59 }
 0x2a7   :  { %4985 = vmatmul.mubr.msk.f32.gmra.mrb[38].mxu0 %vm581_vm0, %v7424_v33 }
 0x2a8   :  { %1188 = vmatprep.mubr.f32.mxu0 %v9715_v59 }
 0x2ab   :  { %4986 = vmatmul.mubr.msk.f32.gmra.mrb[40].mxu0 %vm581_vm0, %v7432_v46 }
 0x2ac   :  { %1194 = vmatprep.mubr.f32.mxu0 %v9715_v59 }
 0x2af   :  { %4987 = vmatmul.mubr.msk.f32.gmra.mrb[42].mxu0 %vm581_vm0, %v7434_v48 }
 0x2b0   :  { %1200 = vmatprep.mubr.f32.mxu0 %v9715_v59 }
 0x2b3   :  { %4988 = vmatmul.mubr.msk.f32.gmra.mrb[44].mxu0 %vm581_vm0, %v7442_v51 }
 0x2b4   :  { %1206 = vmatprep.mubr.f32.mxu0 %v9715_v59 }
 0x2b7   :  { %4989 = vmatmul.mubr.msk.f32.gmra.mrb[46].mxu0 %vm581_vm0, %v7444_v53 }
 0x2b8   :  { %2538 = vmatprep.mubr.f32.mxu0 %v9715_v59 }
 0x32e   :  { %v5494_v40 = vpop.f32.mrb[0].mxu0 }
 0x32f   :  { %793 = vrot.lane.b32.xlu1 %v5494_v40, %s6903_s1  ;;  %v696_v61 = vpop.f32.mrb[1].mxu0 }
 0x330   :  { %v5692_v62 = vpack.c.bf16 %v5494_v40, %v696_v61  ;;  %791 = vrot.lane.b32.xlu0 %v696_v61, %s6903_s1  ;;  %v1023_v40 = vld [vmem:[%s9698_s8] sm:$0x3] }
 0x332   :  { %v5497_v63 = vpop.f32.mrb[2].mxu0  ;;  %5693 = vmatprep.subr.bf16.mxu1 %v5692_v62 }
 0x333   :  { %5695 = vmatpush3.bf16.msra.mxu1 %v5692_v62  ;;  %797 = vrot.lane.b32.xlu1 %v5497_v63, %s6903_s1  ;;  %v706_v0 = vpop.f32.mrb[3].mxu0 }
 0x334   :  { %v5696_v1 = vpack.c.bf16 %v5497_v63, %v706_v0  ;;  %795 = vrot.lane.b32.xlu0 %v706_v0, %s6903_s1  ;;  %v7522_v63 = vrot.slane %v1023_v40, %v9714_v49 }
 0x336   :  { %v5500_v3 = vpop.f32.mrb[4].mxu0  ;;  %5697 = vmatprep.subr.bf16.mxu1 %v5696_v1  ;;  %9900 = vst [vmem:[#allocation31_spill] sm:$0xff] %v7522_v63 }
 0x337   :  { %5699 = vmatpush3.bf16.msra.mxu1 %v5696_v1  ;;  %801 = vrot.lane.b32.xlu1 %v5500_v3, %s6903_s1  ;;  %v716_v4 = vpop.f32.mrb[5].mxu0 }
 0x338   :  { %v5700_v7 = vpack.c.bf16 %v5500_v3, %v716_v4  ;;  %799 = vrot.lane.b32.xlu0 %v716_v4, %s6903_s1 }
 0x33a   :  { %v5503_v24 = vpop.f32.mrb[6].mxu0  ;;  %5701 = vmatprep.subr.bf16.mxu1 %v5700_v7 }
 0x33b   :  { %5703 = vmatpush3.bf16.msra.mxu1 %v5700_v7  ;;  %805 = vrot.lane.b32.xlu1 %v5503_v24, %s6903_s1  ;;  %v726_v26 = vpop.f32.mrb[7].mxu0 }
 0x33c   :  { %v5704_v28 = vpack.c.bf16 %v5503_v24, %v726_v26  ;;  %803 = vrot.lane.b32.xlu0 %v726_v26, %s6903_s1  ;;  %v9713_v24 = vsub.s32 1, %v7510_v42 }
 0x33e   :  { %v5506_v29 = vpop.f32.mrb[8].mxu0  ;;  %5705 = vmatprep.subr.bf16.mxu1 %v5704_v28  ;;  %v7532_v34 = vrot.slane %v1023_v40, %v9713_v24 }
 0x33f   :  { %5707 = vmatpush3.bf16.msra.mxu1 %v5704_v28  ;;  %809 = vrot.lane.b32.xlu1 %v5506_v29, %s6903_s1  ;;  %v736_v31 = vpop.f32.mrb[9].mxu0 }
 0x340   :  { %v5708_v35 = vpack.c.bf16 %v5506_v29, %v736_v31  ;;  %807 = vrot.lane.b32.xlu0 %v736_v31, %s6903_s1  ;;  %9901 = vst [vmem:[#allocation32_spill] sm:$0xff] %v7532_v34 }
 0x342   :  { %v5509_v36 = vpop.f32.mrb[10].mxu0  ;;  %5709 = vmatprep.subr.bf16.mxu1 %v5708_v35 }
 0x343   :  { %5711 = vmatpush3.bf16.msra.mxu1 %v5708_v35  ;;  %813 = vrot.lane.b32.xlu1 %v5509_v36, %s6903_s1  ;;  %v746_v38 = vpop.f32.mrb[11].mxu0 }
 0x344   :  { %v5712_v44 = vpack.c.bf16 %v5509_v36, %v746_v38  ;;  %811 = vrot.lane.b32.xlu0 %v746_v38, %s6903_s1 }
 0x346   :  { %v5512_v45 = vpop.f32.mrb[12].mxu0  ;;  %5713 = vmatprep.subr.bf16.mxu1 %v5712_v44 }
 0x347   :  { %5715 = vmatpush3.bf16.msra.mxu1 %v5712_v44  ;;  %817 = vrot.lane.b32.xlu1 %v5512_v45, %s6903_s1  ;;  %v756_v47 = vpop.f32.mrb[13].mxu0 }
 0x348   :  { %v5716_v50 = vpack.c.bf16 %v5512_v45, %v756_v47  ;;  %815 = vrot.lane.b32.xlu0 %v756_v47, %s6903_s1 }
 0x34a   :  { %v5515_v61 = vpop.f32.mrb[14].mxu0  ;;  %5717 = vmatprep.subr.bf16.mxu1 %v5716_v50 }
 0x34b   :  { %5719 = vmatpush3.bf16.msra.mxu1 %v5716_v50  ;;  %821 = vrot.lane.b32.xlu1 %v5515_v61, %s6903_s1  ;;  %v766_v62 = vpop.f32.mrb[15].mxu0 }
 0x34c   :  { %v5720_v0 = vpack.c.bf16 %v5515_v61, %v766_v62  ;;  %819 = vrot.lane.b32.xlu0 %v766_v62, %s6903_s1 }
 0x34e   :  { %5721 = vmatprep.subr.bf16.mxu1 %v5720_v0  ;;  %v1118_v1 = vpop.f32.mrb[16].mxu0 }
 0x34f   :  { %v1119_v3 = vadd.f32 %v1118_v1, %v7522_v63  ;;  %5723 = vmatpush3.bf16.msra.mxu1 %v5720_v0  ;;  %v1120_v4 = vpop.f32.mrb[17].mxu0 }
 0x350   :  { %v7538_v44 = vadd.f32 %v1120_v4, %v7532_v34 }
 0x351   :  { %v4990_v7 = vmul.f32 -1.442695, %v1119_v3 }
 0x352   :  { %5549 = vmatmul.mubr.f32.vlgmr.msra.gmra.mrb[32].mxu1 %v7204_v9  ;;  %v1124_v26 = vpop.f32.mrb[18].mxu0 }
 0x353   :  { %5914 = vpow2.f32 %v4990_v7  ;;  %v1125_v28 = vadd.f32 %v1124_v26, %v7522_v63  ;;  %v1126_v29 = vpop.f32.mrb[19].mxu0  ;;  %5551 = vmatprep.mubr.f32.mxu1 %v7210_v10 }
 0x355   :  { %v4991_v31 = vmul.f32 -1.442695, %v1125_v28 }
 0x356   :  { %5552 = vmatmul.mubr.f32.gmra.mrb[34].mxu1 %v7217_v11  ;;  %v1130_v35 = vpop.f32.mrb[20].mxu0 }
 0x357   :  { %5916 = vpow2.f32 %v4991_v31  ;;  %v1131_v36 = vadd.f32 %v1130_v35, %v7522_v63  ;;  %v1132_v38 = vpop.f32.mrb[21].mxu0  ;;  %5554 = vmatprep.mubr.f32.mxu1 %v7222_v12  ;;  %v7545_v12 = vadd.f32 %v1126_v29, %v7532_v34 }
 0x358   :  { %v7553_v4 = vadd.f32 %v1132_v38, %v7532_v34 }
 0x359   :  { %v4992_v9 = vmul.f32 -1.442695, %v1131_v36 }
 0x35a   :  { %5555 = vmatmul.mubr.f32.gmra.mrb[36].mxu1 %v7229_v13  ;;  %v1136_v10 = vpop.f32.mrb[22].mxu0 }
 0x35b   :  { %5918 = vpow2.f32 %v4992_v9  ;;  %v1137_v45 = vadd.f32 %v1136_v10, %v7522_v63  ;;  %v1138_v47 = vpop.f32.mrb[23].mxu0  ;;  %5557 = vmatprep.mubr.f32.mxu1 %v7234_v14 }
 0x35c   :  { %5920 = vtanh.f32 %v7538_v44 }
 0x35d   :  { %v5915_v11 = vpop.eup %5914  ;;  %v4993_v50 = vmul.f32 -1.442695, %v1137_v45 }
 0x35e   :  { %v1261_v40 = vadd.f32 1.0, %v5915_v11  ;;  %5558 = vmatmul.mubr.f32.gmra.mrb[38].mxu1 %v7241_v15  ;;  %v1142_v61 = vpop.f32.mrb[24].mxu0  ;;  %v2450_v11 = vld [vmem:[#allocation6 + $0x18] sm:$0xff] }
 0x35f   :  { %5922 = vpow2.f32 %v4993_v50  ;;  %v1143_v13 = vadd.f32 %v1142_v61, %v7522_v63  ;;  %v1144_v62 = vpop.f32.mrb[25].mxu0  ;;  %5560 = vmatprep.mubr.f32.mxu1 %v7246_v16 }
 0x360   :  { %5924 = vrcp.f32 %v1261_v40  ;;  %v7569_v45 = vadd.f32 %v1144_v62, %v7532_v34 }
 0x361   :  { %v5917_v0 = vpop.eup %5916  ;;  %v4994_v14 = vmul.f32 -1.442695, %v1143_v13  ;;  %5926 = vtanh.f32 %v7545_v12  ;;  %v2449_v13 = vld [vmem:[#allocation6 + $0x10] sm:$0xff] }
 0x362   :  { %v1262_v1 = vadd.f32 1.0, %v5917_v0  ;;  %5561 = vmatmul.mubr.f32.gmra.mrb[40].mxu1 %v7253_v17  ;;  %v1148_v3 = vpop.f32.mrb[26].mxu0  ;;  %v7560_v17 = vadd.f32 %v1138_v47, %v7532_v34 }
 0x363   :  { %5928 = vpow2.f32 %v4994_v14  ;;  %v1149_v15 = vadd.f32 %v1148_v3, %v7522_v63  ;;  %v1150_v7 = vpop.f32.mrb[27].mxu0  ;;  %5563 = vmatprep.mubr.f32.mxu1 %v7258_v18 }
 0x364   :  { %5930 = vrcp.f32 %v1262_v1 }
 0x365   :  { %v5919_v16 = vpop.eup %5918  ;;  %v4995_v28 = vmul.f32 -1.442695, %v1149_v15  ;;  %5932 = vtanh.f32 %v7553_v4 }
 0x366   :  { %v1263_v26 = vadd.f32 1.0, %v5919_v16  ;;  %5564 = vmatmul.mubr.f32.gmra.mrb[42].mxu1 %v7265_v19  ;;  %v1154_v29 = vpop.f32.mrb[28].mxu0  ;;  %v5921_v35 = vpop.eup %5920 }
 0x367   :  { %v1156_v31 = vpop.f32.mrb[29].mxu0  ;;  %5566 = vmatprep.mubr.f32.mxu1 %v7270_v20  ;;  %v1155_v9 = vadd.f32 %v1154_v29, %v7522_v63  ;;  %v2448_v20 = vld [vmem:[#allocation6 + $0x8] sm:$0xff] }
 0x368   :  { %5934 = vrcp.f32 %v1263_v26  ;;  %v7574_v40 = vpack.c.bf16 %v2450_v11, %v2448_v20 }
 0x369   :  { %v5923_v36 = vpop.eup %5922  ;;  %5936 = vpow2.f32 %v4995_v28  ;;  %v4996_v1 = vmul.f32 -1.442695, %v1155_v9  ;;  %v7591_v28 = vadd.f32 %v1150_v7, %v7532_v34 }
 0x36a   :  { %v5925_v38 = vpop.eup %5924  ;;  %v1264_v18 = vadd.f32 1.0, %v5923_v36  ;;  %5567 = vmatmul.mubr.f32.gmra.mrb[44].mxu1 %v7277_v21  ;;  %v1160_v19 = vpop.f32.mrb[30].mxu0  ;;  %5938 = vtanh.f32 %v7560_v17  ;;  %v2447_v21 = vld [vmem:[#allocation6] sm:$0xff]  ;;  %5773 = vmatprep.subr.bf16.mxu0 %v7574_v40 }
 0x36b   :  { %v7565_v10 = vmul.f32 %v5925_v38, %v5921_v35  ;;  %v7571_v47 = vpop.f32.mrb[31].mxu0  ;;  %5569 = vmatprep.mubr.f32.mxu1 %v7282_v22  ;;  %v5927_v50 = vpop.eup %5926  ;;  %v7579_v22 = vpack.c.bf16 %v2449_v13, %v2447_v21  ;;  %v1161_v16 = vadd.f32 %v1160_v19, %v7522_v63  ;;  %v7605_v13 = vadd.f32 %v1156_v31, %v7532_v34  ;;  %v2451_v31 = vld [vmem:[#allocation6 + $0x20] sm:$0xff] }
 0x36c   :  { %5940 = vrcp.f32 %v1264_v18  ;;  %v7624_v49 = vadd.f32 %v7571_v47, %v7532_v34 }
 0x36d   :  { %v5929_v61 = vpop.eup %5928  ;;  %5942 = vtanh.f32 %v7565_v10  ;;  %5775 = vmatpush1.bf16.msra.mxu0 %v7579_v22  ;;  %v4997_v18 = vmul.f32 -1.442695, %v1161_v16 }
 0x36e   :  { %v5931_v0 = vpop.eup %5930  ;;  %v1265_v14 = vadd.f32 1.0, %v5929_v61  ;;  %5570 = vmatmul.mubr.f32.gmra.mrb[46].mxu1 %v7289_v23  ;;  %v1166_v62 = vpop.f32.mrb[32].mxu0  ;;  %5944 = vtanh.f32 %v7569_v45 }
 0x36f   :  { %v7581_v3 = vmul.f32 %v5931_v0, %v5927_v50  ;;  %v7584_v15 = vpop.f32.mrb[33].mxu0  ;;  %1693 = vmatprep.mubr.f32.mxu1 %v9715_v59  ;;  %v5933_v26 = vpop.eup %5932  ;;  %v1167_v11 = vadd.f32 %v1166_v62, %v7522_v63 }
 0x370   :  { %5946 = vrcp.f32 %v1265_v14 }
 0x371   :  { %5948 = vtanh.f32 %v7581_v3 }
 0x372   :  { %v5935_v23 = vpop.eup %5934  ;;  %5950 = vpow2.f32 %v4996_v1  ;;  %v1172_v29 = vpop.f32.mrb[34].mxu0  ;;  %v4998_v1 = vmul.f32 -1.442695, %v1167_v11 }
 0x373   :  { %v7593_v35 = vmul.f32 %v5935_v23, %v5933_v26  ;;  %v7595_v36 = vpop.f32.mrb[35].mxu0  ;;  %v5937_v38 = vpop.eup %5936  ;;  %v1173_v62 = vadd.f32 %v1172_v29, %v7522_v63 }
 0x374   :  { %v5939_v9 = vpop.eup %5938  ;;  %v1266_v19 = vadd.f32 1.0, %v5937_v38 }
 0x375   :  { %9902 = vst [vmem:[#allocation33_spill] sm:$0xff] %v7593_v35  ;;  %5952 = vtanh.f32 %v7593_v35 }
 0x376   :  { %v5941_v20 = vpop.eup %5940  ;;  %5954 = vtanh.f32 %v7591_v28  ;;  %v1178_v50 = vpop.f32.mrb[36].mxu0 }
 0x377   :  { %v5943_v7 = vpop.eup %5942  ;;  %v7600_v61 = vmul.f32 %v5941_v20, %v5939_v9  ;;  %5956 = vrcp.f32 %v1266_v19  ;;  %v7602_v21 = vpop.f32.mrb[37].mxu0  ;;  %v2452_v9 = vld [vmem:[#allocation6 + $0x28] sm:$0xff]  ;;  %v2454_v19 = vld [vmem:[#allocation6 + $0x38] sm:$0xff] }
 0x378   :  { %5958 = vpow2.f32 %v4997_v18  ;;  %1469 = vrot.lane.b32.xlu0 %v5943_v7, %s6903_s1  ;;  %v5945_v0 = vpop.eup %5944  ;;  %v7616_v18 = vpack.c.bf16 %v2454_v19, %v2452_v9  ;;  %v2453_v7 = vld [vmem:[#allocation6 + $0x30] sm:$0xff]  ;;  %v1179_v19 = vadd.f32 %v1178_v50, %v7522_v63 }
 0x379   :  { %9903 = vst [vmem:[#allocation34_spill] sm:$0xff] %v7600_v61  ;;  %5960 = vtanh.f32 %v7600_v61  ;;  %v7619_v11 = vpack.c.bf16 %v2453_v7, %v2451_v31 }
 0x37a   :  { %v5947_v14 = vpop.eup %5946  ;;  %v1184_v16 = vpop.f32.mrb[38].mxu0  ;;  %5962 = vtanh.f32 %v7605_v13  ;;  %5777 = vmatprep.subr.bf16.mxu0 %v7616_v18  ;;  %v5000_v59 = vmul.f32 -1.442695, %v1179_v19 }
 0x37b   :  { %v5949_v26 = vpop.eup %5948  ;;  %v7610_v23 = vmul.f32 %v5947_v14, %v5945_v0  ;;  %v7612_v38 = vpop.f32.mrb[39].mxu0  ;;  %v4999_v0 = vmul.f32 -1.442695, %v1173_v62  ;;  %5779 = vmatpush1.bf16.msra.mxu0 %v7619_v11 }
 0x37c   :  { %v5951_v20 = vpop.eup %5950  ;;  %1471 = vrot.lane.b32.xlu0 %v5949_v26, %s6903_s1 }
 0x37d   :  { %9904 = vst [vmem:[#allocation35_spill] sm:$0xff] %v7610_v23  ;;  %5964 = vtanh.f32 %v7610_v23  ;;  %v1267_v29 = vadd.f32 1.0, %v5951_v20  ;;  %v1185_v23 = vadd.f32 %v1184_v16, %v7522_v63 }
 0x37e   :  { %5966 = vpow2.f32 %v4998_v1  ;;  %v1190_v14 = vpop.f32.mrb[40].mxu0 }
 0x37f   :  { %v5953_v24 = vpop.eup %5952  ;;  %5968 = vrcp.f32 %v1267_v29  ;;  %v7626_v26 = vpop.f32.mrb[41].mxu0 }
 0x380   :  { %v5955_v9 = vpop.eup %5954  ;;  %1473 = vrot.lane.b32.xlu0 %v5953_v24, %s6903_s1  ;;  %5970 = vpow2.f32 %v4999_v0  ;;  %v7640_v24 = vadd.f32 %v7584_v15, %v7532_v34  ;;  %v7651_v15 = vadd.f32 %v7595_v36, %v7532_v34 }
 0x381   :  { %v5957_v1 = vpop.eup %5956  ;;  %5972 = vtanh.f32 %v7624_v49 }
 0x382   :  { %v5959_v62 = vpop.eup %5958  ;;  %v7631_v31 = vmul.f32 %v5957_v1, %v5955_v9  ;;  %v1196_v20 = vpop.f32.mrb[42].mxu0 }
 0x383   :  { %v5961_v7 = vpop.eup %5960  ;;  %v1268_v29 = vadd.f32 1.0, %v5959_v62  ;;  %v7634_v47 = vpop.f32.mrb[43].mxu0 }
 0x384   :  { %9905 = vst [vmem:[#allocation36_spill] sm:$0xff] %v7631_v31  ;;  %5974 = vtanh.f32 %v7631_v31  ;;  %1475 = vrot.lane.b32.xlu0 %v5961_v7, %s6903_s1  ;;  %v5963_v50 = vpop.eup %5962 }
 0x385   :  { %5976 = vrcp.f32 %v1268_v29 }
 0x386   :  { %v1202_v9 = vpop.f32.mrb[44].mxu0  ;;  %5978 = vpow2.f32 %v5000_v59  ;;  %v5001_v59 = vmul.f32 -1.442695, %v1185_v23 }
 0x387   :  { %v5965_v0 = vpop.eup %5964  ;;  %v7642_v1 = vpop.f32.mrb[45].mxu0  ;;  %5980 = vtanh.f32 %v7640_v24 }
 0x388   :  { %v5967_v62 = vpop.eup %5966  ;;  %1477 = vrot.lane.b32.xlu0 %v5965_v0, %s6903_s1 }
 0x389   :  { %v5969_v31 = vpop.eup %5968  ;;  %v1269_v19 = vadd.f32 1.0, %v5967_v62  ;;  %v7663_v62 = vadd.f32 %v7602_v21, %v7532_v34  ;;  %v7672_v21 = vadd.f32 %v7612_v38, %v7532_v34 }
 0x38a   :  { %v7646_v61 = vmul.f32 %v5969_v31, %v5963_v50  ;;  %v1208_v7 = vpop.f32.mrb[46].mxu0  ;;  %v5971_v35 = vpop.eup %5970  ;;  %v1191_v31 = vadd.f32 %v1190_v14, %v7522_v63 }
 0x38b   :  { %5982 = vrcp.f32 %v1269_v19  ;;  %v7653_v29 = vpop.f32.mrb[47].mxu0  ;;  %v5973_v16 = vpop.eup %5972  ;;  %v1270_v0 = vadd.f32 1.0, %v5971_v35 }
 0x38c   :  { %9906 = vst [vmem:[#allocation37_spill] sm:$0xff] %v7646_v61  ;;  %5984 = vtanh.f32 %v7646_v61  ;;  %v5002_v35 = vmul.f32 -1.442695, %v1191_v31  ;;  %v1197_v61 = vadd.f32 %v1196_v20, %v7522_v63 }
 0x38d   :  { %5986 = vtanh.f32 %v7651_v15 }
 0x38e   :  { %v5975_v53 = vpop.eup %5974  ;;  %5988 = vrcp.f32 %v1270_v0  ;;  %v2458_v0 = vld [vmem:[#allocation6 + $0x58] sm:$0xff]  ;;  %v5003_v31 = vmul.f32 -1.442695, %v1197_v61 }
 0x38f   :  { %v5977_v50 = vpop.eup %5976  ;;  %1479 = vrot.lane.b32.xlu0 %v5975_v53, %s6903_s1  ;;  %5990 = vpow2.f32 %v5001_v59  ;;  %v2456_v59 = vld [vmem:[#allocation6 + $0x48] sm:$0xff] }
 0x390   :  { %v7659_v36 = vmul.f32 %v5977_v50, %v5973_v16  ;;  %v5979_v19 = vpop.eup %5978  ;;  %v2455_v50 = vld [vmem:[#allocation6 + $0x40] sm:$0xff]  ;;  %v7675_v20 = vpack.c.bf16 %v2458_v0, %v2456_v59  ;;  %v7689_v59 = vadd.f32 %v7626_v26, %v7532_v34  ;;  %v7699_v26 = vadd.f32 %v7634_v47, %v7532_v34 }
 0x391   :  { %v1271_v23 = vadd.f32 1.0, %v5979_v19  ;;  %v5981_v51 = vpop.eup %5980  ;;  %v2457_v19 = vld [vmem:[#allocation6 + $0x50] sm:$0xff]  ;;  %v7708_v47 = vadd.f32 %v7642_v1, %v7532_v34  ;;  %v7717_v1 = vadd.f32 %v7653_v29, %v7532_v34  ;;  %v1545_v34 = vld [vmem:[%s9697_s7 + $0x60] sm:$0xff] }
 0x392   :  { %9907 = vst [vmem:[#allocation38_spill] sm:$0xff] %v7659_v36  ;;  %5992 = vtanh.f32 %v7659_v36  ;;  %9909 = vst [vmem:[#allocation40_spill] sm:$0xff] %v7675_v20  ;;  %5781 = vmatprep.subr.bf16.mxu0 %v7675_v20 }
 0x393   :  { %5994 = vtanh.f32 %v7663_v62 }
 0x394   :  { %5996 = vrcp.f32 %v1271_v23  ;;  %v7678_v23 = vpack.c.bf16 %v2457_v19, %v2455_v50  ;;  %v1209_v50 = vadd.f32 %v1208_v7, %v7522_v63 }
 0x395   :  { %v5983_v14 = vpop.eup %5982  ;;  %5998 = vpow2.f32 %v5002_v35 }
 0x396   :  { %v5985_v53 = vpop.eup %5984  ;;  %v7668_v16 = vmul.f32 %v5983_v14, %v5981_v51  ;;  %9910 = vst [vmem:[#allocation41_spill] sm:$0xff] %v7678_v23  ;;  %v1203_v14 = vadd.f32 %v1202_v9, %v7522_v63  ;;  %5783 = vmatpush1.bf16.msra.mxu0 %v7678_v23 }
 0x397   :  { %1481 = vrot.lane.b32.xlu0 %v5985_v53, %s6903_s1  ;;  %v5987_v36 = vpop.eup %5986 }
 0x398   :  { %9908 = vst [vmem:[#allocation39_spill] sm:$0xff] %v7668_v16  ;;  %6000 = vtanh.f32 %v7668_v16  ;;  %v5989_v51 = vpop.eup %5988  ;;  %v5004_v9 = vmul.f32 -1.442695, %v1203_v14  ;;  %v5005_v14 = vmul.f32 -1.442695, %v1209_v50 }
 0x399   :  { %v5991_v38 = vpop.eup %5990  ;;  %v7682_v35 = vmul.f32 %v5989_v51, %v5987_v36  ;;  %6002 = vtanh.f32 %v7672_v21 }
 0x39a   :  { %v1272_v61 = vadd.f32 1.0, %v5991_v38  ;;  %6004 = vpow2.f32 %v5003_v31 }
 0x39b   :  { %9911 = vst [vmem:[#allocation42_spill] sm:$0xff] %v7682_v35  ;;  %6006 = vtanh.f32 %v7682_v35 }
 0x39c   :  { %v5993_v53 = vpop.eup %5992  ;;  %6008 = vrcp.f32 %v1272_v61 }
 0x39d   :  { %1483 = vrot.lane.b32.xlu0 %v5993_v53, %s6903_s1  ;;  %v5995_v0 = vpop.eup %5994  ;;  %6010 = vtanh.f32 %v7689_v59 }
 0x39e   :  { %v5997_v36 = vpop.eup %5996  ;;  %6012 = vpow2.f32 %v5004_v9 }
 0x39f   :  { %v5999_v19 = vpop.eup %5998  ;;  %v7693_v51 = vmul.f32 %v5997_v36, %v5995_v0 }
 0x3a0   :  { %v1273_v31 = vadd.f32 1.0, %v5999_v19 }
 0x3a1   :  { %9912 = vst [vmem:[#allocation43_spill] sm:$0xff] %v7693_v51  ;;  %6014 = vtanh.f32 %v7693_v51  ;;  %v794_v33 = vpop.permute.xlu1 %793 }
 0x3a2   :  { %v6001_v38 = vpop.eup %6000  ;;  %6016 = vrcp.f32 %v1273_v31 }
 0x3a3   :  { %1485 = vrot.lane.b32.xlu0 %v6001_v38, %s6903_s1  ;;  %v6003_v61 = vpop.eup %6002  ;;  %6018 = vtanh.f32 %v7699_v26 }
 0x3a4   :  { %v6005_v7 = vpop.eup %6004  ;;  %6020 = vpow2.f32 %v5005_v14 }
 0x3a5   :  { %v6007_v53 = vpop.eup %6006  ;;  %v1274_v0 = vadd.f32 1.0, %v6005_v7  ;;  %v798_v5 = vpop.permute.xlu1 %797 }
 0x3a6   :  { %v6009_v36 = vpop.eup %6008 }
 0x3a7   :  { %1487 = vrot.lane.b32.xlu0 %v6007_v53, %s6903_s1  ;;  %v7704_v9 = vmul.f32 %v6009_v36, %v6003_v61  ;;  %6022 = vrcp.f32 %v1274_v0  ;;  %v6011_v50 = vpop.eup %6010  ;;  %v2460_v61 = vld [vmem:[#allocation6 + $0x68] sm:$0xff]  ;;  %v2462_v53 = vld [vmem:[#allocation6 + $0x78] sm:$0xff]  ;;  %v2459_v0 = vld [vmem:[#allocation6 + $0x60] sm:$0xff] }
 0x3a8   :  { %v6013_v19 = vpop.eup %6012  ;;  %v7719_v36 = vpack.c.bf16 %v2462_v53, %v2460_v61 }
 0x3a9   :  { %9913 = vst [vmem:[#allocation44_spill] sm:$0xff] %v7704_v9  ;;  %6024 = vtanh.f32 %v7704_v9  ;;  %v1275_v38 = vadd.f32 1.0, %v6013_v19  ;;  %v2461_v9 = vld [vmem:[#allocation6 + $0x70] sm:$0xff] }
 0x3aa   :  { %6026 = vtanh.f32 %v7708_v47  ;;  %9915 = vst [vmem:[#allocation46_spill] sm:$0xff] %v7719_v36  ;;  %v7722_v19 = vpack.c.bf16 %v2461_v9, %v2459_v0  ;;  %5785 = vmatprep.subr.bf16.mxu0 %v7719_v36 }
 0x3ab   :  { %v6015_v31 = vpop.eup %6014  ;;  %6028 = vrcp.f32 %v1275_v38 }
 0x3ac   :  { %v6017_v7 = vpop.eup %6016  ;;  %1489 = vrot.lane.b32.xlu0 %v6015_v31, %s6903_s1  ;;  %9916 = vst [vmem:[#allocation47_spill] sm:$0xff] %v7722_v19  ;;  %5787 = vmatpush1.bf16.msra.mxu0 %v7722_v19 }
 0x3ad   :  { %v7713_v14 = vmul.f32 %v6017_v7, %v6011_v50  ;;  %v6019_v51 = vpop.eup %6018 }
 0x3ae   :  { %v6021_v35 = vpop.eup %6020 }
 0x3af   :  { %9914 = vst [vmem:[#allocation45_spill] sm:$0xff] %v7713_v14  ;;  %6030 = vtanh.f32 %v7713_v14  ;;  %v1276_v31 = vadd.f32 1.0, %v6021_v35  ;;  %v7735_v35 = vpop.permute.xlu0 %791 }
 0x3b0   :  { %6032 = vtanh.f32 %v7717_v1 }
 0x3b1   :  { %v6023_v50 = vpop.eup %6022  ;;  %6034 = vrcp.f32 %v1276_v31 }
 0x3b2   :  { %v7726_v38 = vmul.f32 %v6023_v50, %v6019_v51 }
 0x3b3   :  { %v6025_v29 = vpop.eup %6024  ;;  %v7741_v31 = vpop.permute.xlu0 %795 }
 0x3b4   :  { %9917 = vst [vmem:[#allocation48_spill] sm:$0xff] %v7726_v38  ;;  %6036 = vtanh.f32 %v7726_v38  ;;  %1491 = vrot.lane.b32.xlu0 %v6025_v29, %s6903_s1  ;;  %v6027_v7 = vpop.eup %6026  ;;  %v1537_v38 = vld [vmem:[%s9697_s7 + $0x20] sm:$0xff] }
 0x3b5   :  { %v6029_v9 = vpop.eup %6028 }
 0x3b6   :  { %v7731_v61 = vmul.f32 %v6029_v9, %v6027_v7 }
 0x3b7   :  { %v7744_v7 = vpop.permute.xlu0 %799 }
 0x3b8   :  { %9918 = vst [vmem:[#allocation49_spill] sm:$0xff] %v7731_v61  ;;  %6038 = vtanh.f32 %v7731_v61  ;;  %v1538_v61 = vld [vmem:[%s9697_s7 + $0x28] sm:$0xff] }
 0x3b9   :  { %v6031_v53 = vpop.eup %6030 }
 0x3ba   :  { %1493 = vrot.lane.b32.xlu0 %v6031_v53, %s6903_s1  ;;  %v6033_v51 = vpop.eup %6032  ;;  %v5006_v53 = vmul.f32 -1.442695, %v7538_v44  ;;  %v1535_v44 = vld [vmem:[%s9697_s7 + $0x10] sm:$0xff] }
 0x3bb   :  { %v6035_v0 = vpop.eup %6034 }
 0x3bc   :  { %v7737_v14 = vmul.f32 %v6035_v0, %v6033_v51  ;;  %v1534_v51 = vld [vmem:[%s9697_s7 + $0x8] sm:$0xff]  ;;  %v1536_v0 = vld [vmem:[%s9697_s7 + $0x18] sm:$0xff] }
 0x3be   :  { %v6037_v50 = vpop.eup %6036  ;;  %9919 = vst [vmem:[#allocation50_spill] sm:$0xff] %v7737_v14  ;;  %6040 = vtanh.f32 %v7737_v14  ;;  %v5740_v14 = vpack.c.bf16 %v1536_v0, %v1534_v51  ;;  %v1540_v51 = vld [vmem:[%s9697_s7 + $0x38] sm:$0xff] }
 0x3bf   :  { %1495 = vrot.lane.b32.xlu0 %v6037_v50, %s6903_s1  ;;  %v7754_v50 = vpop.permute.xlu0 %803  ;;  %6042 = vpow2.f32 %v5006_v53  ;;  %v5744_v0 = vpack.c.bf16 %v1540_v51, %v1538_v61  ;;  %v1539_v53 = vld [vmem:[%s9697_s7 + $0x30] sm:$0xff]  ;;  %v1544_v61 = vld [vmem:[%s9697_s7 + $0x58] sm:$0xff]  ;;  %v1541_v51 = vld [vmem:[%s9697_s7 + $0x40] sm:$0xff] }
 0x3c0   :  { %5741 = vmatprep.subr.bf16.mxu1 %v5740_v14 }
 0x3c2   :  { %v6039_v29 = vpop.eup %6038 }
 0x3c3   :  { %1497 = vrot.lane.b32.xlu0 %v6039_v29, %s6903_s1  ;;  %v1533_v29 = vld [vmem:[%s9697_s7] sm:$0xff]  ;;  %v7774_v14 = vpop.permute.xlu0 %807 }
 0x3c8   :  { %v6041_v9 = vpop.eup %6040 }
 0x3c9   :  { %1499 = vrot.lane.b32.xlu0 %v6041_v9, %s6903_s1  ;;  %v5742_v9 = vpack.c.bf16 %v1535_v44, %v1533_v29  ;;  %v5746_v29 = vpack.c.bf16 %v1539_v53, %v1537_v38  ;;  %v1542_v44 = vld [vmem:[%s9697_s7 + $0x48] sm:$0xff]  ;;  %v1543_v38 = vld [vmem:[%s9697_s7 + $0x50] sm:$0xff] }
 0x3ca   :  { %v5750_v53 = vpack.c.bf16 %v1543_v38, %v1541_v51 }
 0x3cb   :  { %5743 = vmatpush1.bf16.msra.mxu1 %v5742_v9  ;;  %v5748_v9 = vpack.c.bf16 %v1544_v61, %v1542_v44  ;;  %v1548_v44 = vld [vmem:[%s9697_s7 + $0x78] sm:$0xff]  ;;  %v7794_v61 = vpop.permute.xlu0 %811 }
 0x3cc   :  { %5745 = vmatprep.subr.bf16.mxu1 %v5744_v0  ;;  %v6043_v0 = vpop.eup %6042 }
 0x3cd   :  { %v1373_v38 = vadd.f32 1.0, %v6043_v0 }
 0x3cf   :  { %5747 = vmatpush1.bf16.msra.mxu1 %v5746_v29  ;;  %v1546_v29 = vld [vmem:[%s9697_s7 + $0x68] sm:$0xff]  ;;  %6044 = vrcp.f32 %v1373_v38 }
 0x3d0   :  { %5749 = vmatprep.subr.bf16.mxu1 %v5748_v9  ;;  %v5752_v16 = vpack.c.bf16 %v1548_v44, %v1546_v29  ;;  %v1547_v9 = vld [vmem:[%s9697_s7 + $0x70] sm:$0xff] }
 0x3d1   :  { %v5754_v51 = vpack.c.bf16 %v1547_v9, %v1545_v34  ;;  %v7814_v34 = vld [vmem:[%s9695_s5] ss:$0 sm:$0xff] }
 0x3d3   :  { %5751 = vmatpush1.bf16.msra.mxu1 %v5750_v53  ;;  %v7803_v53 = vpop.permute.xlu0 %815 }
 0x3d4   :  { %5753 = vmatprep.subr.bf16.mxu1 %v5752_v16 }
 0x3d7   :  { %5755 = vmatpush1.bf16.msra.mxu1 %v5754_v51  ;;  %v7805_v63 = vpop.permute.xlu0 %819 }
 0x3d8   :  { %5757 = vmatprep.subr.bf16.mxu1 %v7299_v32 }
 0x3d9   :  { %v6045_v29 = vpop.eup %6044 }
 0x3ea   :  { %v1470_v44 = vpop.permute.xlu0 %1469 }
 0x3eb   :  { %v7807_v48 = vmul.f32 %v6045_v29, %v1470_v44 }
 0x3ed   :  { %9920 = vst [vmem:[#allocation51_spill] sm:$0xff] %v7807_v48  ;;  %1565 = vrot.lane.b32.xlu1 %v7807_v48, %s6903_s1 }
 0x425   :  { %v5550_v46 = vpop.f32.mrb[32].mxu1 }
 0x426   :  { %v905_v32 = vpop.f32.mrb[33].mxu1  ;;  %v911_v16 = vadd.f32 %v5550_v46, %v794_v33 }
 0x427   :  { %v906_v0 = vadd.f32 %v905_v32, %v7735_v35 }
 0x428   :  { %v992_v29 = vadd.f32 %v7814_v34, %v911_v16 }
 0x429   :  { %v991_v9 = vadd.f32 %v7814_v34, %v906_v0  ;;  %v5553_v51 = vpop.f32.mrb[34].mxu1 }
 0x42a   :  { %v915_v38 = vpop.f32.mrb[35].mxu1  ;;  %v7825_v33 = vmax.f32 %v992_v29, 0.0  ;;  %v921_v46 = vadd.f32 %v5553_v51, %v798_v5  ;;  %v802_v5 = vpop.permute.xlu1 %801 }
 0x42b   :  { %v7819_v44 = vmax.f32 %v991_v9, 0.0  ;;  %v916_v48 = vadd.f32 %v915_v38, %v7741_v31 }
 0x42c   :  { %9923 = vst [vmem:[#allocation53_spill] sm:$0xff] %v7825_v33  ;;  %v994_v31 = vadd.f32 %v7814_v34, %v921_v46 }
 0x42d   :  { %9921 = vst [vmem:[#allocation52_spill] sm:$0xff] %v7819_v44  ;;  %v5556_v30 = vpop.f32.mrb[36].mxu1  ;;  %5086 = vmatmul.mubr.msk.f32.vlgmr.msra.gmra.mrb[48].mxu0 %vm581_vm0, %v7819_v44  ;;  %v993_v35 = vadd.f32 %v7814_v34, %v916_v48 }
 0x42e   :  { %v925_v2 = vpop.f32.mrb[37].mxu1  ;;  %2544 = vmatprep.mubr.f32.mxu0 %v9922_v56  ;;  %v7838_v48 = vmax.f32 %v994_v31, 0.0  ;;  %v931_v29 = vadd.f32 %v5556_v30, %v802_v5  ;;  %v806_v30 = vpop.permute.xlu1 %805 }
 0x42f   :  { %v7832_v0 = vmax.f32 %v993_v35, 0.0  ;;  %v926_v9 = vadd.f32 %v925_v2, %v7744_v7 }
 0x430   :  { %9925 = vst [vmem:[#allocation55_spill] sm:$0xff] %v7838_v48  ;;  %v996_v2 = vadd.f32 %v7814_v34, %v931_v29 }
 0x431   :  { %v5559_v32 = vpop.f32.mrb[38].mxu1  ;;  %5087 = vmatmul.mubr.msk.f32.gmra.mrb[50].mxu0 %vm581_vm0, %v7825_v33  ;;  %9924 = vst [vmem:[#allocation54_spill] sm:$0xff] %v7832_v0  ;;  %v995_v52 = vadd.f32 %v7814_v34, %v926_v9 }
 0x432   :  { %v935_v16 = vpop.f32.mrb[39].mxu1  ;;  %2550 = vmatprep.mubr.f32.mxu0 %v9922_v56  ;;  %v7851_v9 = vmax.f32 %v996_v2, 0.0  ;;  %v941_v5 = vadd.f32 %v5559_v32, %v806_v30  ;;  %v810_v2 = vpop.permute.xlu1 %809 }
 0x433   :  { %v7845_v7 = vmax.f32 %v995_v52, 0.0  ;;  %v936_v35 = vadd.f32 %v935_v16, %v7754_v50 }
 0x434   :  { %9927 = vst [vmem:[#allocation57_spill] sm:$0xff] %v7851_v9  ;;  %v998_v50 = vadd.f32 %v7814_v34, %v941_v5 }
 0x435   :  { %v5562_v38 = vpop.f32.mrb[40].mxu1  ;;  %5088 = vmatmul.mubr.msk.f32.gmra.mrb[52].mxu0 %vm581_vm0, %v7832_v0  ;;  %9926 = vst [vmem:[#allocation56_spill] sm:$0xff] %v7845_v7  ;;  %v997_v25 = vadd.f32 %v7814_v34, %v936_v35 }
 0x436   :  { %v945_v51 = vpop.f32.mrb[41].mxu1  ;;  %2556 = vmatprep.mubr.f32.mxu0 %v9922_v56  ;;  %v7864_v32 = vmax.f32 %v998_v50, 0.0  ;;  %v951_v35 = vadd.f32 %v5562_v38, %v810_v2 }
 0x437   :  { %v7858_v16 = vmax.f32 %v997_v25, 0.0  ;;  %v946_v29 = vadd.f32 %v945_v51, %v7774_v14  ;;  %v814_v51 = vpop.permute.xlu1 %813 }
 0x438   :  { %9929 = vst [vmem:[#allocation59_spill] sm:$0xff] %v7864_v32  ;;  %v1000_v25 = vadd.f32 %v7814_v34, %v951_v35 }
 0x439   :  { %v5565_v41 = vpop.f32.mrb[42].mxu1  ;;  %5089 = vmatmul.mubr.msk.f32.gmra.mrb[54].mxu0 %vm581_vm0, %v7838_v48  ;;  %9928 = vst [vmem:[#allocation58_spill] sm:$0xff] %v7858_v16  ;;  %v999_v30 = vadd.f32 %v7814_v34, %v946_v29 }
 0x43a   :  { %v955_v46 = vpop.f32.mrb[43].mxu1  ;;  %2562 = vmatprep.mubr.f32.mxu0 %v9922_v56  ;;  %v7877_v38 = vmax.f32 %v1000_v25, 0.0  ;;  %v961_v50 = vadd.f32 %v5565_v41, %v814_v51 }
 0x43b   :  { %v7871_v5 = vmax.f32 %v999_v30, 0.0  ;;  %v956_v14 = vadd.f32 %v955_v46, %v7794_v61  ;;  %v818_v46 = vpop.permute.xlu1 %817 }
 0x43c   :  { %9931 = vst [vmem:[#allocation61_spill] sm:$0xff] %v7877_v38  ;;  %v1002_v2 = vadd.f32 %v7814_v34, %v961_v50 }
 0x43d   :  { %v5568_v37 = vpop.f32.mrb[44].mxu1  ;;  %5090 = vmatmul.mubr.msk.f32.gmra.mrb[56].mxu0 %vm581_vm0, %v7845_v7  ;;  %9930 = vst [vmem:[#allocation60_spill] sm:$0xff] %v7871_v5  ;;  %v1001_v29 = vadd.f32 %v7814_v34, %v956_v14 }
 0x43e   :  { %v965_v31 = vpop.f32.mrb[45].mxu1  ;;  %2568 = vmatprep.mubr.f32.mxu0 %v9922_v56  ;;  %v7890_v41 = vmax.f32 %v1002_v2, 0.0  ;;  %v971_v30 = vadd.f32 %v5568_v37, %v818_v46 }
 0x43f   :  { %v7884_v35 = vmax.f32 %v1001_v29, 0.0  ;;  %v966_v61 = vadd.f32 %v965_v31, %v7803_v53  ;;  %v822_v14 = vpop.permute.xlu1 %821 }
 0x440   :  { %9933 = vst [vmem:[#allocation63_spill] sm:$0xff] %v7890_v41  ;;  %v1004_v51 = vadd.f32 %v7814_v34, %v971_v30 }
 0x441   :  { %v5571_v6 = vpop.f32.mrb[46].mxu1  ;;  %5091 = vmatmul.mubr.msk.f32.gmra.mrb[58].mxu0 %vm581_vm0, %v7851_v9  ;;  %9932 = vst [vmem:[#allocation62_spill] sm:$0xff] %v7884_v35  ;;  %v1003_v25 = vadd.f32 %v7814_v34, %v966_v61 }
 0x442   :  { %v975_v52 = vpop.f32.mrb[47].mxu1  ;;  %2574 = vmatprep.mubr.f32.mxu0 %v9922_v56  ;;  %v7903_v37 = vmax.f32 %v1004_v51, 0.0  ;;  %v981_v50 = vadd.f32 %v5571_v6, %v822_v14  ;;  %v9938_v6 = vsub.s32 0, %v7510_v42 }
 0x443   :  { %v7897_v53 = vmax.f32 %v1003_v25, 0.0  ;;  %v976_v31 = vadd.f32 %v975_v52, %v7805_v63 }
 0x444   :  { %9935 = vst [vmem:[#allocation65_spill] sm:$0xff] %v7903_v37  ;;  %v1006_v63 = vadd.f32 %v7814_v34, %v981_v50 }
 0x445   :  { %5092 = vmatmul.mubr.msk.f32.gmra.mrb[60].mxu0 %vm581_vm0, %v7858_v16  ;;  %9934 = vst [vmem:[#allocation64_spill] sm:$0xff] %v7897_v53  ;;  %v1005_v29 = vadd.f32 %v7814_v34, %v976_v31 }
 0x446   :  { %2580 = vmatprep.mubr.f32.mxu0 %v9922_v56 }
 0x447   :  { %v7913_v52 = vmax.f32 %v1005_v29, 0.0 }
 0x449   :  { %5093 = vmatmul.mubr.msk.f32.gmra.mrb[62].mxu0 %vm581_vm0, %v7864_v32  ;;  %9936 = vst [vmem:[#allocation66_spill] sm:$0xff] %v7913_v52 }
 0x44a   :  { %2586 = vmatprep.mubr.f32.mxu0 %v9922_v56 }
 0x44d   :  { %5094 = vmatmul.mubr.msk.f32.gmra.mrb[64].mxu0 %vm581_vm0, %v7871_v5 }
 0x44e   :  { %2592 = vmatprep.mubr.f32.mxu0 %v9922_v56 }
 0x451   :  { %5095 = vmatmul.mubr.msk.f32.gmra.mrb[66].mxu0 %vm581_vm0, %v7877_v38 }
 0x452   :  { %2598 = vmatprep.mubr.f32.mxu0 %v9922_v56 }
 0x455   :  { %5096 = vmatmul.mubr.msk.f32.gmra.mrb[68].mxu0 %vm581_vm0, %v7884_v35 }
 0x456   :  { %2604 = vmatprep.mubr.f32.mxu0 %v9922_v56 }
 0x459   :  { %5097 = vmatmul.mubr.msk.f32.gmra.mrb[70].mxu0 %vm581_vm0, %v7890_v41 }
 0x45a   :  { %2610 = vmatprep.mubr.f32.mxu0 %v9922_v56 }
 0x45d   :  { %5098 = vmatmul.mubr.msk.f32.gmra.mrb[72].mxu0 %vm581_vm0, %v7897_v53 }
 0x45e   :  { %2616 = vmatprep.mubr.f32.mxu0 %v9922_v56 }
 0x45f   :  { %v1566_v2 = vpop.permute.xlu1 %1565 }
 0x460   :  { %5022 = vmatmul.mubr.msk.f32.vlgmr.msra.gmra.mrb[48].mxu1 %vm581_vm0, %v1566_v2 }
 0x461   :  { %5099 = vmatmul.mubr.msk.f32.gmra.mrb[74].mxu0 %vm581_vm0, %v7903_v37  ;;  %5759 = vmatpush1.bf16.msra.mxu1 %v7323_v57  ;;  %v7921_v57 = vmax.f32 %v1006_v63, 0.0 }
 0x462   :  { %2622 = vmatprep.mubr.f32.mxu0 %v9922_v56  ;;  %1699 = vmatprep.mubr.f32.mxu1 %v9922_v56 }
 0x463   :  { %5761 = vmatprep.subr.bf16.mxu1 %v7328_v60  ;;  %9937 = vst [vmem:[#allocation67_spill] sm:$0xff] %v7921_v57  ;;  %v1024_v60 = vld [vmem:[%s9701_s11] sm:$0x3] }
 0x465   :  { %5100 = vmatmul.mubr.msk.f32.gmra.mrb[76].mxu0 %vm581_vm0, %v7913_v52  ;;  %5763 = vmatpush1.bf16.msra.mxu1 %v7350_v8  ;;  %v7934_v8 = vrot.slane %v1024_v60, %v9938_v6 }
 0x466   :  { %2628 = vmatprep.mubr.f32.mxu0 %v9922_v56  ;;  %5765 = vmatprep.subr.bf16.mxu1 %v7356_v27 }
 0x467   :  { %9939 = vst [vmem:[#allocation68_spill] sm:$0xff] %v7934_v8 }
 0x469   :  { %5101 = vmatmul.mubr.msk.f32.gmra.mrb[78].mxu0 %vm581_vm0, %v7921_v57  ;;  %5767 = vmatpush1.bf16.msra.mxu1 %v7378_v39 }
 0x46a   :  { %5769 = vmatprep.subr.bf16.mxu1 %v7384_v43  ;;  %3115 = vmatprep.mubr.f32.mxu0 %v9922_v56 }
 0x46d   :  { %5771 = vmatpush1.bf16.msra.mxu1 %v7400_v54  ;;  %v9940_v54 = vsub.s32 1, %v7510_v42 }
 0x46f   :  { %v7940_v14 = vrot.slane %v1024_v60, %v9940_v54 }
 0x471   :  { %9941 = vst [vmem:[#allocation69_spill] sm:$0xff] %v7940_v14 }
 0x500   :  { %v2540_v27 = vpop.f32.mrb[48].mxu0 }
 0x501   :  { %v2541_v34 = vadd.f32 %v2540_v27, %v7934_v8  ;;  %v2542_v61 = vpop.f32.mrb[49].mxu0 }
 0x502   :  { %v7944_v2 = vadd.f32 %v2542_v61, %v7940_v14 }
 0x503   :  { %v5102_v46 = vmul.f32 -1.442695, %v2541_v34 }
 0x504   :  { %v2546_v39 = vpop.f32.mrb[50].mxu0 }
 0x505   :  { %6046 = vpow2.f32 %v5102_v46  ;;  %v2547_v43 = vadd.f32 %v2546_v39, %v7934_v8  ;;  %v2548_v30 = vpop.f32.mrb[51].mxu0 }
 0x506   :  { %v7949_v42 = vadd.f32 %v2548_v30, %v7940_v14 }
 0x507   :  { %v5103_v25 = vmul.f32 -1.442695, %v2547_v43 }
 0x508   :  { %v2552_v51 = vpop.f32.mrb[52].mxu0 }
 0x509   :  { %6048 = vpow2.f32 %v5103_v25  ;;  %v2553_v31 = vadd.f32 %v2552_v51, %v7934_v8  ;;  %v2554_v50 = vpop.f32.mrb[53].mxu0 }
 0x50b   :  { %v5104_v29 = vmul.f32 -1.442695, %v2553_v31 }
 0x50c   :  { %v2558_v63 = vpop.f32.mrb[54].mxu0 }
 0x50d   :  { %6050 = vpow2.f32 %v5104_v29  ;;  %v2559_v6 = vadd.f32 %v2558_v63, %v7934_v8  ;;  %v2560_v27 = vpop.f32.mrb[55].mxu0  ;;  %v7954_v29 = vadd.f32 %v2554_v50, %v7940_v14 }
 0x50e   :  { %6052 = vtanh.f32 %v7944_v2 }
 0x50f   :  { %v6047_v34 = vpop.eup %6046  ;;  %v5105_v46 = vmul.f32 -1.442695, %v2559_v6 }
 0x510   :  { %v2683_v39 = vadd.f32 1.0, %v6047_v34  ;;  %v2564_v60 = vpop.f32.mrb[56].mxu0 }
 0x511   :  { %6054 = vpow2.f32 %v5105_v46  ;;  %v2565_v43 = vadd.f32 %v2564_v60, %v7934_v8  ;;  %v2566_v25 = vpop.f32.mrb[57].mxu0 }
 0x512   :  { %6056 = vrcp.f32 %v2683_v39  ;;  %v7959_v39 = vadd.f32 %v2560_v27, %v7940_v14 }
 0x513   :  { %v6049_v61 = vpop.eup %6048  ;;  %v5106_v54 = vmul.f32 -1.442695, %v2565_v43  ;;  %6058 = vtanh.f32 %v7949_v42 }
 0x514   :  { %v2684_v51 = vadd.f32 1.0, %v6049_v61  ;;  %v2570_v31 = vpop.f32.mrb[58].mxu0 }
 0x515   :  { %6060 = vpow2.f32 %v5106_v54  ;;  %v2571_v63 = vadd.f32 %v2570_v31, %v7934_v8  ;;  %v2572_v30 = vpop.f32.mrb[59].mxu0 }
 0x516   :  { %6062 = vrcp.f32 %v2684_v51 }
 0x517   :  { %v6051_v6 = vpop.eup %6050  ;;  %v5107_v46 = vmul.f32 -1.442695, %v2571_v63  ;;  %6064 = vtanh.f32 %v7954_v29  ;;  %v7966_v63 = vadd.f32 %v2566_v25, %v7940_v14 }
 0x518   :  { %v2685_v34 = vadd.f32 1.0, %v6051_v6  ;;  %v2576_v60 = vpop.f32.mrb[60].mxu0  ;;  %v6053_v61 = vpop.eup %6052 }
 0x519   :  { %v2578_v43 = vpop.f32.mrb[61].mxu0  ;;  %v2577_v54 = vadd.f32 %v2576_v60, %v7934_v8 }
 0x51a   :  { %6066 = vrcp.f32 %v2685_v34 }
 0x51b   :  { %v6055_v58 = vpop.eup %6054  ;;  %6068 = vpow2.f32 %v5107_v46 }
 0x51c   :  { %v6057_v50 = vpop.eup %6056  ;;  %v2686_v57 = vadd.f32 1.0, %v6055_v58  ;;  %v2582_v31 = vpop.f32.mrb[62].mxu0  ;;  %6070 = vtanh.f32 %v7959_v39  ;;  %v5108_v58 = vmul.f32 -1.442695, %v2577_v54 }
 0x51d   :  { %v7962_v51 = vmul.f32 %v6057_v50, %v6053_v61  ;;  %v2584_v6 = vpop.f32.mrb[63].mxu0  ;;  %v6059_v27 = vpop.eup %6058  ;;  %v2583_v25 = vadd.f32 %v2582_v31, %v7934_v8  ;;  %v7977_v50 = vadd.f32 %v2572_v30, %v7940_v14 }
 0x51e   :  { %6072 = vrcp.f32 %v2686_v57 }
 0x51f   :  { %v6061_v55 = vpop.eup %6060  ;;  %6074 = vtanh.f32 %v7962_v51  ;;  %v5109_v53 = vmul.f32 -1.442695, %v2583_v25 }
 0x520   :  { %v6063_v34 = vpop.eup %6062  ;;  %v2687_v52 = vadd.f32 1.0, %v6061_v55  ;;  %v2588_v46 = vpop.f32.mrb[64].mxu0  ;;  %6076 = vtanh.f32 %v7966_v63 }
 0x521   :  { %v7969_v37 = vmul.f32 %v6063_v34, %v6059_v27  ;;  %v7972_v60 = vpop.f32.mrb[65].mxu0  ;;  %v6065_v61 = vpop.eup %6064  ;;  %v2589_v35 = vadd.f32 %v2588_v46, %v7934_v8 }
 0x522   :  { %6078 = vrcp.f32 %v2687_v52 }
 0x523   :  { %6080 = vtanh.f32 %v7969_v37 }
 0x524   :  { %v6067_v57 = vpop.eup %6066  ;;  %6082 = vpow2.f32 %v5108_v58  ;;  %v2594_v55 = vpop.f32.mrb[66].mxu0 }
 0x525   :  { %v7979_v54 = vmul.f32 %v6067_v57, %v6065_v61  ;;  %v7981_v27 = vpop.f32.mrb[67].mxu0  ;;  %v6069_v34 = vpop.eup %6068  ;;  %v7991_v61 = vadd.f32 %v2578_v43, %v7940_v14  ;;  %v2595_v46 = vadd.f32 %v2594_v55, %v7934_v8  ;;  %v8004_v55 = vadd.f32 %v2584_v6, %v7940_v14 }
 0x526   :  { %v6071_v41 = vpop.eup %6070  ;;  %v2688_v52 = vadd.f32 1.0, %v6069_v34  ;;  %v5110_v34 = vmul.f32 -1.442695, %v2589_v35 }
 0x527   :  { %6084 = vtanh.f32 %v7979_v54  ;;  %v5111_v43 = vmul.f32 -1.442695, %v2595_v46 }
 0x528   :  { %v6073_v31 = vpop.eup %6072  ;;  %6086 = vtanh.f32 %v7977_v50  ;;  %v2600_v38 = vpop.f32.mrb[68].mxu0 }
 0x529   :  { %v6075_v30 = vpop.eup %6074  ;;  %v7986_v5 = vmul.f32 %v6073_v31, %v6071_v41  ;;  %6088 = vrcp.f32 %v2688_v52  ;;  %v7988_v58 = vpop.f32.mrb[69].mxu0  ;;  %v2601_v9 = vadd.f32 %v2600_v38, %v7934_v8 }
 0x52a   :  { %6090 = vpow2.f32 %v5109_v53  ;;  %2891 = vrot.lane.b32.xlu1 %v6075_v30, %s6903_s1  ;;  %v6077_v25 = vpop.eup %6076 }
 0x52b   :  { %6092 = vtanh.f32 %v7986_v5  ;;  %v5112_v6 = vmul.f32 -1.442695, %v2601_v9 }
 0x52c   :  { %v6079_v57 = vpop.eup %6078  ;;  %v2606_v32 = vpop.f32.mrb[70].mxu0  ;;  %6094 = vtanh.f32 %v7991_v61 }
 0x52d   :  { %v6081_v16 = vpop.eup %6080  ;;  %v7996_v41 = vmul.f32 %v6079_v57, %v6077_v25  ;;  %v7998_v52 = vpop.f32.mrb[71].mxu0  ;;  %v2607_v0 = vadd.f32 %v2606_v32, %v7934_v8 }
 0x52e   :  { %v6083_v31 = vpop.eup %6082  ;;  %2893 = vrot.lane.b32.xlu1 %v6081_v16, %s6903_s1 }
 0x52f   :  { %6096 = vtanh.f32 %v7996_v41  ;;  %v2689_v53 = vadd.f32 1.0, %v6083_v31  ;;  %v5113_v32 = vmul.f32 -1.442695, %v2607_v0 }
 0x530   :  { %6098 = vpow2.f32 %v5110_v34  ;;  %v2612_v30 = vpop.f32.mrb[72].mxu0 }
 0x531   :  { %v6085_v35 = vpop.eup %6084  ;;  %6100 = vrcp.f32 %v2689_v53  ;;  %v8006_v25 = vpop.f32.mrb[73].mxu0 }
 0x532   :  { %v6087_v57 = vpop.eup %6086  ;;  %2895 = vrot.lane.b32.xlu1 %v6085_v35, %s6903_s1  ;;  %6102 = vpow2.f32 %v5111_v43  ;;  %v8019_v35 = vadd.f32 %v7972_v60, %v7940_v14  ;;  %v8030_v60 = vadd.f32 %v7981_v27, %v7940_v14 }
 0x533   :  { %v6089_v7 = vpop.eup %6088  ;;  %6104 = vtanh.f32 %v8004_v55 }
 0x534   :  { %v6091_v16 = vpop.eup %6090  ;;  %v8010_v48 = vmul.f32 %v6089_v7, %v6087_v57  ;;  %v2618_v34 = vpop.f32.mrb[74].mxu0 }
 0x535   :  { %v6093_v46 = vpop.eup %6092  ;;  %v2690_v31 = vadd.f32 1.0, %v6091_v16  ;;  %v8013_v53 = vpop.f32.mrb[75].mxu0  ;;  %v2619_v23 = vadd.f32 %v2618_v34, %v7934_v8 }
 0x536   :  { %6106 = vtanh.f32 %v8010_v48  ;;  %2897 = vrot.lane.b32.xlu1 %v6093_v46, %s6903_s1  ;;  %v6095_v38 = vpop.eup %6094 }
 0x537   :  { %6108 = vrcp.f32 %v2690_v31 }
 0x538   :  { %v2624_v7 = vpop.f32.mrb[76].mxu0  ;;  %6110 = vpow2.f32 %v5112_v6 }
 0x539   :  { %v6097_v43 = vpop.eup %6096  ;;  %v8021_v57 = vpop.f32.mrb[77].mxu0  ;;  %6112 = vtanh.f32 %v8019_v35 }
 0x53a   :  { %v6099_v16 = vpop.eup %6098  ;;  %2899 = vrot.lane.b32.xlu1 %v6097_v43, %s6903_s1 }
 0x53b   :  { %v6101_v33 = vpop.eup %6100  ;;  %v2691_v9 = vadd.f32 1.0, %v6099_v16  ;;  %v8042_v16 = vadd.f32 %v7988_v58, %v7940_v14  ;;  %v8051_v58 = vadd.f32 %v7998_v52, %v7940_v14 }
 0x53c   :  { %v8025_v44 = vmul.f32 %v6101_v33, %v6095_v38  ;;  %v2630_v46 = vpop.f32.mrb[78].mxu0  ;;  %v6103_v19 = vpop.eup %6102  ;;  %v2613_v33 = vadd.f32 %v2612_v30, %v7934_v8 }
 0x53d   :  { %6114 = vrcp.f32 %v2691_v9  ;;  %v8032_v31 = vpop.f32.mrb[79].mxu0  ;;  %v6105_v6 = vpop.eup %6104  ;;  %v2692_v43 = vadd.f32 1.0, %v6103_v19 }
 0x53e   :  { %6116 = vtanh.f32 %v8025_v44  ;;  %v5114_v19 = vmul.f32 -1.442695, %v2613_v33  ;;  %v2625_v33 = vadd.f32 %v2624_v7, %v7934_v8 }
 0x53f   :  { %6118 = vtanh.f32 %v8030_v60 }
 0x540   :  { %v6107_v36 = vpop.eup %6106  ;;  %6120 = vrcp.f32 %v2692_v43  ;;  %v5116_v52 = vmul.f32 -1.442695, %v2625_v33 }
 0x541   :  { %v6109_v38 = vpop.eup %6108  ;;  %2901 = vrot.lane.b32.xlu1 %v6107_v36, %s6903_s1  ;;  %6122 = vpow2.f32 %v5113_v32  ;;  %v5115_v32 = vmul.f32 -1.442695, %v2619_v23  ;;  %v8062_v23 = vadd.f32 %v8006_v25, %v7940_v14  ;;  %v8072_v25 = vadd.f32 %v8013_v53, %v7940_v14 }
 0x542   :  { %v8038_v27 = vmul.f32 %v6109_v38, %v6105_v6  ;;  %v6111_v9 = vpop.eup %6110  ;;  %v8081_v53 = vadd.f32 %v8021_v57, %v7940_v14  ;;  %v8093_v57 = vadd.f32 %v8032_v31, %v7940_v14  ;;  %v5009_v31 = vmul.f32 -1.442695, %v7560_v17 }
 0x543   :  { %v2693_v0 = vadd.f32 1.0, %v6111_v9  ;;  %v6113_v20 = vpop.eup %6112 }
 0x544   :  { %6124 = vtanh.f32 %v8038_v27 }
 0x545   :  { %6126 = vtanh.f32 %v8042_v16 }
 0x546   :  { %6128 = vrcp.f32 %v2693_v0 }
 0x547   :  { %v6115_v30 = vpop.eup %6114  ;;  %6130 = vpow2.f32 %v5114_v19 }
 0x548   :  { %v6117_v36 = vpop.eup %6116  ;;  %v8047_v6 = vmul.f32 %v6115_v30, %v6113_v20  ;;  %v2631_v30 = vadd.f32 %v2630_v46, %v7934_v8 }
 0x549   :  { %2903 = vrot.lane.b32.xlu1 %v6117_v36, %s6903_s1  ;;  %v6119_v43 = vpop.eup %6118 }
 0x54a   :  { %6132 = vtanh.f32 %v8047_v6  ;;  %v6121_v34 = vpop.eup %6120  ;;  %v5117_v33 = vmul.f32 -1.442695, %v2631_v30 }
 0x54b   :  { %v6123_v38 = vpop.eup %6122  ;;  %v8056_v9 = vmul.f32 %v6121_v34, %v6119_v43  ;;  %6134 = vtanh.f32 %v8051_v58 }
 0x54c   :  { %v2694_v20 = vadd.f32 1.0, %v6123_v38  ;;  %6136 = vpow2.f32 %v5115_v32 }
 0x54d   :  { %6138 = vtanh.f32 %v8056_v9 }
 0x54e   :  { %v6125_v0 = vpop.eup %6124  ;;  %6140 = vrcp.f32 %v2694_v20 }
 0x54f   :  { %2905 = vrot.lane.b32.xlu1 %v6125_v0, %s6903_s1  ;;  %v6127_v19 = vpop.eup %6126  ;;  %6142 = vtanh.f32 %v8062_v23 }
 0x550   :  { %v6129_v7 = vpop.eup %6128  ;;  %6144 = vpow2.f32 %v5116_v52 }
 0x551   :  { %v6131_v36 = vpop.eup %6130  ;;  %v8066_v43 = vmul.f32 %v6129_v7, %v6127_v19 }
 0x552   :  { %v2695_v32 = vadd.f32 1.0, %v6131_v36 }
 0x553   :  { %6146 = vtanh.f32 %v8066_v43 }
 0x554   :  { %v6133_v34 = vpop.eup %6132  ;;  %6148 = vrcp.f32 %v2695_v32 }
 0x555   :  { %2907 = vrot.lane.b32.xlu1 %v6133_v34, %s6903_s1  ;;  %v6135_v38 = vpop.eup %6134  ;;  %6150 = vtanh.f32 %v8072_v25 }
 0x556   :  { %v6137_v46 = vpop.eup %6136  ;;  %6152 = vpow2.f32 %v5117_v33  ;;  %v5007_v33 = vmul.f32 -1.442695, %v7545_v12 }
 0x557   :  { %v6139_v20 = vpop.eup %6138  ;;  %v2696_v0 = vadd.f32 1.0, %v6137_v46  ;;  %v8089_v46 = vpop.permute.xlu0 %1471 }
 0x558   :  { %v6141_v19 = vpop.eup %6140 }
 0x559   :  { %2909 = vrot.lane.b32.xlu1 %v6139_v20, %s6903_s1  ;;  %v8077_v52 = vmul.f32 %v6141_v19, %v6135_v38  ;;  %6154 = vrcp.f32 %v2696_v0  ;;  %v6143_v7 = vpop.eup %6142 }
 0x55a   :  { %v6145_v30 = vpop.eup %6144 }
 0x55b   :  { %6156 = vtanh.f32 %v8077_v52  ;;  %v2697_v32 = vadd.f32 1.0, %v6145_v30  ;;  %v5008_v30 = vmul.f32 -1.442695, %v7553_v4  ;;  %v5010_v4 = vmul.f32 -1.442695, %v7569_v45 }
 0x55c   :  { %6158 = vtanh.f32 %v8081_v53 }
 0x55d   :  { %v6147_v36 = vpop.eup %6146  ;;  %6160 = vrcp.f32 %v2697_v32 }
 0x55e   :  { %v6149_v34 = vpop.eup %6148  ;;  %2911 = vrot.lane.b32.xlu1 %v6147_v36, %s6903_s1 }
 0x55f   :  { %v8087_v38 = vmul.f32 %v6149_v34, %v6143_v7  ;;  %v6151_v20 = vpop.eup %6150  ;;  %v8100_v7 = vpop.permute.xlu0 %1473 }
 0x560   :  { %v6153_v0 = vpop.eup %6152 }
 0x561   :  { %6162 = vtanh.f32 %v8087_v38  ;;  %v2698_v36 = vadd.f32 1.0, %v6153_v0 }
 0x562   :  { %6164 = vpow2.f32 %v5007_v33 }
 0x563   :  { %v6155_v19 = vpop.eup %6154  ;;  %6166 = vtanh.f32 %v8093_v57  ;;  %v8108_v0 = vpop.permute.xlu0 %1475 }
 0x564   :  { %v8097_v8 = vmul.f32 %v6155_v19, %v6151_v20  ;;  %6168 = vrcp.f32 %v2698_v36  ;;  %v5011_v36 = vmul.f32 -1.442695, %v7591_v28  ;;  %v5013_v28 = vmul.f32 -1.442695, %v7624_v49 }
 0x565   :  { %v6157_v12 = vpop.eup %6156 }
 0x566   :  { %9942 = vst [vmem:[#allocation70_spill] sm:$0xff] %v8097_v8  ;;  %6170 = vtanh.f32 %v8097_v8  ;;  %2913 = vrot.lane.b32.xlu1 %v6157_v12, %s6903_s1  ;;  %v6159_v32 = vpop.eup %6158 }
 0x567   :  { %6172 = vpow2.f32 %v5008_v30  ;;  %v6161_v34 = vpop.eup %6160 }
 0x568   :  { %v8106_v33 = vmul.f32 %v6161_v34, %v6159_v32  ;;  %6174 = vpow2.f32 %v5009_v31  ;;  %v5012_v31 = vmul.f32 -1.442695, %v7605_v13  ;;  %v1478_v32 = vpop.permute.xlu0 %1477  ;;  %v5014_v13 = vmul.f32 -1.442695, %v7640_v24 }
 0x569   :  { %v5119_v24 = vmul.f32 -1.442695, %v7949_v42 }
 0x56a   :  { %9943 = vst [vmem:[#allocation71_spill] sm:$0xff] %v8106_v33  ;;  %6176 = vtanh.f32 %v8106_v33 }
 0x56b   :  { %v6163_v20 = vpop.eup %6162  ;;  %6178 = vpow2.f32 %v5010_v4 }
 0x56c   :  { %2915 = vrot.lane.b32.xlu1 %v6163_v20, %s6903_s1  ;;  %v6165_v19 = vpop.eup %6164  ;;  %6180 = vpow2.f32 %v5011_v36  ;;  %v1480_v36 = vpop.permute.xlu0 %1479 }
 0x56d   :  { %v6167_v30 = vpop.eup %6166  ;;  %v1374_v14 = vadd.f32 1.0, %v6165_v19 }
 0x56e   :  { %v6169_v17 = vpop.eup %6168 }
 0x56f   :  { %v8113_v8 = vmul.f32 %v6169_v17, %v6167_v30 }
 0x570   :  { %v6171_v12 = vpop.eup %6170 }
 0x571   :  { %v6173_v45 = vpop.eup %6172  ;;  %2917 = vrot.lane.b32.xlu1 %v6171_v12, %s6903_s1  ;;  %6182 = vtanh.f32 %v8113_v8 }
 0x572   :  { %6184 = vrcp.f32 %v1374_v14  ;;  %v1375_v34 = vadd.f32 1.0, %v6173_v45  ;;  %v6175_v20 = vpop.eup %6174  ;;  %v5118_v14 = vmul.f32 -1.442695, %v7944_v2 }
 0x573   :  { %6186 = vpow2.f32 %v5012_v31  ;;  %v1376_v30 = vadd.f32 1.0, %v6175_v20  ;;  %v1482_v31 = vpop.permute.xlu0 %1481 }
 0x574   :  { %v6177_v4 = vpop.eup %6176  ;;  %6188 = vrcp.f32 %v1375_v34  ;;  %v5015_v34 = vmul.f32 -1.442695, %v7651_v15 }
 0x575   :  { %2919 = vrot.lane.b32.xlu1 %v6177_v4, %s6903_s1  ;;  %v6179_v19 = vpop.eup %6178  ;;  %6190 = vpow2.f32 %v5013_v28 }
 0x576   :  { %v6181_v17 = vpop.eup %6180  ;;  %v1377_v12 = vadd.f32 1.0, %v6179_v19  ;;  %6192 = vrcp.f32 %v1376_v30  ;;  %v5016_v19 = vmul.f32 -1.442695, %v7663_v62  ;;  %v5121_v62 = vmul.f32 -1.442695, %v7959_v39 }
 0x577   :  { %6194 = vpow2.f32 %v5014_v13  ;;  %v1378_v45 = vadd.f32 1.0, %v6181_v17  ;;  %v1484_v15 = vpop.permute.xlu0 %1483 }
 0x578   :  { %6196 = vrcp.f32 %v1377_v12  ;;  %v5017_v12 = vmul.f32 -1.442695, %v7672_v21 }
 0x579   :  { %6198 = vpow2.f32 %v5118_v14 }
 0x57a   :  { %6200 = vrcp.f32 %v1378_v45 }
 0x57b   :  { %v6183_v33 = vpop.eup %6182  ;;  %6202 = vpow2.f32 %v5015_v34  ;;  %v1486_v45 = vpop.permute.xlu0 %1485 }
 0x57c   :  { %2921 = vrot.lane.b32.xlu0 %v6183_v33, %s6903_s1  ;;  %v6185_v49 = vpop.eup %6184  ;;  %6204 = vpow2.f32 %v5119_v24 }
 0x57d   :  { %v6187_v4 = vpop.eup %6186  ;;  %v8125_v20 = vmul.f32 %v6185_v49, %v8089_v46  ;;  %v5120_v46 = vmul.f32 -1.442695, %v7954_v29 }
 0x57e   :  { %v6189_v2 = vpop.eup %6188  ;;  %v1379_v28 = vadd.f32 1.0, %v6187_v4  ;;  %v5018_v4 = vmul.f32 -1.442695, %v7689_v59 }
 0x57f   :  { %9944 = vst [vmem:[#allocation72_spill] sm:$0xff] %v8125_v20  ;;  %v6191_v33 = vpop.eup %6190  ;;  %v8132_v30 = vmul.f32 %v6189_v2, %v8100_v7 }
 0x580   :  { %1567 = vrot.lane.b32.xlu0 %v8125_v20, %s6903_s1  ;;  %v6193_v42 = vpop.eup %6192  ;;  %6206 = vrcp.f32 %v1379_v28  ;;  %v1380_v13 = vadd.f32 1.0, %v6191_v33  ;;  %v5019_v28 = vmul.f32 -1.442695, %v7699_v26  ;;  %v5123_v26 = vmul.f32 -1.442695, %v7977_v50 }
 0x581   :  { %9945 = vst [vmem:[#allocation73_spill] sm:$0xff] %v8132_v30  ;;  %v6195_v17 = vpop.eup %6194  ;;  %6208 = vpow2.f32 %v5016_v19  ;;  %v8139_v14 = vmul.f32 %v6193_v42, %v8108_v0  ;;  %v5122_v0 = vmul.f32 -1.442695, %v7966_v63 }
 0x582   :  { %6210 = vpow2.f32 %v5120_v46  ;;  %v6197_v7 = vpop.eup %6196  ;;  %v1381_v49 = vadd.f32 1.0, %v6195_v17 }
 0x583   :  { %9946 = vst [vmem:[#allocation74_spill] sm:$0xff] %v8139_v14  ;;  %v6199_v29 = vpop.eup %6198  ;;  %6212 = vrcp.f32 %v1380_v13  ;;  %v8145_v34 = vmul.f32 %v6197_v7, %v1478_v32  ;;  %v1488_v32 = vpop.permute.xlu0 %1487  ;;  %v5020_v13 = vmul.f32 -1.442695, %v7708_v47  ;;  %v5021_v47 = vmul.f32 -1.442695, %v7717_v1 }
 0x584   :  { %1569 = vrot.lane.b32.xlu0 %v8132_v30, %s6903_s1  ;;  %6214 = vpow2.f32 %v5017_v12  ;;  %v6201_v21 = vpop.eup %6200  ;;  %v2795_v2 = vadd.f32 1.0, %v6199_v29 }
 0x585   :  { %9947 = vst [vmem:[#allocation75_spill] sm:$0xff] %v8145_v34  ;;  %6216 = vpow2.f32 %v5121_v62  ;;  %v6203_v24 = vpop.eup %6202  ;;  %v8151_v33 = vmul.f32 %v6201_v21, %v1480_v36  ;;  %v2956_v21 = vld [vmem:[#allocation8 + $0x8] sm:$0xff] }
 0x586   :  { %v6205_v39 = vpop.eup %6204  ;;  %6218 = vrcp.f32 %v1381_v49  ;;  %v1382_v59 = vadd.f32 1.0, %v6203_v24  ;;  %v2955_v24 = vld [vmem:[#allocation8] sm:$0xff] }
 0x587   :  { %6220 = vpow2.f32 %v5018_v4  ;;  %9948 = vst [vmem:[#allocation76_spill] sm:$0xff] %v8151_v33  ;;  %v2796_v42 = vadd.f32 1.0, %v6205_v39  ;;  %v8161_v49 = vpop.permute.xlu0 %1489 }
 0x588   :  { %1571 = vrot.lane.b32.xlu0 %v8139_v14, %s6903_s1  ;;  %6222 = vpow2.f32 %v5122_v0  ;;  %v2958_v0 = vld [vmem:[#allocation8 + $0x18] sm:$0xff] }
 0x589   :  { %6224 = vrcp.f32 %v2795_v2 }
 0x58a   :  { %v6207_v19 = vpop.eup %6206  ;;  %6226 = vpow2.f32 %v5019_v28  ;;  %v5788_v28 = vpack.c.bf16 %v2958_v0, %v2956_v21 }
 0x58b   :  { %v6209_v46 = vpop.eup %6208  ;;  %v8156_v17 = vmul.f32 %v6207_v19, %v1482_v31  ;;  %6228 = vrcp.f32 %v1382_v59  ;;  %v2957_v19 = vld [vmem:[#allocation8 + $0x10] sm:$0xff] }
 0x58c   :  { %1573 = vrot.lane.b32.xlu0 %v8145_v34, %s6903_s1  ;;  %v6211_v63 = vpop.eup %6210  ;;  %v1383_v12 = vadd.f32 1.0, %v6209_v46  ;;  %6230 = vrcp.f32 %v2796_v42  ;;  %v5790_v46 = vpack.c.bf16 %v2957_v19, %v2955_v24  ;;  %v5124_v42 = vmul.f32 -1.442695, %v7991_v61  ;;  %5789 = vmatprep.subr.bf16.mxu0 %v5788_v28  ;;  %v2964_v19 = vld [vmem:[#allocation8 + $0x48] sm:$0xff] }
 0x58d   :  { %9949 = vst [vmem:[#allocation77_spill] sm:$0xff] %v8156_v17  ;;  %v6213_v36 = vpop.eup %6212  ;;  %v2797_v7 = vadd.f32 1.0, %v6211_v63  ;;  %6232 = vpow2.f32 %v5020_v13 }
 0x58e   :  { %v6215_v62 = vpop.eup %6214  ;;  %v8164_v4 = vmul.f32 %v6213_v36, %v1484_v15  ;;  %6234 = vpow2.f32 %v5123_v26  ;;  %v1492_v26 = vpop.permute.xlu0 %1491  ;;  %5791 = vmatpush1.bf16.msra.mxu0 %v5790_v46  ;;  %v2963_v46 = vld [vmem:[#allocation8 + $0x40] sm:$0xff] }
 0x58f   :  { %v6217_v29 = vpop.eup %6216  ;;  %6236 = vrcp.f32 %v1383_v12  ;;  %v1384_v50 = vadd.f32 1.0, %v6215_v62  ;;  %v2960_v12 = vld [vmem:[#allocation8 + $0x28] sm:$0xff]  ;;  %v2962_v62 = vld [vmem:[#allocation8 + $0x38] sm:$0xff] }
 0x590   :  { %1575 = vrot.lane.b32.xlu0 %v8151_v33, %s6903_s1  ;;  %9950 = vst [vmem:[#allocation78_spill] sm:$0xff] %v8164_v4  ;;  %v6219_v31 = vpop.eup %6218  ;;  %6238 = vrcp.f32 %v2797_v7  ;;  %v2798_v39 = vadd.f32 1.0, %v6217_v29  ;;  %v2959_v7 = vld [vmem:[#allocation8 + $0x20] sm:$0xff] }
 0x591   :  { %v6221_v2 = vpop.eup %6220  ;;  %6240 = vpow2.f32 %v5021_v47  ;;  %v8168_v15 = vmul.f32 %v6219_v31, %v1486_v45  ;;  %v5792_v45 = vpack.c.bf16 %v2962_v62, %v2960_v12  ;;  %v2961_v47 = vld [vmem:[#allocation8 + $0x30] sm:$0xff] }
 0x592   :  { %v6223_v59 = vpop.eup %6222  ;;  %6242 = vrcp.f32 %v1384_v50  ;;  %v1385_v13 = vadd.f32 1.0, %v6221_v2  ;;  %v5794_v31 = vpack.c.bf16 %v2961_v47, %v2959_v7  ;;  %v1494_v62 = vpop.permute.xlu0 %1493 }
 0x593   :  { %v6225_v1 = vpop.eup %6224  ;;  %9951 = vst [vmem:[#allocation79_spill] sm:$0xff] %v8168_v15  ;;  %6244 = vrcp.f32 %v2798_v39  ;;  %v2799_v21 = vadd.f32 1.0, %v6223_v59  ;;  %5793 = vmatprep.subr.bf16.mxu0 %v5792_v45  ;;  %v2966_v59 = vld [vmem:[#allocation8 + $0x58] sm:$0xff] }
 0x594   :  { %1577 = vrot.lane.b32.xlu0 %v8156_v17, %s6903_s1  ;;  %v6227_v29 = vpop.eup %6226  ;;  %6246 = vpow2.f32 %v5124_v42  ;;  %5795 = vmatpush1.bf16.msra.mxu0 %v5794_v31  ;;  %v2965_v42 = vld [vmem:[#allocation8 + $0x50] sm:$0xff]  ;;  %v2970_v31 = vld [vmem:[#allocation8 + $0x78] sm:$0xff] }
 0x595   :  { %v6229_v61 = vpop.eup %6228  ;;  %6248 = vrcp.f32 %v1385_v13  ;;  %v1386_v39 = vadd.f32 1.0, %v6227_v29  ;;  %v5798_v13 = vpack.c.bf16 %v2965_v42, %v2963_v46 }
 0x596   :  { %v6231_v50 = vpop.eup %6230  ;;  %v8177_v0 = vmul.f32 %v6229_v61, %v1488_v32  ;;  %6250 = vrcp.f32 %v2799_v21  ;;  %v5796_v32 = vpack.c.bf16 %v2966_v59, %v2964_v19  ;;  %v2968_v61 = vld [vmem:[#allocation8 + $0x68] sm:$0xff] }
 0x597   :  { %v6233_v2 = vpop.eup %6232  ;;  %6252 = vrcp.f32 %v1386_v39  ;;  %v5800_v19 = vpack.c.bf16 %v2970_v31, %v2968_v61 }
 0x598   :  { %1579 = vrot.lane.b32.xlu0 %v8164_v4, %s6903_s1  ;;  %9952 = vst [vmem:[#allocation80_spill] sm:$0xff] %v8177_v0  ;;  %v1387_v29 = vadd.f32 1.0, %v6233_v2  ;;  %5797 = vmatprep.subr.bf16.mxu0 %v5796_v32  ;;  %v2969_v2 = vld [vmem:[#allocation8 + $0x70] sm:$0xff] }
 0x599   :  { %5799 = vmatpush1.bf16.msra.mxu0 %v5798_v13 }
 0x59a   :  { %5801 = vmatprep.subr.bf16.mxu0 %v5800_v19 }
 0x59c   :  { %v2892_v63 = vpop.permute.xlu1 %2891  ;;  %1581 = vrot.lane.b32.xlu0 %v8168_v15, %s6903_s1 }
 0x59d   :  { %v8171_v36 = vmul.f32 %v6225_v1, %v2892_v63  ;;  %v6235_v1 = vpop.eup %6234  ;;  %v5125_v63 = vmul.f32 -1.442695, %v8004_v55 }
 0x59e   :  { %v6237_v12 = vpop.eup %6236  ;;  %v2800_v55 = vadd.f32 1.0, %v6235_v1 }
 0x59f   :  { %2987 = vrot.lane.b32.xlu1 %v8171_v36, %s6903_s1  ;;  %v6239_v7 = vpop.eup %6238  ;;  %v8187_v45 = vmul.f32 %v6237_v12, %v8161_v49  ;;  %6254 = vpow2.f32 %v5125_v63  ;;  %v5126_v49 = vmul.f32 -1.442695, %v8019_v35  ;;  %v1496_v63 = vpop.permute.xlu0 %1495 }
 0x5a0   :  { %v2894_v24 = vpop.permute.xlu1 %2893  ;;  %1583 = vrot.lane.b32.xlu0 %v8177_v0, %s6903_s1  ;;  %6256 = vrcp.f32 %v1387_v29  ;;  %v5127_v29 = vmul.f32 -1.442695, %v8030_v60  ;;  %v5128_v60 = vmul.f32 -1.442695, %v8042_v16 }
 0x5a1   :  { %v8179_v28 = vmul.f32 %v6231_v50, %v2894_v24  ;;  %9953 = vst [vmem:[#allocation81_spill] sm:$0xff] %v8187_v45  ;;  %v2967_v50 = vld [vmem:[#allocation8 + $0x60] sm:$0xff]  ;;  %v6241_v24 = vpop.eup %6240  ;;  %6258 = vrcp.f32 %v2800_v55 }
 0x5a2   :  { %v6243_v59 = vpop.eup %6242  ;;  %v5802_v39 = vpack.c.bf16 %v2969_v2, %v2967_v50  ;;  %v1388_v42 = vadd.f32 1.0, %v6241_v24  ;;  %6260 = vpow2.f32 %v5126_v49 }
 0x5a3   :  { %2989 = vrot.lane.b32.xlu1 %v8179_v28, %s6903_s1  ;;  %v6245_v46 = vpop.eup %6244  ;;  %v8196_v1 = vmul.f32 %v6243_v59, %v1492_v26 }
 0x5a4   :  { %v2896_v47 = vpop.permute.xlu1 %2895  ;;  %1585 = vrot.lane.b32.xlu0 %v8187_v45, %s6903_s1  ;;  %5803 = vmatpush1.bf16.msra.mxu0 %v5802_v39  ;;  %v6247_v13 = vpop.eup %6246  ;;  %6262 = vrcp.f32 %v1388_v42 }
 0x5a5   :  { %v8189_v21 = vmul.f32 %v6239_v7, %v2896_v47  ;;  %9955 = vst [vmem:[#allocation83_spill] sm:$0xff] %v8196_v1  ;;  %5805 = vmatprep.subr.bf16.mxu0 %v7574_v40  ;;  %v6249_v35 = vpop.eup %6248  ;;  %v2801_v55 = vadd.f32 1.0, %v6247_v13  ;;  %v1498_v40 = vpop.permute.xlu0 %1497  ;;  %6264 = vpow2.f32 %v5127_v29  ;;  %v5129_v13 = vmul.f32 -1.442695, %v8051_v58 }
 0x5a6   :  { %v6251_v26 = vpop.eup %6250  ;;  %v8205_v7 = vmul.f32 %v6249_v35, %v1494_v62 }
 0x5a7   :  { %9954 = vst [vmem:[#allocation82_spill] sm:$0xff] %v8189_v21  ;;  %2991 = vrot.lane.b32.xlu1 %v8189_v21, %s6903_s1  ;;  %v6253_v31 = vpop.eup %6252  ;;  %6266 = vrcp.f32 %v2801_v55 }
 0x5a8   :  { %v2898_v32 = vpop.permute.xlu1 %2897  ;;  %1587 = vrot.lane.b32.xlu0 %v8196_v1, %s6903_s1  ;;  %9957 = vst [vmem:[#allocation85_spill] sm:$0xff] %v8205_v7  ;;  %v8214_v24 = vmul.f32 %v6253_v31, %v1496_v63  ;;  %6268 = vpow2.f32 %v5128_v60  ;;  %v5130_v31 = vmul.f32 -1.442695, %v8062_v23 }
 0x5a9   :  { %v8198_v12 = vmul.f32 %v6245_v46, %v2898_v32  ;;  %v6255_v50 = vpop.eup %6254  ;;  %v1500_v32 = vpop.permute.xlu0 %1499 }
 0x5aa   :  { %9959 = vst [vmem:[#allocation87_spill] sm:$0xff] %v8214_v24  ;;  %v6257_v62 = vpop.eup %6256  ;;  %v2802_v2 = vadd.f32 1.0, %v6255_v50 }
 0x5ab   :  { %9956 = vst [vmem:[#allocation84_spill] sm:$0xff] %v8198_v12  ;;  %2993 = vrot.lane.b32.xlu1 %v8198_v12, %s6903_s1  ;;  %v6259_v19 = vpop.eup %6258  ;;  %v8219_v49 = vmul.f32 %v6257_v62, %v1498_v40 }
 0x5ac   :  { %v2900_v47 = vpop.permute.xlu1 %2899  ;;  %1589 = vrot.lane.b32.xlu0 %v8205_v7, %s6903_s1  ;;  %v6261_v46 = vpop.eup %6260  ;;  %6270 = vrcp.f32 %v2802_v2 }
 0x5ad   :  { %v8208_v61 = vmul.f32 %v6251_v26, %v2900_v47  ;;  %9960 = vst [vmem:[#allocation88_spill] sm:$0xff] %v8219_v49  ;;  %v2803_v63 = vadd.f32 1.0, %v6261_v46 }
 0x5ae   :  { %v6263_v16 = vpop.eup %6262 }
 0x5af   :  { %9958 = vst [vmem:[#allocation86_spill] sm:$0xff] %v8208_v61  ;;  %2995 = vrot.lane.b32.xlu1 %v8208_v61, %s6903_s1  ;;  %v8227_v42 = vmul.f32 %v6263_v16, %v1500_v32  ;;  %v6265_v35 = vpop.eup %6264  ;;  %6272 = vrcp.f32 %v2803_v63  ;;  %v5132_v32 = vmul.f32 -1.442695, %v8081_v53 }
 0x5b0   :  { %1591 = vrot.lane.b32.xlu0 %v8214_v24, %s6903_s1  ;;  %v2804_v55 = vadd.f32 1.0, %v6265_v35  ;;  %6274 = vpow2.f32 %v5129_v13 }
 0x5b1   :  { %9962 = vst [vmem:[#allocation90_spill] sm:$0xff] %v8227_v42  ;;  %v6267_v26 = vpop.eup %6266 }
 0x5b2   :  { %v6269_v58 = vpop.eup %6268  ;;  %6276 = vrcp.f32 %v2804_v55 }
 0x5b3   :  { %v2902_v59 = vpop.permute.xlu1 %2901  ;;  %v2805_v60 = vadd.f32 1.0, %v6269_v58  ;;  %6278 = vpow2.f32 %v5130_v31 }
 0x5b4   :  { %v8221_v39 = vmul.f32 %v6259_v19, %v2902_v59  ;;  %1593 = vrot.lane.b32.xlu0 %v8219_v49, %s6903_s1 }
 0x5b5   :  { %6280 = vrcp.f32 %v2805_v60 }
 0x5b6   :  { %9961 = vst [vmem:[#allocation89_spill] sm:$0xff] %v8221_v39  ;;  %2997 = vrot.lane.b32.xlu1 %v8221_v39, %s6903_s1  ;;  %v6271_v40 = vpop.eup %6270 }
 0x5b8   :  { %1595 = vrot.lane.b32.xlu0 %v8227_v42, %s6903_s1 }
 0x5b9   :  { %v6273_v19 = vpop.eup %6272 }
 0x5ba   :  { %v6275_v2 = vpop.eup %6274 }
 0x5bb   :  { %v2904_v29 = vpop.permute.xlu1 %2903  ;;  %v2806_v46 = vadd.f32 1.0, %v6275_v2 }
 0x5bc   :  { %v8232_v47 = vmul.f32 %v6267_v26, %v2904_v29  ;;  %2255 = vrot.lane.b32.xlu0 %v7565_v10, %s6903_s1  ;;  %v5131_v10 = vmul.f32 -1.442695, %v8072_v25  ;;  %v5133_v26 = vmul.f32 -1.442695, %v8093_v57 }
 0x5be   :  { %9963 = vst [vmem:[#allocation91_spill] sm:$0xff] %v8232_v47  ;;  %2999 = vrot.lane.b32.xlu1 %v8232_v47, %s6903_s1  ;;  %6282 = vpow2.f32 %v5131_v10 }
 0x5bf   :  { %6284 = vrcp.f32 %v2806_v46 }
 0x5c0   :  { %2257 = vrot.lane.b32.xlu0 %v7581_v3, %s6903_s1  ;;  %v6277_v3 = vpop.eup %6276  ;;  %6286 = vpow2.f32 %v5132_v32 }
 0x5c1   :  { %v2906_v50 = vpop.permute.xlu1 %2905  ;;  %v6279_v13 = vpop.eup %6278 }
 0x5c2   :  { %v8241_v62 = vmul.f32 %v6271_v40, %v2906_v50  ;;  %v2807_v25 = vadd.f32 1.0, %v6279_v13  ;;  %v6281_v35 = vpop.eup %6280 }
 0x5c4   :  { %9964 = vst [vmem:[#allocation92_spill] sm:$0xff] %v8241_v62  ;;  %3001 = vrot.lane.b32.xlu1 %v8241_v62, %s6903_s1  ;;  %6288 = vrcp.f32 %v2807_v25 }
 0x5c5   :  { %6290 = vpow2.f32 %v5133_v26 }
 0x5c7   :  { %v2908_v23 = vpop.permute.xlu1 %2907 }
 0x5c8   :  { %v8246_v59 = vmul.f32 %v6273_v19, %v2908_v23  ;;  %v6283_v31 = vpop.eup %6282 }
 0x5c9   :  { %v2808_v53 = vadd.f32 1.0, %v6283_v31  ;;  %v6285_v58 = vpop.eup %6284 }
 0x5ca   :  { %9965 = vst [vmem:[#allocation93_spill] sm:$0xff] %v8246_v59  ;;  %3003 = vrot.lane.b32.xlu1 %v8246_v59, %s6903_s1  ;;  %v6287_v40 = vpop.eup %6286 }
 0x5cb   :  { %v2910_v16 = vpop.permute.xlu1 %2909  ;;  %6292 = vrcp.f32 %v2808_v53  ;;  %v2809_v10 = vadd.f32 1.0, %v6287_v40 }
 0x5cc   :  { %v8251_v63 = vmul.f32 %v6277_v3, %v2910_v16 }
 0x5cd   :  { %6294 = vrcp.f32 %v2809_v10 }
 0x5ce   :  { %9966 = vst [vmem:[#allocation94_spill] sm:$0xff] %v8251_v63  ;;  %3005 = vrot.lane.b32.xlu1 %v8251_v63, %s6903_s1  ;;  %v6289_v57 = vpop.eup %6288 }
 0x5cf   :  { %v6291_v19 = vpop.eup %6290 }
 0x5d0   :  { %v2912_v29 = vpop.permute.xlu1 %2911  ;;  %v2810_v46 = vadd.f32 1.0, %v6291_v19  ;;  %v9975_v19 = vld [vmem:[#allocation46_spill] sm:$0xff] }
 0x5d1   :  { %v8256_v55 = vmul.f32 %v6281_v35, %v2912_v29 }
 0x5d2   :  { %6296 = vrcp.f32 %v2810_v46 }
 0x5d3   :  { %9967 = vst [vmem:[#allocation95_spill] sm:$0xff] %v8256_v55  ;;  %3007 = vrot.lane.b32.xlu1 %v8256_v55, %s6903_s1 }
 0x5d5   :  { %v6293_v3 = vpop.eup %6292 }
 0x5d7   :  { %v6295_v13 = vpop.eup %6294 }
 0x5d8   :  { %v2914_v50 = vpop.permute.xlu1 %2913 }
 0x5d9   :  { %v8260_v60 = vmul.f32 %v6285_v58, %v2914_v50 }
 0x5db   :  { %9968 = vst [vmem:[#allocation96_spill] sm:$0xff] %v8260_v60  ;;  %3009 = vrot.lane.b32.xlu1 %v8260_v60, %s6903_s1 }
 0x5dc   :  { %v6297_v26 = vpop.eup %6296 }
 0x5de   :  { %v2916_v2 = vpop.permute.xlu1 %2915 }
 0x5df   :  { %v8264_v23 = vmul.f32 %v6289_v57, %v2916_v2  ;;  %v9974_v57 = vld [vmem:[#allocation41_spill] sm:$0xff]  ;;  %v9976_v2 = vld [vmem:[#allocation47_spill] sm:$0xff] }
 0x5e1   :  { %9969 = vst [vmem:[#allocation97_spill] sm:$0xff] %v8264_v23  ;;  %3011 = vrot.lane.b32.xlu1 %v8264_v23, %s6903_s1 }
 0x5e3   :  { %v2918_v32 = vpop.permute.xlu1 %2917 }
 0x5e4   :  { %v8268_v16 = vmul.f32 %v6293_v3, %v2918_v32 }
 0x5e6   :  { %9970 = vst [vmem:[#allocation98_spill] sm:$0xff] %v8268_v16  ;;  %3013 = vrot.lane.b32.xlu1 %v8268_v16, %s6903_s1 }
 0x5e7   :  { %v2920_v25 = vpop.permute.xlu1 %2919 }
 0x5e8   :  { %v8272_v35 = vmul.f32 %v6295_v13, %v2920_v25 }
 0x5ea   :  { %9971 = vst [vmem:[#allocation99_spill] sm:$0xff] %v8272_v35  ;;  %3015 = vrot.lane.b32.xlu1 %v8272_v35, %s6903_s1 }
 0x5ee   :  { %v2922_v29 = vpop.permute.xlu0 %2921 }
 0x5ef   :  { %v8276_v31 = vmul.f32 %v6297_v26, %v2922_v29  ;;  %v9978_v26 = vld [vmem:[#allocation52_spill] sm:$0xff]  ;;  %v9980_v29 = vld [vmem:[#allocation53_spill] sm:$0xff] }
 0x5f1   :  { %9972 = vst [vmem:[#allocation100_spill] sm:$0xff] %v8276_v31  ;;  %3017 = vrot.lane.b32.xlu1 %v8276_v31, %s6903_s1 }
 0x5f2   :  { %v1568_v53 = vpop.permute.xlu0 %1567 }
 0x5f3   :  { %5023 = vmatmul.mubr.msk.f32.gmra.mrb[50].mxu1 %vm581_vm0, %v1568_v53 }
 0x5f4   :  { %1705 = vmatprep.mubr.f32.mxu1 %v9922_v56 }
 0x5f5   :  { %3629 = vrot.lane.b32.xlu1 %v7962_v51, %s6903_s1 }
 0x5f6   :  { %v1570_v58 = vpop.permute.xlu0 %1569 }
 0x5f7   :  { %5024 = vmatmul.mubr.msk.f32.gmra.mrb[52].mxu1 %vm581_vm0, %v1570_v58  ;;  %v9981_v58 = vld [vmem:[#allocation54_spill] sm:$0xff] }
 0x5f8   :  { %1711 = vmatprep.mubr.f32.mxu1 %v9922_v56 }
 0x5f9   :  { %3631 = vrot.lane.b32.xlu1 %v7969_v37, %s6903_s1 }
 0x5fa   :  { %v1572_v40 = vpop.permute.xlu0 %1571 }
 0x5fb   :  { %5025 = vmatmul.mubr.msk.f32.gmra.mrb[54].mxu1 %vm581_vm0, %v1572_v40 }
 0x5fc   :  { %1717 = vmatprep.mubr.f32.mxu1 %v9922_v56 }
 0x5fd   :  { %3633 = vrot.lane.b32.xlu1 %v7979_v54, %s6903_s1 }
 0x5fe   :  { %v1574_v50 = vpop.permute.xlu0 %1573 }
 0x5ff   :  { %5026 = vmatmul.mubr.msk.f32.gmra.mrb[56].mxu1 %vm581_vm0, %v1574_v50  ;;  %v9982_v50 = vld [vmem:[#allocation55_spill] sm:$0xff] }
 0x600   :  { %1723 = vmatprep.mubr.f32.mxu1 %v9922_v56 }
 0x601   :  { %3635 = vrot.lane.b32.xlu1 %v7986_v5, %s6903_s1 }
 0x602   :  { %v1576_v51 = vpop.permute.xlu0 %1575 }
 0x603   :  { %5027 = vmatmul.mubr.msk.f32.gmra.mrb[58].mxu1 %vm581_vm0, %v1576_v51  ;;  %v9983_v51 = vld [vmem:[#allocation56_spill] sm:$0xff] }
 0x604   :  { %1729 = vmatprep.mubr.f32.mxu1 %v9922_v56 }
 0x605   :  { %3637 = vrot.lane.b32.xlu1 %v7996_v41, %s6903_s1 }
 0x606   :  { %v1578_v37 = vpop.permute.xlu0 %1577 }
 0x607   :  { %5028 = vmatmul.mubr.msk.f32.gmra.mrb[60].mxu1 %vm581_vm0, %v1578_v37  ;;  %v9984_v37 = vld [vmem:[#allocation57_spill] sm:$0xff] }
 0x608   :  { %1735 = vmatprep.mubr.f32.mxu1 %v9922_v56 }
 0x609   :  { %3639 = vrot.lane.b32.xlu1 %v8010_v48, %s6903_s1 }
 0x60a   :  { %v1580_v54 = vpop.permute.xlu0 %1579 }
 0x60b   :  { %5029 = vmatmul.mubr.msk.f32.gmra.mrb[62].mxu1 %vm581_vm0, %v1580_v54 }
 0x60c   :  { %1741 = vmatprep.mubr.f32.mxu1 %v9922_v56 }
 0x60d   :  { %3641 = vrot.lane.b32.xlu1 %v8025_v44, %s6903_s1 }
 0x60e   :  { %v1582_v5 = vpop.permute.xlu0 %1581 }
 0x60f   :  { %5030 = vmatmul.mubr.msk.f32.gmra.mrb[64].mxu1 %vm581_vm0, %v1582_v5  ;;  %v9985_v5 = vld [vmem:[#allocation58_spill] sm:$0xff] }
 0x610   :  { %1747 = vmatprep.mubr.f32.mxu1 %v9922_v56 }
 0x611   :  { %v2988_v41 = vpop.permute.xlu1 %2987  ;;  %3643 = vrot.lane.b32.xlu1 %v8038_v27, %s6903_s1  ;;  %v9973_v27 = vld [vmem:[#allocation40_spill] sm:$0xff] }
 0x612   :  { %5134 = vmatmul.mubr.msk.f32.vlgmr.msra.gmra.mrb[80].mxu0 %vm581_vm0, %v2988_v41  ;;  %v1584_v48 = vpop.permute.xlu0 %1583  ;;  %v9986_v41 = vld [vmem:[#allocation59_spill] sm:$0xff] }
 0x613   :  { %3121 = vmatprep.mubr.f32.mxu0 %v9922_v56  ;;  %5807 = vmatpush1.bf16.msra.mxu0 %v7579_v22 }
 0x614   :  { %5031 = vmatmul.mubr.msk.f32.gmra.mrb[66].mxu1 %vm581_vm0, %v1584_v48  ;;  %5809 = vmatprep.subr.bf16.mxu0 %v7616_v18 }
 0x615   :  { %v2990_v10 = vpop.permute.xlu1 %2989  ;;  %1753 = vmatprep.mubr.f32.mxu1 %v9922_v56  ;;  %3645 = vrot.lane.b32.xlu1 %v8047_v6, %s6903_s1  ;;  %v5199_v6 = vld [vmem:[#allocation9] ss:$0 sm:$0xff] }
 0x616   :  { %5135 = vmatmul.mubr.msk.f32.gmra.mrb[82].mxu0 %vm581_vm0, %v2990_v10  ;;  %v1586_v44 = vpop.permute.xlu0 %1585  ;;  %v9987_v10 = vld [vmem:[#allocation60_spill] sm:$0xff] }
 0x617   :  { %3127 = vmatprep.mubr.f32.mxu0 %v9922_v56  ;;  %5811 = vmatpush1.bf16.msra.mxu0 %v7619_v11 }
 0x618   :  { %5032 = vmatmul.mubr.msk.f32.gmra.mrb[68].mxu1 %vm581_vm0, %v1586_v44  ;;  %5813 = vmatprep.subr.bf16.mxu0 %v9973_v27  ;;  %v9989_v27 = vld [vmem:[#allocation62_spill] sm:$0xff] }
 0x619   :  { %v2992_v22 = vpop.permute.xlu1 %2991  ;;  %1759 = vmatprep.mubr.f32.mxu1 %v9922_v56  ;;  %3647 = vrot.lane.b32.xlu1 %v8056_v9, %s6903_s1 }
 0x61a   :  { %5136 = vmatmul.mubr.msk.f32.gmra.mrb[84].mxu0 %vm581_vm0, %v2992_v22  ;;  %v1588_v18 = vpop.permute.xlu0 %1587  ;;  %v9988_v22 = vld [vmem:[#allocation61_spill] sm:$0xff] }
 0x61b   :  { %3133 = vmatprep.mubr.f32.mxu0 %v9922_v56  ;;  %5815 = vmatpush1.bf16.msra.mxu0 %v9974_v57 }
 0x61c   :  { %5033 = vmatmul.mubr.msk.f32.gmra.mrb[70].mxu1 %vm581_vm0, %v1588_v18  ;;  %5817 = vmatprep.subr.bf16.mxu0 %v9975_v19  ;;  %v9992_v19 = vld [vmem:[#allocation65_spill] sm:$0xff] }
 0x61d   :  { %v2994_v11 = vpop.permute.xlu1 %2993  ;;  %1765 = vmatprep.mubr.f32.mxu1 %v9922_v56  ;;  %3853 = vrot.lane.b32.xlu1 %v5199_v6, %s6903_s1  ;;  %v9990_v6 = vld [vmem:[#allocation63_spill] sm:$0xff] }
 0x61e   :  { %5137 = vmatmul.mubr.msk.f32.gmra.mrb[86].mxu0 %vm581_vm0, %v2994_v11  ;;  %v1590_v9 = vpop.permute.xlu0 %1589  ;;  %v9991_v11 = vld [vmem:[#allocation64_spill] sm:$0xff] }
 0x61f   :  { %3139 = vmatprep.mubr.f32.mxu0 %v9922_v56  ;;  %5819 = vmatpush1.bf16.msra.mxu0 %v9976_v2  ;;  %v9993_v2 = vld [vmem:[#allocation66_spill] sm:$0xff] }
 0x620   :  { %5034 = vmatmul.mubr.msk.f32.gmra.mrb[72].mxu1 %vm581_vm0, %v1590_v9 }
 0x621   :  { %v2996_v46 = vpop.permute.xlu1 %2995  ;;  %1771 = vmatprep.mubr.f32.mxu1 %v9922_v56  ;;  %3649 = vrot.lane.b32.xlu1 %v8066_v43, %s6903_s1 }
 0x622   :  { %5138 = vmatmul.mubr.msk.f32.gmra.mrb[88].mxu0 %vm581_vm0, %v2996_v46  ;;  %v1592_v3 = vpop.permute.xlu0 %1591  ;;  %v9994_v46 = vld [vmem:[#allocation15_spill] sm:$0xff] }
 0x623   :  { %3145 = vmatprep.mubr.f32.mxu0 %v9922_v56 }
 0x624   :  { %5035 = vmatmul.mubr.msk.f32.gmra.mrb[74].mxu1 %vm581_vm0, %v1592_v3  ;;  %v9995_v3 = vld [vmem:[#allocation67_spill] sm:$0xff] }
 0x625   :  { %1777 = vmatprep.mubr.f32.mxu1 %v9922_v56  ;;  %3651 = vrot.lane.b32.xlu1 %v8077_v52, %s6903_s1  ;;  %v9977_v52 = vld [vmem:[#allocation70_spill] sm:$0xff] }
 0x626   :  { %v1594_v32 = vpop.permute.xlu0 %1593 }
 0x628   :  { %v2998_v13 = vpop.permute.xlu1 %2997  ;;  %5036 = vmatmul.mubr.msk.f32.gmra.mrb[76].mxu1 %vm581_vm0, %v1594_v32  ;;  %v9996_v32 = vld [vmem:[#allocation16_spill] sm:$0xff] }
 0x629   :  { %5139 = vmatmul.mubr.msk.f32.gmra.mrb[90].mxu0 %vm581_vm0, %v2998_v13  ;;  %1783 = vmatprep.mubr.f32.mxu1 %v9922_v56  ;;  %v9997_v13 = vld [vmem:[#allocation17_spill] sm:$0xff] }
 0x62a   :  { %3151 = vmatprep.mubr.f32.mxu0 %v9922_v56  ;;  %3653 = vrot.lane.b32.xlu1 %v8087_v38, %s6903_s1  ;;  %v1596_v43 = vpop.permute.xlu0 %1595  ;;  %v9979_v38 = vld [vmem:[#allocation71_spill] sm:$0xff] }
 0x62c   :  { %5037 = vmatmul.mubr.msk.f32.gmra.mrb[78].mxu1 %vm581_vm0, %v1596_v43  ;;  %v9998_v43 = vld [vmem:[#allocation18_spill] sm:$0xff] }
 0x62d   :  { %1902 = vmatprep.mubr.f32.mxu1 %v9922_v56 }
 0x62e   :  { %3655 = vrot.lane.b32.xlu1 %v9977_v52, %s6903_s1  ;;  %v9999_v52 = vld [vmem:[#allocation19_spill] sm:$0xff] }
 0x630   :  { %v3000_v25 = vpop.permute.xlu1 %2999  ;;  %5038 = vmatmul.mubr.msk.f32.vlgmr.msra.gmra.mrb[48].mxu1 %vm581_vm0, %v9978_v26 }
 0x631   :  { %5140 = vmatmul.mubr.msk.f32.gmra.mrb[92].mxu0 %vm581_vm0, %v3000_v25  ;;  %1908 = vmatprep.mubr.f32.mxu1 %v9922_v56  ;;  %v10000_v25 = vld [vmem:[#allocation20_spill] sm:$0xff] }
 0x632   :  { %3157 = vmatprep.mubr.f32.mxu0 %v9922_v56  ;;  %3657 = vrot.lane.b32.xlu1 %v9979_v38, %s6903_s1  ;;  %v10001_v38 = vld [vmem:[#allocation21_spill] sm:$0xff] }
 0x634   :  { %5039 = vmatmul.mubr.msk.f32.gmra.mrb[50].mxu1 %vm581_vm0, %v9980_v29 }
 0x635   :  { %1914 = vmatprep.mubr.f32.mxu1 %v9922_v56 }
 0x636   :  { %v3002_v53 = vpop.permute.xlu1 %3001  ;;  %3659 = vrot.lane.b32.xlu1 %v8113_v8, %s6903_s1 }
 0x637   :  { %5141 = vmatmul.mubr.msk.f32.gmra.mrb[94].mxu0 %vm581_vm0, %v3002_v53  ;;  %v10002_v53 = vld [vmem:[#allocation22_spill] sm:$0xff] }
 0x638   :  { %3163 = vmatprep.mubr.f32.mxu0 %v9922_v56  ;;  %5040 = vmatmul.mubr.msk.f32.gmra.mrb[52].mxu1 %vm581_vm0, %v9981_v58 }
 0x639   :  { %1920 = vmatprep.mubr.f32.mxu1 %v9922_v56 }
 0x63c   :  { %v3004_v40 = vpop.permute.xlu1 %3003  ;;  %5041 = vmatmul.mubr.msk.f32.gmra.mrb[54].mxu1 %vm581_vm0, %v9982_v50 }
 0x63d   :  { %5142 = vmatmul.mubr.msk.f32.gmra.mrb[96].mxu0 %vm581_vm0, %v3004_v40  ;;  %1926 = vmatprep.mubr.f32.mxu1 %v9922_v56  ;;  %v10003_v40 = vld [vmem:[#allocation23_spill] sm:$0xff] }
 0x63e   :  { %3169 = vmatprep.mubr.f32.mxu0 %v9922_v56 }
 0x640   :  { %v3006_v8 = vpop.permute.xlu1 %3005  ;;  %5042 = vmatmul.mubr.msk.f32.gmra.mrb[56].mxu1 %vm581_vm0, %v9983_v51 }
 0x641   :  { %5143 = vmatmul.mubr.msk.f32.gmra.mrb[98].mxu0 %vm581_vm0, %v3006_v8  ;;  %1932 = vmatprep.mubr.f32.mxu1 %v9922_v56  ;;  %v10004_v8 = vld [vmem:[#allocation24_spill] sm:$0xff] }
 0x642   :  { %3175 = vmatprep.mubr.f32.mxu0 %v9922_v56 }
 0x644   :  { %5043 = vmatmul.mubr.msk.f32.gmra.mrb[58].mxu1 %vm581_vm0, %v9984_v37 }
 0x645   :  { %1938 = vmatprep.mubr.f32.mxu1 %v9922_v56  ;;  %v3008_v54 = vpop.permute.xlu1 %3007 }
 0x646   :  { %5144 = vmatmul.mubr.msk.f32.gmra.mrb[100].mxu0 %vm581_vm0, %v3008_v54  ;;  %v10005_v54 = vld [vmem:[#allocation25_spill] sm:$0xff] }
 0x647   :  { %3181 = vmatprep.mubr.f32.mxu0 %v9922_v56 }
 0x648   :  { %5044 = vmatmul.mubr.msk.f32.gmra.mrb[60].mxu1 %vm581_vm0, %v9985_v5 }
 0x649   :  { %1944 = vmatprep.mubr.f32.mxu1 %v9922_v56 }
 0x64c   :  { %5045 = vmatmul.mubr.msk.f32.gmra.mrb[62].mxu1 %vm581_vm0, %v9986_v41 }
 0x64d   :  { %1950 = vmatprep.mubr.f32.mxu1 %v9922_v56  ;;  %v3010_v48 = vpop.permute.xlu1 %3009 }
 0x64e   :  { %5145 = vmatmul.mubr.msk.f32.gmra.mrb[102].mxu0 %vm581_vm0, %v3010_v48  ;;  %v10006_v48 = vld [vmem:[#allocation26_spill] sm:$0xff] }
 0x64f   :  { %3187 = vmatprep.mubr.f32.mxu0 %v9922_v56 }
 0x650   :  { %5046 = vmatmul.mubr.msk.f32.gmra.mrb[64].mxu1 %vm581_vm0, %v9987_v10  ;;  %v10012_v10 = vld [vmem:[#allocation32_spill] sm:$0xff] }
 0x651   :  { %1956 = vmatprep.mubr.f32.mxu1 %v9922_v56 }
 0x653   :  { %v3012_v44 = vpop.permute.xlu1 %3011 }
 0x654   :  { %5047 = vmatmul.mubr.msk.f32.gmra.mrb[66].mxu1 %vm581_vm0, %v9988_v22  ;;  %5146 = vmatmul.mubr.msk.f32.gmra.mrb[104].mxu0 %vm581_vm0, %v3012_v44  ;;  %v10007_v44 = vld [vmem:[#allocation27_spill] sm:$0xff] }
 0x655   :  { %1962 = vmatprep.mubr.f32.mxu1 %v9922_v56  ;;  %3193 = vmatprep.mubr.f32.mxu0 %v9922_v56 }
 0x658   :  { %5048 = vmatmul.mubr.msk.f32.gmra.mrb[68].mxu1 %vm581_vm0, %v9989_v27  ;;  %v3014_v18 = vpop.permute.xlu1 %3013 }
 0x659   :  { %1968 = vmatprep.mubr.f32.mxu1 %v9922_v56  ;;  %5147 = vmatmul.mubr.msk.f32.gmra.mrb[106].mxu0 %vm581_vm0, %v3014_v18  ;;  %v10008_v18 = vld [vmem:[#allocation28_spill] sm:$0xff] }
 0x65a   :  { %3199 = vmatprep.mubr.f32.mxu0 %v9922_v56 }
 0x65c   :  { %5049 = vmatmul.mubr.msk.f32.gmra.mrb[70].mxu1 %vm581_vm0, %v9990_v6  ;;  %v3016_v57 = vpop.permute.xlu1 %3015 }
 0x65d   :  { %1974 = vmatprep.mubr.f32.mxu1 %v9922_v56  ;;  %5148 = vmatmul.mubr.msk.f32.gmra.mrb[108].mxu0 %vm581_vm0, %v3016_v57  ;;  %v10009_v57 = vld [vmem:[#allocation29_spill] sm:$0xff] }
 0x65e   :  { %3205 = vmatprep.mubr.f32.mxu0 %v9922_v56 }
 0x660   :  { %5050 = vmatmul.mubr.msk.f32.gmra.mrb[72].mxu1 %vm581_vm0, %v9991_v11 }
 0x661   :  { %1980 = vmatprep.mubr.f32.mxu1 %v9922_v56 }
 0x663   :  { %v3018_v9 = vpop.permute.xlu1 %3017 }
 0x664   :  { %5051 = vmatmul.mubr.msk.f32.gmra.mrb[74].mxu1 %vm581_vm0, %v9992_v19  ;;  %5149 = vmatmul.mubr.msk.f32.gmra.mrb[110].mxu0 %vm581_vm0, %v3018_v9  ;;  %v10010_v9 = vld [vmem:[#allocation30_spill] sm:$0xff] }
 0x665   :  { %1986 = vmatprep.mubr.f32.mxu1 %v9922_v56  ;;  %3276 = vmatprep.mubr.f32.mxu0 %v9922_v56 }
 0x668   :  { %5052 = vmatmul.mubr.msk.f32.gmra.mrb[76].mxu1 %vm581_vm0, %v9993_v2  ;;  %5150 = vmatmul.mubr.msk.f32.vlgmr.msra.gmra.mrb[80].mxu0 %vm581_vm0, %v9994_v46  ;;  %v10011_v2 = vld [vmem:[#allocation31_spill] sm:$0xff] }
 0x669   :  { %1992 = vmatprep.mubr.f32.mxu1 %v9922_v56  ;;  %3282 = vmatprep.mubr.f32.mxu0 %v9922_v56 }
 0x66c   :  { %5053 = vmatmul.mubr.msk.f32.gmra.mrb[78].mxu1 %vm581_vm0, %v9995_v3  ;;  %5151 = vmatmul.mubr.msk.f32.gmra.mrb[82].mxu0 %vm581_vm0, %v9996_v32 }
 0x66d   :  { %3288 = vmatprep.mubr.f32.mxu0 %v9922_v56 }
 0x670   :  { %5152 = vmatmul.mubr.msk.f32.gmra.mrb[84].mxu0 %vm581_vm0, %v9997_v13 }
 0x671   :  { %3294 = vmatprep.mubr.f32.mxu0 %v9922_v56 }
 0x674   :  { %5153 = vmatmul.mubr.msk.f32.gmra.mrb[86].mxu0 %vm581_vm0, %v9998_v43 }
 0x675   :  { %3300 = vmatprep.mubr.f32.mxu0 %v9922_v56 }
 0x678   :  { %5154 = vmatmul.mubr.msk.f32.gmra.mrb[88].mxu0 %vm581_vm0, %v9999_v52 }
 0x679   :  { %3306 = vmatprep.mubr.f32.mxu0 %v9922_v56 }
 0x67c   :  { %5155 = vmatmul.mubr.msk.f32.gmra.mrb[90].mxu0 %vm581_vm0, %v10000_v25 }
 0x67d   :  { %3312 = vmatprep.mubr.f32.mxu0 %v9922_v56 }
 0x680   :  { %5156 = vmatmul.mubr.msk.f32.gmra.mrb[92].mxu0 %vm581_vm0, %v10001_v38 }
 0x681   :  { %3318 = vmatprep.mubr.f32.mxu0 %v9922_v56 }
 0x684   :  { %5157 = vmatmul.mubr.msk.f32.gmra.mrb[94].mxu0 %vm581_vm0, %v10002_v53 }
 0x685   :  { %3324 = vmatprep.mubr.f32.mxu0 %v9922_v56 }
 0x688   :  { %5158 = vmatmul.mubr.msk.f32.gmra.mrb[96].mxu0 %vm581_vm0, %v10003_v40 }
 0x689   :  { %3330 = vmatprep.mubr.f32.mxu0 %v9922_v56 }
 0x68c   :  { %5159 = vmatmul.mubr.msk.f32.gmra.mrb[98].mxu0 %vm581_vm0, %v10004_v8 }
 0x68d   :  { %3336 = vmatprep.mubr.f32.mxu0 %v9922_v56 }
 0x690   :  { %5160 = vmatmul.mubr.msk.f32.gmra.mrb[100].mxu0 %vm581_vm0, %v10005_v54 }
 0x691   :  { %3342 = vmatprep.mubr.f32.mxu0 %v9922_v56 }
 0x694   :  { %5161 = vmatmul.mubr.msk.f32.gmra.mrb[102].mxu0 %vm581_vm0, %v10006_v48 }
 0x695   :  { %3348 = vmatprep.mubr.f32.mxu0 %v9922_v56 }
 0x698   :  { %5162 = vmatmul.mubr.msk.f32.gmra.mrb[104].mxu0 %vm581_vm0, %v10007_v44 }
 0x699   :  { %3354 = vmatprep.mubr.f32.mxu0 %v9922_v56 }
 0x69c   :  { %5163 = vmatmul.mubr.msk.f32.gmra.mrb[106].mxu0 %vm581_vm0, %v10008_v18 }
 0x69d   :  { %3360 = vmatprep.mubr.f32.mxu0 %v9922_v56 }
 0x6a0   :  { %5164 = vmatmul.mubr.msk.f32.gmra.mrb[108].mxu0 %vm581_vm0, %v10009_v57 }
 0x6a1   :  { %3366 = vmatprep.mubr.f32.mxu0 %v9922_v56 }
 0x6a4   :  { %5165 = vmatmul.mubr.msk.f32.gmra.mrb[110].mxu0 %vm581_vm0, %v10010_v9 }
 0x703   :  { %v1904_v3 = vpop.f32.mrb[48].mxu1 }
 0x704   :  { %v1999_v19 = vadd.f32 %v1904_v3, %v10011_v2  ;;  %v1906_v11 = vpop.f32.mrb[49].mxu1 }
 0x705   :  { %v8480_v9 = vadd.f32 %v1906_v11, %v10012_v10 }
 0x706   :  { %v5054_v44 = vmul.f32 -1.442695, %v1999_v19 }
 0x707   :  { %v1910_v6 = vpop.f32.mrb[50].mxu1 }
 0x708   :  { %6298 = vpow2.f32 %v5054_v44  ;;  %v2001_v48 = vadd.f32 %v1910_v6, %v10011_v2  ;;  %v1912_v18 = vpop.f32.mrb[51].mxu1 }
 0x70a   :  { %v5055_v27 = vmul.f32 -1.442695, %v2001_v48 }
 0x70b   :  { %v1916_v54 = vpop.f32.mrb[52].mxu1 }
 0x70c   :  { %6300 = vpow2.f32 %v5055_v27  ;;  %v2003_v57 = vadd.f32 %v1916_v54, %v10011_v2  ;;  %v1918_v22 = vpop.f32.mrb[53].mxu1  ;;  %v8485_v27 = vadd.f32 %v1912_v18, %v10012_v10 }
 0x70e   :  { %v5056_v56 = vmul.f32 -1.442695, %v2003_v57 }
 0x70f   :  { %v1922_v8 = vpop.f32.mrb[54].mxu1 }
 0x710   :  { %v2005_v3 = vadd.f32 %v1922_v8, %v10011_v2  ;;  %v1924_v40 = vpop.f32.mrb[55].mxu1  ;;  %6302 = vpow2.f32 %v5056_v56 }
 0x711   :  { %6304 = vtanh.f32 %v8480_v9 }
 0x712   :  { %v6299_v19 = vpop.eup %6298  ;;  %v5057_v44 = vmul.f32 -1.442695, %v2005_v3 }
 0x713   :  { %v2079_v41 = vadd.f32 1.0, %v6299_v19  ;;  %v1928_v6 = vpop.f32.mrb[56].mxu1 }
 0x714   :  { %v1930_v54 = vpop.f32.mrb[57].mxu1  ;;  %v2007_v56 = vadd.f32 %v1928_v6, %v10011_v2 }
 0x715   :  { %6306 = vrcp.f32 %v2079_v41  ;;  %v8534_v26 = vadd.f32 %v1930_v54, %v10012_v10 }
 0x716   :  { %v6301_v48 = vpop.eup %6300  ;;  %6308 = vpow2.f32 %v5057_v44  ;;  %v5058_v38 = vmul.f32 -1.442695, %v2007_v56 }
 0x717   :  { %v2080_v57 = vadd.f32 1.0, %v6301_v48  ;;  %v1934_v11 = vpop.f32.mrb[58].mxu1  ;;  %6310 = vtanh.f32 %v8485_v27 }
 0x718   :  { %v1936_v8 = vpop.f32.mrb[59].mxu1  ;;  %v2009_v18 = vadd.f32 %v1934_v11, %v10011_v2 }
 0x719   :  { %6312 = vrcp.f32 %v2080_v57  ;;  %v8498_v57 = vadd.f32 %v1918_v22, %v10012_v10 }
 0x71a   :  { %v6303_v19 = vpop.eup %6302  ;;  %6314 = vpow2.f32 %v5058_v38  ;;  %v5059_v52 = vmul.f32 -1.442695, %v2009_v18  ;;  %v10013_v18 = vld [vmem:[#allocation33_spill] sm:$0xff] }
 0x71b   :  { %v1940_v3 = vpop.f32.mrb[60].mxu1  ;;  %v6305_v5 = vpop.eup %6304  ;;  %v2081_v41 = vadd.f32 1.0, %v6303_v19 }
 0x71c   :  { %v8489_v53 = vpop.f32.mrb[61].mxu1  ;;  %v2011_v38 = vadd.f32 %v1940_v3, %v10011_v2 }
 0x71d   :  { %6316 = vrcp.f32 %v2081_v41  ;;  %v8574_v17 = vadd.f32 %v8489_v53, %v10012_v10 }
 0x71e   :  { %6318 = vtanh.f32 %v8498_v57 }
 0x71f   :  { %v8492_v37 = vpop.eup %6306  ;;  %v1946_v44 = vpop.f32.mrb[62].mxu1  ;;  %6320 = vpow2.f32 %v5059_v52  ;;  %v5060_v52 = vmul.f32 -1.442695, %v2011_v38 }
 0x720   :  { %v6309_v48 = vpop.eup %6308  ;;  %v8494_v25 = vpop.f32.mrb[63].mxu1  ;;  %v2319_v51 = vmul.f32 %v8492_v37, %v6305_v5  ;;  %v8508_v5 = vadd.f32 %v1924_v40, %v10012_v10 }
 0x721   :  { %v6311_v6 = vpop.eup %6310  ;;  %v2082_v11 = vadd.f32 1.0, %v6309_v48 }
 0x722   :  { %2351 = vrot.lane.b32.xlu0 %v2319_v51, %s6903_s1 }
 0x723   :  { %v8501_v56 = vpop.eup %6312  ;;  %v1952_v50 = vpop.f32.mrb[64].mxu1  ;;  %6322 = vrcp.f32 %v2082_v11  ;;  %v10014_v11 = vld [vmem:[#allocation34_spill] sm:$0xff] }
 0x724   :  { %v8503_v19 = vpop.f32.mrb[65].mxu1  ;;  %v2320_v43 = vmul.f32 %v8501_v56, %v6311_v6  ;;  %6324 = vtanh.f32 %v8508_v5  ;;  %v6315_v48 = vpop.eup %6314 }
 0x725   :  { %v2083_v13 = vadd.f32 1.0, %v6315_v48  ;;  %6326 = vpow2.f32 %v5060_v52 }
 0x726   :  { %2353 = vrot.lane.b32.xlu0 %v2320_v43, %s6903_s1  ;;  %v2013_v43 = vadd.f32 %v1946_v44, %v10011_v2 }
 0x727   :  { %v1958_v22 = vpop.f32.mrb[66].mxu1  ;;  %v8521_v40 = vpop.eup %6316  ;;  %6328 = vrcp.f32 %v2083_v13  ;;  %v10015_v13 = vld [vmem:[#allocation35_spill] sm:$0xff] }
 0x728   :  { %v8511_v51 = vpop.f32.mrb[67].mxu1  ;;  %v6319_v58 = vpop.eup %6318  ;;  %v5061_v38 = vmul.f32 -1.442695, %v2013_v43  ;;  %6330 = vtanh.f32 %v8534_v26 }
 0x729   :  { %v6321_v3 = vpop.eup %6320 }
 0x72a   :  { %2259 = vrot.lane.b32.xlu0 %v10013_v18, %s6903_s1  ;;  %v2321_v18 = vmul.f32 %v6319_v58, %v8521_v40  ;;  %v8544_v58 = vadd.f32 %v1936_v8, %v10012_v10  ;;  %6332 = vpow2.f32 %v5061_v38 }
 0x72b   :  { %v8517_v41 = vpop.f32.mrb[68].mxu1 }
 0x72c   :  { %v8519_v6 = vpop.f32.mrb[69].mxu1 }
 0x72d   :  { %v8531_v46 = vpop.eup %6322 }
 0x72e   :  { %2261 = vrot.lane.b32.xlu0 %v10014_v11, %s6903_s1  ;;  %v6325_v44 = vpop.eup %6324  ;;  %v2084_v11 = vadd.f32 1.0, %v6321_v3 }
 0x72f   :  { %v8526_v29 = vpop.f32.mrb[70].mxu1  ;;  %v2322_v49 = vmul.f32 %v6325_v44, %v8531_v46  ;;  %v6327_v3 = vpop.eup %6326 }
 0x730   :  { %v8528_v32 = vpop.f32.mrb[71].mxu1  ;;  %6334 = vrcp.f32 %v2084_v11  ;;  %v10016_v11 = vld [vmem:[#allocation36_spill] sm:$0xff]  ;;  %v2085_v7 = vadd.f32 1.0, %v6327_v3 }
 0x731   :  { %6336 = vtanh.f32 %v8544_v58  ;;  %v8558_v44 = vpop.eup %6328 }
 0x732   :  { %2355 = vrot.lane.b32.xlu0 %v2321_v18, %s6903_s1  ;;  %v6331_v24 = vpop.eup %6330  ;;  %6338 = vrcp.f32 %v2085_v7 }
 0x733   :  { %v8537_v48 = vpop.f32.mrb[72].mxu1  ;;  %v2323_v15 = vmul.f32 %v6331_v24, %v8558_v44  ;;  %6340 = vtanh.f32 %v8574_v17  ;;  %v8584_v24 = vadd.f32 %v8494_v25, %v10012_v10  ;;  %v10018_v25 = vld [vmem:[#allocation37_spill] sm:$0xff] }
 0x734   :  { %v8539_v42 = vpop.f32.mrb[73].mxu1 }
 0x736   :  { %2357 = vrot.lane.b32.xlu0 %v2322_v49, %s6903_s1  ;;  %v2015_v49 = vadd.f32 %v1952_v50, %v10011_v2 }
 0x737   :  { %v8547_v54 = vpop.f32.mrb[74].mxu1 }
 0x738   :  { %v8549_v52 = vpop.f32.mrb[75].mxu1  ;;  %v5062_v33 = vmul.f32 -1.442695, %v2015_v49 }
 0x73a   :  { %2263 = vrot.lane.b32.xlu0 %v10015_v13, %s6903_s1  ;;  %v6333_v13 = vpop.eup %6332  ;;  %6342 = vpow2.f32 %v5062_v33 }
 0x73b   :  { %v8554_v43 = vpop.f32.mrb[76].mxu1  ;;  %v3278_v8 = vpop.f32.mrb[80].mxu0  ;;  %v2086_v34 = vadd.f32 1.0, %v6333_v13 }
 0x73c   :  { %v8556_v18 = vpop.f32.mrb[77].mxu1  ;;  %v8560_v38 = vpop.f32.mrb[81].mxu0 }
 0x73d   :  { %v8570_v4 = vpop.eup %6334  ;;  %6344 = vrcp.f32 %v2086_v34 }
 0x73e   :  { %2265 = vrot.lane.b32.xlu0 %v10016_v11, %s6903_s1  ;;  %v2017_v11 = vadd.f32 %v1958_v22, %v10011_v2  ;;  %v6337_v3 = vpop.eup %6336  ;;  %6346 = vtanh.f32 %v8584_v24 }
 0x73f   :  { %v8565_v1 = vpop.f32.mrb[78].mxu1  ;;  %v3284_v0 = vpop.f32.mrb[82].mxu0  ;;  %v2324_v30 = vmul.f32 %v6337_v3, %v8570_v4  ;;  %v2019_v3 = vadd.f32 %v8517_v41, %v10011_v2 }
 0x740   :  { %v8567_v45 = vpop.f32.mrb[79].mxu1  ;;  %v8576_v50 = vpop.f32.mrb[83].mxu0  ;;  %v5063_v49 = vmul.f32 -1.442695, %v2017_v11 }
 0x741   :  { %v8597_v11 = vpop.eup %6338  ;;  %v5064_v34 = vmul.f32 -1.442695, %v2019_v3  ;;  %v8614_v3 = vadd.f32 %v8503_v19, %v10012_v10 }
 0x742   :  { %2359 = vrot.lane.b32.xlu0 %v2323_v15, %s6903_s1  ;;  %v10017_v15 = vld [vmem:[#allocation68_spill] sm:$0xff]  ;;  %6348 = vpow2.f32 %v5063_v49  ;;  %v6341_v31 = vpop.eup %6340 }
 0x743   :  { %v3290_v14 = vpop.f32.mrb[84].mxu0  ;;  %v3373_v22 = vadd.f32 %v3278_v8, %v10017_v15  ;;  %v10019_v8 = vld [vmem:[#allocation38_spill] sm:$0xff]  ;;  %v2325_v41 = vmul.f32 %v6341_v31, %v8597_v11  ;;  %v8620_v31 = vadd.f32 %v8511_v51, %v10012_v10  ;;  %v10020_v51 = vld [vmem:[#allocation69_spill] sm:$0xff] }
 0x744   :  { %v8586_v53 = vpop.f32.mrb[85].mxu0  ;;  %v6343_v35 = vpop.eup %6342 }
 0x745   :  { %v5166_v20 = vmul.f32 -1.442695, %v3373_v22  ;;  %v2021_v22 = vadd.f32 %v8526_v29, %v10011_v2  ;;  %v2087_v23 = vadd.f32 1.0, %v6343_v35  ;;  %v3377_v35 = vadd.f32 %v3290_v14, %v10017_v15 }
 0x746   :  { %2361 = vrot.lane.b32.xlu0 %v2324_v30, %s6903_s1 }
 0x747   :  { %v3296_v7 = vpop.f32.mrb[86].mxu0  ;;  %6350 = vpow2.f32 %v5166_v20  ;;  %v8606_v16 = vpop.eup %6344  ;;  %v5065_v63 = vmul.f32 -1.442695, %v2021_v22 }
 0x748   :  { %v8591_v13 = vpop.f32.mrb[87].mxu0  ;;  %6352 = vpow2.f32 %v5064_v34  ;;  %v6347_v20 = vpop.eup %6346  ;;  %v8633_v34 = vadd.f32 %v8560_v38, %v10020_v51  ;;  %v3379_v38 = vadd.f32 %v3296_v7, %v10017_v15 }
 0x749   :  { %v2326_v29 = vmul.f32 %v6347_v20, %v8606_v16  ;;  %6354 = vtanh.f32 %v8614_v3 }
 0x74a   :  { %2267 = vrot.lane.b32.xlu0 %v10018_v25, %s6903_s1  ;;  %6356 = vrcp.f32 %v2087_v23  ;;  %10021 = vst [vmem:[#allocation40_spill] sm:$0xff] %v8633_v34  ;;  %v5168_v23 = vmul.f32 -1.442695, %v3377_v35  ;;  %v5198_v35 = vld [vmem:[%s9702_s12] ss:$0 sm:$0xff] }
 0x74b   :  { %v3302_v33 = vpop.f32.mrb[88].mxu0  ;;  %6358 = vtanh.f32 %v8620_v31  ;;  %v5169_v7 = vmul.f32 -1.442695, %v3379_v38 }
 0x74c   :  { %v8599_v30 = vpop.f32.mrb[89].mxu0  ;;  %v6349_v60 = vpop.eup %6348  ;;  %6360 = vpow2.f32 %v5065_v63  ;;  %v2025_v63 = vadd.f32 %v8547_v54, %v10011_v2 }
 0x74e   :  { %2269 = vrot.lane.b32.xlu0 %v10019_v8, %s6903_s1  ;;  %v3375_v8 = vadd.f32 %v3284_v0, %v10017_v15  ;;  %v2088_v0 = vadd.f32 1.0, %v6349_v60  ;;  %v10022_v60 = vld [vmem:[#allocation39_spill] sm:$0xff]  ;;  %v5067_v54 = vmul.f32 -1.442695, %v2025_v63 }
 0x74f   :  { %v8603_v49 = vpop.f32.mrb[90].mxu0 }
 0x750   :  { %v8610_v25 = vpop.f32.mrb[91].mxu0  ;;  %v5167_v19 = vmul.f32 -1.442695, %v3375_v8  ;;  %v2023_v8 = vadd.f32 %v8537_v48, %v10011_v2 }
 0x751   :  { %v6351_v20 = vpop.eup %6350 }
 0x752   :  { %2363 = vrot.lane.b32.xlu0 %v2325_v41, %s6903_s1  ;;  %6362 = vpow2.f32 %v5167_v19  ;;  %v3453_v14 = vadd.f32 1.0, %v6351_v20  ;;  %v5066_v48 = vmul.f32 -1.442695, %v2023_v8  ;;  %v10023_v19 = vld [vmem:[#allocation42_spill] sm:$0xff] }
 0x753   :  { %v8622_v55 = vpop.f32.mrb[92].mxu0  ;;  %6364 = vrcp.f32 %v2088_v0 }
 0x754   :  { %v8625_v59 = vpop.f32.mrb[93].mxu0  ;;  %6366 = vtanh.f32 %v8633_v34 }
 0x755   :  { %6368 = vrcp.f32 %v3453_v14  ;;  %v3381_v14 = vadd.f32 %v3302_v33, %v10017_v15 }
 0x756   :  { %2365 = vrot.lane.b32.xlu0 %v2326_v29, %s6903_s1  ;;  %v6353_v29 = vpop.eup %6352  ;;  %6370 = vpow2.f32 %v5168_v23  ;;  %v8665_v23 = vadd.f32 %v8576_v50, %v10020_v51 }
 0x757   :  { %v8635_v41 = vpop.f32.mrb[94].mxu0  ;;  %v2089_v0 = vadd.f32 1.0, %v6353_v29  ;;  %v6355_v20 = vpop.eup %6354  ;;  %6372 = vpow2.f32 %v5066_v48  ;;  %v5170_v50 = vmul.f32 -1.442695, %v3381_v14 }
 0x758   :  { %v8637_v22 = vpop.f32.mrb[95].mxu0  ;;  %v8658_v34 = vpop.eup %6356  ;;  %10025 = vst [vmem:[#allocation46_spill] sm:$0xff] %v8665_v23 }
 0x759   :  { %10024 = vst [vmem:[#allocation41_spill] sm:$0xff] %v8658_v34  ;;  %v6359_v8 = vpop.eup %6358  ;;  %6374 = vrcp.f32 %v2089_v0  ;;  %v2327_v33 = vmul.f32 %v8658_v34, %v6355_v20  ;;  %v8687_v20 = vadd.f32 %v8586_v53, %v10020_v51  ;;  %v2027_v53 = vadd.f32 %v8554_v43, %v10011_v2 }
 0x75a   :  { %2271 = vrot.lane.b32.xlu0 %v10022_v60, %s6903_s1  ;;  %v6361_v29 = vpop.eup %6360  ;;  %6376 = vpow2.f32 %v5169_v7 }
 0x75b   :  { %v8645_v62 = vpop.f32.mrb[96].mxu0  ;;  %6378 = vpow2.f32 %v5067_v54  ;;  %v2090_v21 = vadd.f32 1.0, %v6361_v29  ;;  %10028 = vst [vmem:[#allocation71_spill] sm:$0xff] %v8687_v20 }
 0x75c   :  { %v8649_v47 = vpop.f32.mrb[97].mxu0  ;;  %v6363_v38 = vpop.eup %6362  ;;  %6380 = vtanh.f32 %v8665_v23  ;;  %v3387_v23 = vadd.f32 %v8635_v41, %v10017_v15 }
 0x75d   :  { %v8675_v61 = vpop.eup %6364  ;;  %v3454_v48 = vadd.f32 1.0, %v6363_v38 }
 0x75e   :  { %2273 = vrot.lane.b32.xlu0 %v10023_v19, %s6903_s1  ;;  %v8670_v19 = vadd.f32 %v8519_v6, %v10012_v10  ;;  %10026 = vst [vmem:[#allocation47_spill] sm:$0xff] %v8675_v61  ;;  %v3383_v6 = vadd.f32 %v8603_v49, %v10017_v15  ;;  %v2328_v54 = vmul.f32 %v8675_v61, %v6359_v8 }
 0x75f   :  { %v8656_v60 = vpop.f32.mrb[98].mxu0  ;;  %6382 = vrcp.f32 %v3454_v48  ;;  %v8698_v49 = vadd.f32 %v8528_v32, %v10012_v10  ;;  %v8707_v8 = vadd.f32 %v8539_v42, %v10012_v10  ;;  %v3385_v32 = vadd.f32 %v8622_v55, %v10017_v15 }
 0x760   :  { %v8661_v39 = vpop.f32.mrb[99].mxu0  ;;  %6384 = vtanh.f32 %v8670_v19  ;;  %v5171_v48 = vmul.f32 -1.442695, %v3383_v6 }
 0x761   :  { %10029 = vst [vmem:[#allocation31_spill] sm:$0xff] %v8698_v49  ;;  %6386 = vpow2.f32 %v5170_v50  ;;  %10030 = vst [vmem:[#allocation32_spill] sm:$0xff] %v8707_v8 }
 0x762   :  { %3829 = vrot.lane.b32.xlu0 %v5198_v35, %s6903_s1  ;;  %v6367_v35 = vpop.eup %6366  ;;  %6388 = vrcp.f32 %v2090_v21  ;;  %v8714_v21 = vadd.f32 %v8591_v13, %v10020_v51  ;;  %v5172_v13 = vmul.f32 -1.442695, %v3385_v32 }
 0x763   :  { %v8672_v63 = vpop.f32.mrb[100].mxu0  ;;  %v8683_v0 = vpop.eup %6368  ;;  %6390 = vtanh.f32 %v8687_v20 }
 0x764   :  { %v8677_v12 = vpop.f32.mrb[101].mxu0  ;;  %10027 = vst [vmem:[#allocation70_spill] sm:$0xff] %v8683_v0  ;;  %v8694_v14 = vmul.f32 %v8683_v0, %v6367_v35  ;;  %v6371_v29 = vpop.eup %6370  ;;  %10031 = vst [vmem:[#allocation33_spill] sm:$0xff] %v8714_v21 }
 0x765   :  { %v6373_v50 = vpop.eup %6372 }
 0x766   :  { %2367 = vrot.lane.b32.xlu0 %v2327_v33, %s6903_s1  ;;  %v3455_v33 = vadd.f32 1.0, %v6371_v29  ;;  %v8718_v35 = vpop.eup %6374  ;;  %v10032_v29 = vld [vmem:[#allocation43_spill] sm:$0xff]  ;;  %v2091_v20 = vadd.f32 1.0, %v6373_v50 }
 0x767   :  { %v8690_v7 = vpop.f32.mrb[102].mxu0  ;;  %v6377_v42 = vpop.eup %6376 }
 0x768   :  { %v8700_v38 = vpop.f32.mrb[103].mxu0  ;;  %6392 = vrcp.f32 %v3455_v33  ;;  %v6379_v55 = vpop.eup %6378  ;;  %v3456_v33 = vadd.f32 1.0, %v6377_v42  ;;  %v10035_v42 = vld [vmem:[#allocation44_spill] sm:$0xff] }
 0x769   :  { %6394 = vtanh.f32 %v8698_v49  ;;  %v6381_v0 = vpop.eup %6380 }
 0x76a   :  { %2369 = vrot.lane.b32.xlu0 %v2328_v54, %s6903_s1  ;;  %v5068_v54 = vmul.f32 -1.442695, %v2027_v53  ;;  %6396 = vpow2.f32 %v5171_v48  ;;  %v8731_v34 = vpop.eup %6382  ;;  %v2029_v53 = vadd.f32 %v8565_v1, %v10011_v2  ;;  %v8737_v48 = vadd.f32 %v8599_v30, %v10020_v51 }
 0x76b   :  { %v8716_v43 = vpop.f32.mrb[104].mxu0  ;;  %6398 = vtanh.f32 %v8707_v8  ;;  %10033 = vst [vmem:[#allocation34_spill] sm:$0xff] %v8731_v34  ;;  %v6385_v50 = vpop.eup %6384  ;;  %v8744_v41 = vmul.f32 %v8731_v34, %v6381_v0  ;;  %v5173_v2 = vmul.f32 -1.442695, %v3387_v23  ;;  %v3389_v0 = vadd.f32 %v8645_v62, %v10017_v15 }
 0x76c   :  { %v8721_v6 = vpop.f32.mrb[105].mxu0  ;;  %6400 = vtanh.f32 %v8714_v21  ;;  %10034 = vst [vmem:[#allocation35_spill] sm:$0xff] %v8737_v48  ;;  %v2092_v21 = vadd.f32 1.0, %v6379_v55  ;;  %v8768_v62 = vadd.f32 %v8549_v52, %v10012_v10 }
 0x76d   :  { %6402 = vrcp.f32 %v3456_v33  ;;  %v2329_v33 = vmul.f32 %v6385_v50, %v8718_v35  ;;  %v5174_v34 = vmul.f32 -1.442695, %v3389_v0 }
 0x76e   :  { %2275 = vrot.lane.b32.xlu0 %v10032_v29, %s6903_s1  ;;  %6404 = vpow2.f32 %v5068_v54  ;;  %v6387_v29 = vpop.eup %6386  ;;  %v5069_v54 = vmul.f32 -1.442695, %v2029_v53 }
 0x76f   :  { %v8729_v61 = vpop.f32.mrb[106].mxu0  ;;  %6406 = vpow2.f32 %v5172_v13  ;;  %v8746_v8 = vpop.eup %6388  ;;  %v3457_v1 = vadd.f32 1.0, %v6387_v29 }
 0x770   :  { %v8739_v32 = vpop.f32.mrb[107].mxu0  ;;  %10036 = vst [vmem:[#allocation36_spill] sm:$0xff] %v8746_v8  ;;  %6408 = vrcp.f32 %v2091_v20  ;;  %v6391_v49 = vpop.eup %6390  ;;  %v8760_v20 = vadd.f32 %v8610_v25, %v10020_v51 }
 0x771   :  { %6410 = vtanh.f32 %v8737_v48 }
 0x772   :  { %2277 = vrot.lane.b32.xlu0 %v10035_v42, %s6903_s1  ;;  %v8756_v55 = vpop.eup %6392  ;;  %6412 = vrcp.f32 %v3457_v1  ;;  %10038 = vst [vmem:[#allocation37_spill] sm:$0xff] %v8760_v20 }
 0x773   :  { %v8748_v30 = vpop.f32.mrb[108].mxu0  ;;  %10037 = vst [vmem:[#allocation68_spill] sm:$0xff] %v8756_v55  ;;  %v6395_v23 = vpop.eup %6394  ;;  %6414 = vrcp.f32 %v2092_v21  ;;  %v8764_v13 = vmul.f32 %v8756_v55, %v6391_v49  ;;  %v3391_v49 = vadd.f32 %v8656_v60, %v10017_v15 }
 0x774   :  { %v8754_v42 = vpop.f32.mrb[109].mxu0  ;;  %v6397_v53 = vpop.eup %6396  ;;  %6416 = vpow2.f32 %v5173_v2  ;;  %v2330_v29 = vmul.f32 %v6395_v23, %v8746_v8  ;;  %v8783_v2 = vadd.f32 %v8625_v59, %v10020_v51  ;;  %v3393_v59 = vadd.f32 %v8672_v63, %v10017_v15 }
 0x775   :  { %v6399_v1 = vpop.eup %6398  ;;  %6418 = vpow2.f32 %v5069_v54  ;;  %v3458_v25 = vadd.f32 1.0, %v6397_v53  ;;  %v5175_v55 = vmul.f32 -1.442695, %v3391_v49 }
 0x776   :  { %2371 = vrot.lane.b32.xlu0 %v2329_v33, %s6903_s1  ;;  %v6401_v21 = vpop.eup %6400  ;;  %6420 = vtanh.f32 %v8760_v20  ;;  %10040 = vst [vmem:[#allocation69_spill] sm:$0xff] %v8783_v2  ;;  %v5176_v48 = vmul.f32 -1.442695, %v3393_v59 }
 0x777   :  { %v8770_v50 = vpop.f32.mrb[110].mxu0  ;;  %v8779_v52 = vpop.eup %6402  ;;  %6422 = vrcp.f32 %v3458_v25 }
 0x778   :  { %v8773_v33 = vpop.f32.mrb[111].mxu0  ;;  %10039 = vst [vmem:[#allocation38_spill] sm:$0xff] %v8779_v52  ;;  %v6405_v54 = vpop.eup %6404  ;;  %6424 = vtanh.f32 %v8768_v62  ;;  %v8787_v0 = vmul.f32 %v8779_v52, %v6401_v21  ;;  %v8800_v21 = vadd.f32 %v8637_v22, %v10020_v51  ;;  %v10044_v52 = vld [vmem:[#allocation48_spill] sm:$0xff]  ;;  %v3395_v22 = vadd.f32 %v8690_v7, %v10017_v15 }
 0x779   :  { %v6407_v23 = vpop.eup %6406  ;;  %6426 = vpow2.f32 %v5174_v34 }
 0x77a   :  { %2373 = vrot.lane.b32.xlu0 %v2330_v29, %s6903_s1  ;;  %v8789_v53 = vpop.eup %6408  ;;  %v3459_v60 = vadd.f32 1.0, %v6407_v23  ;;  %v10041_v29 = vld [vmem:[#allocation45_spill] sm:$0xff]  ;;  %6428 = vtanh.f32 %v8783_v2  ;;  %10043 = vst [vmem:[#allocation42_spill] sm:$0xff] %v8800_v21 }
 0x77b   :  { %v6411_v25 = vpop.eup %6410 }
 0x77c   :  { %v8796_v20 = vpop.eup %6412  ;;  %6430 = vrcp.f32 %v3459_v60  ;;  %v8811_v60 = vadd.f32 %v8556_v18, %v10012_v10 }
 0x77d   :  { %10042 = vst [vmem:[#allocation39_spill] sm:$0xff] %v8796_v20  ;;  %v8802_v34 = vpop.eup %6414  ;;  %v8805_v49 = vmul.f32 %v8796_v20, %v6411_v25  ;;  %6432 = vpow2.f32 %v5175_v55  ;;  %v2331_v25 = vmul.f32 %v8789_v53, %v6399_v1  ;;  %v8821_v55 = vadd.f32 %v8649_v47, %v10020_v51 }
 0x77e   :  { %2279 = vrot.lane.b32.xlu0 %v10041_v29, %s6903_s1  ;;  %v6417_v23 = vpop.eup %6416  ;;  %v2093_v29 = vadd.f32 1.0, %v6405_v54  ;;  %6434 = vtanh.f32 %v8800_v21  ;;  %v5177_v1 = vmul.f32 -1.442695, %v3395_v22  ;;  %v8831_v47 = vadd.f32 %v8567_v45, %v10012_v10 }
 0x77f   :  { %v6419_v2 = vpop.eup %6418  ;;  %v3460_v63 = vadd.f32 1.0, %v6417_v23  ;;  %10046 = vst [vmem:[#allocation44_spill] sm:$0xff] %v8821_v55  ;;  %v5070_v22 = vmul.f32 -1.442695, %v8480_v9  ;;  %v8860_v9 = vadd.f32 %v8677_v12, %v10020_v51  ;;  %v3401_v12 = vadd.f32 %v8748_v30, %v10017_v15 }
 0x780   :  { %v6421_v8 = vpop.eup %6420  ;;  %v2094_v23 = vadd.f32 1.0, %v6419_v2  ;;  %v8838_v2 = vpop.permute.xlu0 %2255 }
 0x781   :  { %v8817_v54 = vpop.eup %6422  ;;  %6436 = vrcp.f32 %v3460_v63  ;;  %10051 = vst [vmem:[#allocation101_spill] sm:$0xff] %v8860_v9 }
 0x782   :  { %2281 = vrot.lane.b32.xlu0 %v10044_v52, %s6903_s1  ;;  %10045 = vst [vmem:[#allocation43_spill] sm:$0xff] %v8817_v54  ;;  %v6425_v52 = vpop.eup %6424  ;;  %6438 = vrcp.f32 %v2093_v29  ;;  %v8825_v18 = vmul.f32 %v8817_v54, %v6421_v8  ;;  %v3397_v8 = vadd.f32 %v8716_v43, %v10017_v15 }
 0x783   :  { %v6427_v59 = vpop.eup %6426  ;;  %6440 = vpow2.f32 %v5176_v48  ;;  %v2332_v63 = vmul.f32 %v6425_v52, %v8802_v34  ;;  %v8842_v48 = vadd.f32 %v8661_v39, %v10020_v51  ;;  %v3399_v39 = vadd.f32 %v8729_v61, %v10017_v15 }
 0x784   :  { %6442 = vtanh.f32 %v8811_v60  ;;  %v3461_v7 = vadd.f32 1.0, %v6427_v59  ;;  %v6429_v20 = vpop.eup %6428  ;;  %v5071_v59 = vmul.f32 -1.442695, %v8485_v27 }
 0x785   :  { %6444 = vtanh.f32 %v8821_v55  ;;  %10048 = vst [vmem:[#allocation48_spill] sm:$0xff] %v8842_v48 }
 0x786   :  { %2375 = vrot.lane.b32.xlu0 %v2331_v25, %s6903_s1  ;;  %v8836_v29 = vpop.eup %6430  ;;  %6446 = vrcp.f32 %v3461_v7  ;;  %v5178_v25 = vmul.f32 -1.442695, %v3397_v8 }
 0x787   :  { %10047 = vst [vmem:[#allocation45_spill] sm:$0xff] %v8836_v29  ;;  %6448 = vrcp.f32 %v2094_v23  ;;  %v8846_v45 = vmul.f32 %v8836_v29, %v6429_v20  ;;  %v6433_v10 = vpop.eup %6432  ;;  %v10049_v23 = vld [vmem:[#allocation49_spill] sm:$0xff] }
 0x788   :  { %6450 = vpow2.f32 %v5177_v1  ;;  %v3462_v43 = vadd.f32 1.0, %v6433_v10  ;;  %v6435_v52 = vpop.eup %6434  ;;  %v2258_v1 = vpop.permute.xlu0 %2257  ;;  %v5179_v10 = vmul.f32 -1.442695, %v3399_v39 }
 0x789   :  { %6452 = vtanh.f32 %v8831_v47 }
 0x78a   :  { %2377 = vrot.lane.b32.xlu0 %v2332_v63, %s6903_s1  ;;  %6454 = vtanh.f32 %v8842_v48 }
 0x78b   :  { %v8856_v20 = vpop.eup %6436  ;;  %6456 = vrcp.f32 %v3462_v43 }
 0x78c   :  { %10050 = vst [vmem:[#allocation49_spill] sm:$0xff] %v8856_v20  ;;  %v8862_v7 = vpop.eup %6438  ;;  %6458 = vpow2.f32 %v5070_v22  ;;  %v8865_v27 = vmul.f32 %v8856_v20, %v6435_v52  ;;  %v8876_v22 = vadd.f32 %v8700_v38, %v10020_v51  ;;  %v5180_v20 = vmul.f32 -1.442695, %v3401_v12 }
 0x78d   :  { %v6441_v63 = vpop.eup %6440  ;;  %6460 = vpow2.f32 %v5178_v25  ;;  %v3403_v38 = vadd.f32 %v8770_v50, %v10017_v15 }
 0x78e   :  { %2283 = vrot.lane.b32.xlu0 %v10049_v23, %s6903_s1  ;;  %v6443_v61 = vpop.eup %6442  ;;  %6462 = vpow2.f32 %v5071_v59  ;;  %v3463_v8 = vadd.f32 1.0, %v6441_v63  ;;  %v10052_v23 = vld [vmem:[#allocation50_spill] sm:$0xff]  ;;  %10054 = vst [vmem:[#allocation102_spill] sm:$0xff] %v8876_v22 }
 0x78f   :  { %v6445_v43 = vpop.eup %6444  ;;  %6464 = vtanh.f32 %v8860_v9  ;;  %v2333_v52 = vmul.f32 %v6443_v61, %v8862_v7 }
 0x790   :  { %v8872_v29 = vpop.eup %6446  ;;  %6466 = vrcp.f32 %v3463_v8 }
 0x791   :  { %10053 = vst [vmem:[#allocation50_spill] sm:$0xff] %v8872_v29  ;;  %v8879_v59 = vpop.eup %6448  ;;  %v8882_v39 = vmul.f32 %v8872_v29, %v6445_v43  ;;  %6468 = vpow2.f32 %v5179_v10  ;;  %v8895_v10 = vadd.f32 %v8721_v6, %v10020_v51 }
 0x792   :  { %2285 = vrot.lane.b32.xlu0 %v10052_v23, %s6903_s1  ;;  %v6451_v63 = vpop.eup %6450  ;;  %v8884_v23 = vpop.permute.xlu1 %3629  ;;  %6470 = vtanh.f32 %v8876_v22 }
 0x793   :  { %10055 = vst [vmem:[#allocation103_spill] sm:$0xff] %v8884_v23  ;;  %v6453_v30 = vpop.eup %6452  ;;  %v3464_v8 = vadd.f32 1.0, %v6451_v63  ;;  %10057 = vst [vmem:[#allocation105_spill] sm:$0xff] %v8895_v10 }
 0x794   :  { %v2352_v25 = vpop.permute.xlu0 %2351  ;;  %v6455_v9 = vpop.eup %6454  ;;  %v2334_v54 = vmul.f32 %v6453_v30, %v8879_v59  ;;  %v5181_v30 = vmul.f32 -1.442695, %v3403_v38 }
 0x795   :  { %v8891_v43 = vpop.eup %6456  ;;  %6472 = vrcp.f32 %v3464_v8 }
 0x796   :  { %2379 = vrot.lane.b32.xlu0 %v2333_v52, %s6903_s1  ;;  %10056 = vst [vmem:[#allocation104_spill] sm:$0xff] %v8891_v43  ;;  %v6459_v52 = vpop.eup %6458  ;;  %v8899_v12 = vmul.f32 %v8891_v43, %v6455_v9  ;;  %6474 = vpow2.f32 %v5180_v20  ;;  %v8901_v15 = vpop.permute.xlu1 %3631  ;;  %v2303_v20 = vmul.f32 %v8492_v37, %v8838_v2 }
 0x797   :  { %v6461_v63 = vpop.eup %6460  ;;  %10058 = vst [vmem:[#allocation106_spill] sm:$0xff] %v8901_v15  ;;  %v2191_v48 = vadd.f32 1.0, %v6459_v52  ;;  %6476 = vtanh.f32 %v8895_v10  ;;  %v2304_v52 = vmul.f32 %v8501_v56, %v2258_v1 }
 0x798   :  { %v2354_v61 = vpop.permute.xlu0 %2353  ;;  %v6463_v29 = vpop.eup %6462  ;;  %v3465_v50 = vadd.f32 1.0, %v6461_v63 }
 0x799   :  { %v6465_v8 = vpop.eup %6464  ;;  %v2192_v63 = vadd.f32 1.0, %v6463_v29  ;;  %v8927_v29 = vadd.f32 %v8754_v42, %v10020_v51  ;;  %v8941_v42 = vadd.f32 %v8773_v33, %v10020_v51 }
 0x79a   :  { %2381 = vrot.lane.b32.xlu0 %v2334_v54, %s6903_s1  ;;  %v8906_v6 = vpop.eup %6466  ;;  %6478 = vrcp.f32 %v3465_v50  ;;  %v8910_v54 = vadd.f32 %v8739_v32, %v10020_v51  ;;  %v2399_v50 = vadd.f32 %v2352_v25, %v2303_v20  ;;  %v8920_v21 = vpop.permute.xlu1 %3633  ;;  %v2400_v32 = vadd.f32 %v2354_v61, %v2304_v52 }
 0x79b   :  { %10059 = vst [vmem:[#allocation107_spill] sm:$0xff] %v8906_v6  ;;  %v8915_v9 = vmul.f32 %v8906_v6, %v6465_v8  ;;  %v6469_v38 = vpop.eup %6468  ;;  %6480 = vpow2.f32 %v5181_v30  ;;  %10061 = vst [vmem:[#allocation109_spill] sm:$0xff] %v8920_v21 }
 0x79c   :  { %v8903_v22 = vpop.permute.xlu0 %2259  ;;  %10060 = vst [vmem:[#allocation108_spill] sm:$0xff] %v8910_v54  ;;  %6482 = vrcp.f32 %v2191_v48  ;;  %v3466_v10 = vadd.f32 1.0, %v6469_v38  ;;  %v6471_v55 = vpop.eup %6470  ;;  %10063 = vst [vmem:[#allocation111_spill] sm:$0xff] %v8927_v29 }
 0x79d   :  { %6484 = vtanh.f32 %v8910_v54  ;;  %10066 = vst [vmem:[#allocation114_spill] sm:$0xff] %v8941_v42 }
 0x79e   :  { %6486 = vrcp.f32 %v3466_v10  ;;  %v8937_v10 = vpop.permute.xlu1 %3635 }
 0x79f   :  { %v8923_v37 = vpop.eup %6472  ;;  %6488 = vrcp.f32 %v2192_v63  ;;  %10065 = vst [vmem:[#allocation113_spill] sm:$0xff] %v8937_v10 }
 0x7a0   :  { %v8918_v43 = vpop.permute.xlu0 %2261  ;;  %10062 = vst [vmem:[#allocation110_spill] sm:$0xff] %v8923_v37  ;;  %v8932_v2 = vmul.f32 %v8923_v37, %v6471_v55  ;;  %v6475_v48 = vpop.eup %6474  ;;  %6490 = vtanh.f32 %v2399_v50 }
 0x7a1   :  { %v3467_v1 = vadd.f32 1.0, %v6475_v48  ;;  %6492 = vtanh.f32 %v2400_v32  ;;  %v6477_v25 = vpop.eup %6476 }
 0x7a2   :  { %6494 = vtanh.f32 %v8927_v29  ;;  %v8953_v48 = vpop.permute.xlu1 %3637 }
 0x7a3   :  { %6496 = vrcp.f32 %v3467_v1  ;;  %10068 = vst [vmem:[#allocation116_spill] sm:$0xff] %v8953_v48 }
 0x7a4   :  { %v8929_v56 = vpop.permute.xlu0 %2355  ;;  %v8935_v61 = vpop.eup %6478  ;;  %6498 = vtanh.f32 %v8941_v42 }
 0x7a5   :  { %10064 = vst [vmem:[#allocation112_spill] sm:$0xff] %v8935_v61  ;;  %v8946_v55 = vmul.f32 %v8935_v61, %v6477_v25  ;;  %v6481_v8 = vpop.eup %6480 }
 0x7a6   :  { %v6483_v20 = vpop.eup %6482  ;;  %v3468_v38 = vadd.f32 1.0, %v6481_v8 }
 0x7a7   :  { %v6485_v63 = vpop.eup %6484 }
 0x7a8   :  { %v8943_v30 = vpop.permute.xlu0 %2357  ;;  %v8951_v50 = vpop.eup %6486  ;;  %6500 = vrcp.f32 %v3468_v38 }
 0x7a9   :  { %10067 = vst [vmem:[#allocation115_spill] sm:$0xff] %v8951_v50  ;;  %v6489_v32 = vpop.eup %6488  ;;  %v8956_v51 = vmul.f32 %v8951_v50, %v6485_v63  ;;  %v8967_v38 = vpop.permute.xlu1 %3639 }
 0x7aa   :  { %v6491_v33 = vpop.eup %6490  ;;  %10070 = vst [vmem:[#allocation118_spill] sm:$0xff] %v8967_v38 }
 0x7ab   :  { %v6493_v1 = vpop.eup %6492  ;;  %v2431_v61 = vmul.f32 %v6491_v33, %v6483_v20 }
 0x7ac   :  { %v8949_v52 = vpop.permute.xlu0 %2263  ;;  %v6495_v8 = vpop.eup %6494  ;;  %v8960_v37 = vmul.f32 %v6493_v1, %v6489_v32 }
 0x7ad   :  { %v8962_v42 = vpop.eup %6496  ;;  %v8978_v20 = vpop.permute.xlu1 %3641 }
 0x7ae   :  { %10069 = vst [vmem:[#allocation117_spill] sm:$0xff] %v8962_v42  ;;  %v8965_v6 = vmul.f32 %v8962_v42, %v6495_v8  ;;  %v6499_v54 = vpop.eup %6498  ;;  %10072 = vst [vmem:[#allocation120_spill] sm:$0xff] %v8978_v20 }
 0x7b0   :  { %v8958_v25 = vpop.permute.xlu0 %2265 }
 0x7b1   :  { %v8982_v33 = vpop.permute.xlu1 %3643 }
 0x7b2   :  { %v8971_v63 = vpop.eup %6500  ;;  %10073 = vst [vmem:[#allocation121_spill] sm:$0xff] %v8982_v33 }
 0x7b3   :  { %10071 = vst [vmem:[#allocation119_spill] sm:$0xff] %v8971_v63  ;;  %v8976_v48 = vmul.f32 %v8971_v63, %v6499_v54 }
 0x7b4   :  { %v8969_v29 = vpop.permute.xlu0 %2359 }
 0x7b5   :  { %v8988_v42 = vpop.permute.xlu1 %3645 }
 0x7b8   :  { %v8973_v50 = vpop.permute.xlu0 %2361 }
 0x7b9   :  { %v8992_v10 = vpop.permute.xlu1 %3647 }
 0x7ba   :  { %10074 = vst [vmem:[#allocation122_spill] sm:$0xff] %v8992_v10 }
 0x7bc   :  { %v8980_v32 = vpop.permute.xlu0 %2267 }
 0x7bd   :  { %v8998_v63 = vpop.permute.xlu1 %3853 }
 0x7be   :  { %v4038_v15 = vmul.f32 %v8998_v63, %v8171_v36 }
 0x7c0   :  { %v8984_v1 = vpop.permute.xlu0 %2269 }
 0x7c4   :  { %v8986_v8 = vpop.permute.xlu0 %2363 }
 0x7c8   :  { %v8990_v38 = vpop.permute.xlu0 %2365 }
 0x7cc   :  { %v8994_v21 = vpop.permute.xlu0 %2271 }
 0x7d0   :  { %v8996_v54 = vpop.permute.xlu0 %2273 }
 0x7d4   :  { %v9000_v20 = vpop.permute.xlu0 %3829 }
 0x7d5   :  { %v4022_v33 = vmul.f32 %v9000_v20, %v2431_v61  ;;  %v2308_v61 = vmul.f32 %v8570_v4, %v8958_v25  ;;  %v4023_v25 = vmul.f32 %v9000_v20, %v8960_v37 }
 0x7d7   :  { %v4054_v23 = vadd.f32 %v4038_v15, %v4022_v33  ;;  %v5077_v15 = vmul.f32 -1.442695, %v8584_v24 }
 0x7d8   :  { %v9012_v10 = vpop.permute.xlu0 %2367 }
 0x7d9   :  { %4086 = vrot.lane.b32.xlu1 %v4054_v23, %s6903_s1 }
 0x7dc   :  { %v9018_v36 = vpop.permute.xlu0 %2369 }
 0x7dd   :  { %3725 = vrot.lane.b32.xlu1 %v8694_v14, %s6903_s1 }
 0x7e0   :  { %v9022_v14 = vpop.permute.xlu0 %2275 }
 0x7e1   :  { %3727 = vrot.lane.b32.xlu1 %v8744_v41, %s6903_s1  ;;  %v5072_v41 = vmul.f32 -1.442695, %v8498_v57  ;;  %v5075_v57 = vmul.f32 -1.442695, %v8544_v58  ;;  %v2306_v58 = vmul.f32 %v8531_v46, %v8918_v43  ;;  %v5078_v46 = vmul.f32 -1.442695, %v8614_v3 }
 0x7e2   :  { %v2404_v3 = vadd.f32 %v8973_v50, %v2308_v61 }
 0x7e3   :  { %6502 = vpow2.f32 %v5072_v41 }
 0x7e5   :  { %3729 = vrot.lane.b32.xlu1 %v8764_v13, %s6903_s1  ;;  %v9029_v13 = vpop.permute.xlu0 %2277 }
 0x7e9   :  { %3731 = vrot.lane.b32.xlu1 %v8787_v0, %s6903_s1  ;;  %v5073_v0 = vmul.f32 -1.442695, %v8508_v5  ;;  %v2305_v5 = vmul.f32 %v8521_v40, %v8903_v22  ;;  %v2402_v40 = vadd.f32 %v8943_v30, %v2306_v58  ;;  %v5079_v30 = vmul.f32 -1.442695, %v8620_v31 }
 0x7ea   :  { %v5080_v31 = vmul.f32 -1.442695, %v8670_v19 }
 0x7eb   :  { %6504 = vpow2.f32 %v5073_v0  ;;  %v10075_v0 = vld [vmem:[#allocation31_spill] sm:$0xff] }
 0x7ed   :  { %3733 = vrot.lane.b32.xlu1 %v8805_v49, %s6903_s1  ;;  %v5074_v49 = vmul.f32 -1.442695, %v8534_v26  ;;  %v2401_v26 = vadd.f32 %v8929_v56, %v2305_v5 }
 0x7ef   :  { %6506 = vpow2.f32 %v5074_v49  ;;  %v5081_v49 = vmul.f32 -1.442695, %v10075_v0  ;;  %v10082_v0 = vld [vmem:[#allocation36_spill] sm:$0xff] }
 0x7f0   :  { %6508 = vpow2.f32 %v5075_v57 }
 0x7f1   :  { %3735 = vrot.lane.b32.xlu1 %v8825_v18, %s6903_s1  ;;  %v9035_v18 = vpop.permute.xlu0 %2371 }
 0x7f5   :  { %3737 = vrot.lane.b32.xlu1 %v8846_v45, %s6903_s1  ;;  %v6503_v45 = vpop.eup %6502 }
 0x7f6   :  { %v2193_v23 = vadd.f32 1.0, %v6503_v45  ;;  %v10076_v45 = vld [vmem:[#allocation41_spill] sm:$0xff] }
 0x7f9   :  { %3739 = vrot.lane.b32.xlu1 %v8865_v27, %s6903_s1  ;;  %v5076_v27 = vmul.f32 -1.442695, %v8574_v17 }
 0x7fb   :  { %6510 = vpow2.f32 %v5076_v27 }
 0x7fc   :  { %6512 = vtanh.f32 %v2401_v26 }
 0x7fd   :  { %3741 = vrot.lane.b32.xlu1 %v8882_v39, %s6903_s1  ;;  %v9045_v39 = vpop.permute.xlu0 %2373  ;;  %6514 = vrcp.f32 %v2193_v23 }
 0x7fe   :  { %6516 = vpow2.f32 %v5077_v15 }
 0x7ff   :  { %6518 = vtanh.f32 %v2402_v40 }
 0x801   :  { %3743 = vrot.lane.b32.xlu1 %v8899_v12, %s6903_s1  ;;  %v6505_v12 = vpop.eup %6504  ;;  %v9054_v17 = vpop.permute.xlu0 %2279 }
 0x802   :  { %v2194_v22 = vadd.f32 1.0, %v6505_v12  ;;  %v6507_v56 = vpop.eup %6506  ;;  %v10078_v12 = vld [vmem:[#allocation32_spill] sm:$0xff] }
 0x803   :  { %v6509_v43 = vpop.eup %6508  ;;  %v5082_v15 = vmul.f32 -1.442695, %v10078_v12  ;;  %v10084_v12 = vld [vmem:[#allocation91_spill] sm:$0xff] }
 0x804   :  { %6520 = vrcp.f32 %v2194_v22 }
 0x805   :  { %3745 = vrot.lane.b32.xlu1 %v8915_v9, %s6903_s1  ;;  %v2307_v9 = vmul.f32 %v8558_v44, %v8949_v52  ;;  %6522 = vpow2.f32 %v5078_v46  ;;  %v9067_v44 = vpop.permute.xlu0 %2281  ;;  %v2196_v52 = vadd.f32 1.0, %v6509_v43  ;;  %v10079_v46 = vld [vmem:[#allocation47_spill] sm:$0xff] }
 0x807   :  { %v2403_v24 = vadd.f32 %v8969_v29, %v2307_v9  ;;  %v2309_v29 = vmul.f32 %v8597_v11, %v8980_v32  ;;  %v2310_v11 = vmul.f32 %v8606_v16, %v8984_v1 }
 0x809   :  { %3747 = vrot.lane.b32.xlu1 %v8932_v2, %s6903_s1  ;;  %v2195_v2 = vadd.f32 1.0, %v6507_v56  ;;  %6524 = vtanh.f32 %v2403_v24  ;;  %v2405_v4 = vadd.f32 %v8986_v8, %v2309_v29  ;;  %v9080_v41 = vpop.permute.xlu0 %2375  ;;  %v2406_v37 = vadd.f32 %v8990_v38, %v2310_v11 }
 0x80a   :  { %v2312_v24 = vmul.f32 %v10079_v46, %v8996_v54 }
 0x80b   :  { %6526 = vrcp.f32 %v2195_v2  ;;  %v10080_v2 = vld [vmem:[#allocation84_spill] sm:$0xff] }
 0x80c   :  { %6528 = vpow2.f32 %v5079_v30 }
 0x80d   :  { %3749 = vrot.lane.b32.xlu1 %v8946_v55, %s6903_s1  ;;  %v6511_v55 = vpop.eup %6510  ;;  %6530 = vtanh.f32 %v2404_v3  ;;  %v9096_v40 = vpop.permute.xlu0 %2377  ;;  %v2408_v3 = vadd.f32 %v9018_v36, %v2312_v24 }
 0x80e   :  { %v2197_v50 = vadd.f32 1.0, %v6511_v55  ;;  %6532 = vrcp.f32 %v2196_v52  ;;  %v5083_v55 = vmul.f32 -1.442695, %v8768_v62  ;;  %v5084_v62 = vmul.f32 -1.442695, %v8811_v60  ;;  %v10083_v60 = vld [vmem:[#allocation89_spill] sm:$0xff] }
 0x80f   :  { %6534 = vtanh.f32 %v2405_v4 }
 0x810   :  { %6536 = vpow2.f32 %v5080_v31  ;;  %v2313_v31 = vmul.f32 %v8718_v35, %v9022_v14 }
 0x811   :  { %3751 = vrot.lane.b32.xlu1 %v8956_v51, %s6903_s1  ;;  %v6513_v51 = vpop.eup %6512  ;;  %6538 = vrcp.f32 %v2197_v50  ;;  %v10081_v50 = vld [vmem:[#allocation86_spill] sm:$0xff] }
 0x812   :  { %v6515_v33 = vpop.eup %6514  ;;  %6540 = vtanh.f32 %v2406_v37  ;;  %v4042_v36 = vmul.f32 %v8998_v63, %v10081_v50 }
 0x813   :  { %v6517_v32 = vpop.eup %6516  ;;  %v2433_v19 = vmul.f32 %v6515_v33, %v6513_v51  ;;  %6542 = vpow2.f32 %v5081_v49  ;;  %v2284_v33 = vpop.permute.xlu0 %2283  ;;  %v2314_v49 = vmul.f32 %v10082_v0, %v9029_v13 }
 0x814   :  { %v6519_v8 = vpop.eup %6518  ;;  %v2198_v5 = vadd.f32 1.0, %v6517_v32 }
 0x815   :  { %3753 = vrot.lane.b32.xlu1 %v8965_v6, %s6903_s1  ;;  %v4039_v6 = vmul.f32 %v8998_v63, %v8179_v28  ;;  %v4024_v16 = vmul.f32 %v9000_v20, %v2433_v19  ;;  %v6521_v1 = vpop.eup %6520  ;;  %v10077_v28 = vld [vmem:[#allocation82_spill] sm:$0xff] }
 0x816   :  { %v6523_v27 = vpop.eup %6522  ;;  %v4040_v26 = vmul.f32 %v8998_v63, %v10077_v28  ;;  %v2434_v23 = vmul.f32 %v6521_v1, %v6519_v8  ;;  %6544 = vrcp.f32 %v2198_v5  ;;  %v4043_v1 = vmul.f32 %v8998_v63, %v10083_v60 }
 0x817   :  { %v4055_v57 = vadd.f32 %v4039_v6, %v4023_v25  ;;  %v6525_v38 = vpop.eup %6524  ;;  %v2199_v56 = vadd.f32 1.0, %v6523_v27  ;;  %v2409_v6 = vadd.f32 %v9035_v18, %v2313_v31  ;;  %v5085_v5 = vmul.f32 -1.442695, %v8831_v47 }
 0x818   :  { %v4056_v22 = vadd.f32 %v4040_v26, %v4024_v16  ;;  %v4025_v9 = vmul.f32 %v9000_v20, %v2434_v23  ;;  %v9117_v16 = vpop.permute.xlu1 %3649  ;;  %v4044_v47 = vmul.f32 %v8998_v63, %v10084_v12 }
 0x819   :  { %3755 = vrot.lane.b32.xlu1 %v8976_v48, %s6903_s1  ;;  %v2311_v48 = vmul.f32 %v10076_v45, %v8994_v21  ;;  %v6527_v21 = vpop.eup %6526  ;;  %v2410_v45 = vadd.f32 %v9045_v39, %v2314_v49 }
 0x81a   :  { %v6529_v43 = vpop.eup %6528  ;;  %v2435_v61 = vmul.f32 %v6527_v21, %v6525_v38  ;;  %v2315_v38 = vmul.f32 %v8789_v53, %v9054_v17  ;;  %v2316_v17 = vmul.f32 %v8802_v34, %v9067_v44  ;;  %v2317_v34 = vmul.f32 %v8862_v7, %v2284_v33 }
 0x81b   :  { %v2407_v58 = vadd.f32 %v9012_v10, %v2311_v48  ;;  %v4041_v10 = vmul.f32 %v8998_v63, %v10080_v2  ;;  %v6531_v30 = vpop.eup %6530  ;;  %v2200_v54 = vadd.f32 1.0, %v6529_v43  ;;  %v2286_v48 = vpop.permute.xlu0 %2285  ;;  %v10085_v2 = vld [vmem:[#allocation92_spill] sm:$0xff] }
 0x81c   :  { %v6533_v29 = vpop.eup %6532  ;;  %v4026_v51 = vmul.f32 %v9000_v20, %v2435_v61  ;;  %v2411_v39 = vadd.f32 %v9080_v41, %v2315_v38  ;;  %v4045_v41 = vmul.f32 %v8998_v63, %v10085_v2  ;;  %v2412_v61 = vadd.f32 %v9096_v40, %v2316_v17 }
 0x81d   :  { %4088 = vrot.lane.b32.xlu1 %v4055_v57, %s6903_s1  ;;  %6546 = vtanh.f32 %v2407_v58  ;;  %v4057_v52 = vadd.f32 %v4041_v10, %v4025_v9  ;;  %v6535_v4 = vpop.eup %6534  ;;  %v2436_v11 = vmul.f32 %v6533_v29, %v6531_v30  ;;  %v2318_v7 = vmul.f32 %v8879_v59, %v2286_v48 }
 0x81e   :  { %6548 = vpow2.f32 %v5082_v15  ;;  %v6537_v25 = vpop.eup %6536  ;;  %v4058_v19 = vadd.f32 %v4042_v36, %v4026_v51 }
 0x81f   :  { %6550 = vrcp.f32 %v2199_v56  ;;  %v6539_v32 = vpop.eup %6538  ;;  %v4027_v8 = vmul.f32 %v9000_v20, %v2436_v11  ;;  %v2201_v14 = vadd.f32 1.0, %v6537_v25  ;;  %v2380_v43 = vpop.permute.xlu0 %2379 }
 0x820   :  { %6552 = vtanh.f32 %v2408_v3  ;;  %v2437_v37 = vmul.f32 %v6539_v32, %v6535_v4  ;;  %v6541_v35 = vpop.eup %6540  ;;  %v10086_v4 = vld [vmem:[#allocation93_spill] sm:$0xff]  ;;  %v2413_v40 = vadd.f32 %v2380_v43, %v2317_v34 }
 0x821   :  { %4090 = vrot.lane.b32.xlu1 %v4056_v22, %s6903_s1  ;;  %6554 = vpow2.f32 %v5083_v55  ;;  %v6543_v57 = vpop.eup %6542  ;;  %v4059_v27 = vadd.f32 %v4043_v1, %v4027_v8  ;;  %v9131_v22 = vpop.permute.xlu1 %3651 }
 0x822   :  { %6556 = vrcp.f32 %v2200_v54  ;;  %v6545_v18 = vpop.eup %6544  ;;  %v4028_v28 = vmul.f32 %v9000_v20, %v2437_v37  ;;  %v2202_v23 = vadd.f32 1.0, %v6543_v57  ;;  %v4046_v54 = vmul.f32 %v8998_v63, %v10086_v4 }
 0x823   :  { %6558 = vtanh.f32 %v2409_v6  ;;  %v2438_v13 = vmul.f32 %v6545_v18, %v6541_v35  ;;  %v2382_v25 = vpop.permute.xlu0 %2381  ;;  %v10087_v6 = vld [vmem:[#allocation94_spill] sm:$0xff]  ;;  %v10089_v18 = vld [vmem:[#allocation95_spill] sm:$0xff] }
 0x824   :  { %6560 = vpow2.f32 %v5084_v62  ;;  %v4060_v9 = vadd.f32 %v4044_v47, %v4028_v28  ;;  %v2414_v37 = vadd.f32 %v2382_v25, %v2318_v7  ;;  %v10099_v7 = vld [vmem:[#allocation70_spill] sm:$0xff] }
 0x825   :  { %4092 = vrot.lane.b32.xlu1 %v4057_v52, %s6903_s1  ;;  %6562 = vrcp.f32 %v2201_v14  ;;  %v4029_v21 = vmul.f32 %v9000_v20, %v2438_v13  ;;  %v9142_v51 = vpop.permute.xlu1 %3653  ;;  %v10088_v14 = vld [vmem:[#allocation40_spill] sm:$0xff] }
 0x826   :  { %6564 = vtanh.f32 %v2410_v45  ;;  %v5182_v0 = vmul.f32 -1.442695, %v10088_v14 }
 0x827   :  { %v6547_v26 = vpop.eup %6546  ;;  %6566 = vpow2.f32 %v5085_v5  ;;  %v4061_v30 = vadd.f32 %v4045_v41, %v4029_v21  ;;  %v4048_v5 = vmul.f32 %v8998_v63, %v10089_v18  ;;  %v10103_v18 = vld [vmem:[#allocation34_spill] sm:$0xff] }
 0x828   :  { %v6549_v58 = vpop.eup %6548  ;;  %6568 = vrcp.f32 %v2202_v23 }
 0x829   :  { %4094 = vrot.lane.b32.xlu1 %v4058_v19, %s6903_s1  ;;  %v6551_v15 = vpop.eup %6550  ;;  %v2203_v53 = vadd.f32 1.0, %v6549_v58  ;;  %6570 = vtanh.f32 %v2411_v39  ;;  %v4047_v19 = vmul.f32 %v8998_v63, %v10087_v6  ;;  %v9152_v35 = vpop.permute.xlu1 %3655  ;;  %v10091_v58 = vld [vmem:[#allocation96_spill] sm:$0xff] }
 0x82a   :  { %v2439_v56 = vmul.f32 %v6551_v15, %v6547_v26  ;;  %v6553_v46 = vpop.eup %6552  ;;  %v10090_v26 = vld [vmem:[#allocation46_spill] sm:$0xff]  ;;  %v4049_v12 = vmul.f32 %v8998_v63, %v10091_v58  ;;  %v10105_v58 = vld [vmem:[#allocation109_spill] sm:$0xff] }
 0x82b   :  { %v6555_v24 = vpop.eup %6554  ;;  %6572 = vrcp.f32 %v2203_v53  ;;  %v5183_v23 = vmul.f32 -1.442695, %v10090_v26  ;;  %v10093_v53 = vld [vmem:[#allocation97_spill] sm:$0xff] }
 0x82c   :  { %v6557_v10 = vpop.eup %6556  ;;  %v4030_v3 = vmul.f32 %v9000_v20, %v2439_v56  ;;  %v2204_v52 = vadd.f32 1.0, %v6555_v24  ;;  %6574 = vtanh.f32 %v2412_v61  ;;  %v10092_v56 = vld [vmem:[#allocation71_spill] sm:$0xff]  ;;  %v4050_v17 = vmul.f32 %v8998_v63, %v10093_v53  ;;  %v10108_v53 = vld [vmem:[#allocation113_spill] sm:$0xff] }
 0x82d   :  { %4096 = vrot.lane.b32.xlu1 %v4059_v27, %s6903_s1  ;;  %v2440_v29 = vmul.f32 %v6557_v10, %v6553_v46  ;;  %v6559_v55 = vpop.eup %6558  ;;  %v9161_v38 = vpop.permute.xlu1 %3657  ;;  %v5184_v46 = vmul.f32 -1.442695, %v10092_v56 }
 0x82e   :  { %v6561_v44 = vpop.eup %6560  ;;  %v4062_v50 = vadd.f32 %v4046_v54, %v4030_v3  ;;  %6576 = vrcp.f32 %v2204_v52 }
 0x82f   :  { %v6563_v31 = vpop.eup %6562  ;;  %v4031_v36 = vmul.f32 %v9000_v20, %v2440_v29  ;;  %v2205_v62 = vadd.f32 1.0, %v6561_v44  ;;  %6578 = vtanh.f32 %v2413_v40  ;;  %v10096_v40 = vld [vmem:[#allocation35_spill] sm:$0xff] }
 0x830   :  { %v2441_v11 = vmul.f32 %v6563_v31, %v6559_v55  ;;  %v6565_v32 = vpop.eup %6564  ;;  %v10095_v55 = vld [vmem:[#allocation98_spill] sm:$0xff]  ;;  %v5186_v25 = vmul.f32 -1.442695, %v10096_v40 }
 0x831   :  { %4098 = vrot.lane.b32.xlu1 %v4060_v9, %s6903_s1  ;;  %v6567_v33 = vpop.eup %6566  ;;  %v4063_v49 = vadd.f32 %v4047_v19, %v4031_v36  ;;  %6580 = vrcp.f32 %v2205_v62  ;;  %v9171_v43 = vpop.permute.xlu1 %3659  ;;  %v4051_v52 = vmul.f32 %v8998_v63, %v10095_v55  ;;  %v10097_v36 = vld [vmem:[#allocation99_spill] sm:$0xff] }
 0x832   :  { %v6569_v8 = vpop.eup %6568  ;;  %v4032_v57 = vmul.f32 %v9000_v20, %v2441_v11  ;;  %v2206_v59 = vadd.f32 1.0, %v6567_v33  ;;  %6582 = vtanh.f32 %v2414_v37  ;;  %v4052_v11 = vmul.f32 %v8998_v63, %v10097_v36  ;;  %v10098_v62 = vld [vmem:[#allocation103_spill] sm:$0xff]  ;;  %v10100_v37 = vld [vmem:[#allocation37_spill] sm:$0xff] }
 0x833   :  { %v2442_v60 = vmul.f32 %v6569_v8, %v6565_v32  ;;  %v6571_v1 = vpop.eup %6570  ;;  %6584 = vpow2.f32 %v5182_v0  ;;  %v3677_v33 = vmul.f32 %v10099_v7, %v10098_v62  ;;  %v5187_v14 = vmul.f32 -1.442695, %v10100_v37 }
 0x834   :  { %v4064_v48 = vadd.f32 %v4048_v5, %v4032_v57  ;;  %6586 = vrcp.f32 %v2206_v59  ;;  %v10101_v57 = vld [vmem:[#allocation100_spill] sm:$0xff]  ;;  %v10102_v59 = vld [vmem:[#allocation106_spill] sm:$0xff] }
 0x835   :  { %4100 = vrot.lane.b32.xlu1 %v4061_v30, %s6903_s1  ;;  %v6573_v45 = vpop.eup %6572  ;;  %v4033_v27 = vmul.f32 %v9000_v20, %v2442_v60  ;;  %6588 = vpow2.f32 %v5183_v23  ;;  %v10094_v30 = vld [vmem:[#allocation33_spill] sm:$0xff]  ;;  %v4053_v60 = vmul.f32 %v8998_v63, %v10101_v57  ;;  %v3678_v5 = vmul.f32 %v10103_v18, %v10102_v59  ;;  %v10117_v18 = vld [vmem:[#allocation120_spill] sm:$0xff] }
 0x836   :  { %v2443_v28 = vmul.f32 %v6573_v45, %v6571_v1  ;;  %v6575_v13 = vpop.eup %6574  ;;  %6590 = vpow2.f32 %v5184_v46  ;;  %v5185_v3 = vmul.f32 -1.442695, %v10094_v30 }
 0x837   :  { %v4065_v15 = vadd.f32 %v4049_v12, %v4033_v27  ;;  %v10104_v27 = vld [vmem:[#allocation69_spill] sm:$0xff]  ;;  %v10106_v12 = vld [vmem:[#allocation68_spill] sm:$0xff] }
 0x838   :  { %v6577_v47 = vpop.eup %6576  ;;  %v4034_v39 = vmul.f32 %v9000_v20, %v2443_v28  ;;  %6592 = vpow2.f32 %v5185_v3  ;;  %v5188_v28 = vmul.f32 -1.442695, %v10104_v27 }
 0x839   :  { %4102 = vrot.lane.b32.xlu1 %v4062_v50, %s6903_s1  ;;  %v2444_v9 = vmul.f32 %v6577_v47, %v6575_v13  ;;  %v6579_v21 = vpop.eup %6578  ;;  %6594 = vpow2.f32 %v5186_v25  ;;  %v3679_v47 = vmul.f32 %v10106_v12, %v10105_v58 }
 0x83a   :  { %v4066_v2 = vadd.f32 %v4050_v17, %v4034_v39  ;;  %v10107_v39 = vld [vmem:[#allocation42_spill] sm:$0xff] }
 0x83b   :  { %v6581_v24 = vpop.eup %6580  ;;  %v4035_v41 = vmul.f32 %v9000_v20, %v2444_v9  ;;  %v5189_v9 = vmul.f32 -1.442695, %v10107_v39  ;;  %v10109_v17 = vld [vmem:[#allocation38_spill] sm:$0xff]  ;;  %v10121_v39 = vld [vmem:[#allocation49_spill] sm:$0xff] }
 0x83c   :  { %v2445_v10 = vmul.f32 %v6581_v24, %v6579_v21  ;;  %v6583_v61 = vpop.eup %6582  ;;  %v3680_v24 = vmul.f32 %v10109_v17, %v10108_v53  ;;  %v10122_v53 = vld [vmem:[#allocation105_spill] sm:$0xff] }
 0x83d   :  { %4104 = vrot.lane.b32.xlu1 %v4063_v49, %s6903_s1  ;;  %v6585_v29 = vpop.eup %6584  ;;  %v4067_v4 = vadd.f32 %v4051_v52, %v4035_v41  ;;  %v5194_v17 = vmul.f32 -1.442695, %v10122_v53 }
 0x83e   :  { %v6587_v34 = vpop.eup %6586  ;;  %v4036_v54 = vmul.f32 %v9000_v20, %v2445_v10  ;;  %v3565_v50 = vadd.f32 1.0, %v6585_v29 }
 0x83f   :  { %v2446_v31 = vmul.f32 %v6587_v34, %v6583_v61  ;;  %v6589_v32 = vpop.eup %6588  ;;  %v10110_v61 = vld [vmem:[#allocation44_spill] sm:$0xff] }
 0x840   :  { %v4068_v19 = vadd.f32 %v4052_v11, %v4036_v54  ;;  %6596 = vrcp.f32 %v3565_v50  ;;  %v3566_v49 = vadd.f32 1.0, %v6589_v32  ;;  %v6591_v1 = vpop.eup %6590  ;;  %v5190_v30 = vmul.f32 -1.442695, %v10110_v61  ;;  %v10111_v34 = vld [vmem:[#allocation116_spill] sm:$0xff]  ;;  %v10123_v61 = vld [vmem:[#allocation50_spill] sm:$0xff] }
 0x841   :  { %4106 = vrot.lane.b32.xlu1 %v4064_v48, %s6903_s1  ;;  %v4037_v8 = vmul.f32 %v9000_v20, %v2446_v31  ;;  %v3567_v26 = vadd.f32 1.0, %v6591_v1  ;;  %v10113_v50 = vld [vmem:[#allocation48_spill] sm:$0xff] }
 0x842   :  { %v6593_v23 = vpop.eup %6592  ;;  %v5191_v36 = vmul.f32 -1.442695, %v10113_v50  ;;  %v10125_v50 = vld [vmem:[#allocation122_spill] sm:$0xff] }
 0x843   :  { %v4069_v48 = vadd.f32 %v4053_v60, %v4037_v8  ;;  %v3568_v56 = vadd.f32 1.0, %v6593_v23  ;;  %v6595_v46 = vpop.eup %6594 }
 0x844   :  { %v3569_v29 = vadd.f32 1.0, %v6595_v46 }
 0x845   :  { %4108 = vrot.lane.b32.xlu1 %v4065_v15, %s6903_s1 }
 0x849   :  { %4110 = vrot.lane.b32.xlu1 %v4066_v2, %s6903_s1 }
 0x84a   :  { %v6597_v2 = vpop.eup %6596 }
 0x84b   :  { %v9178_v44 = vpop.permute.xlu1 %4086 }
 0x84d   :  { %4112 = vrot.lane.b32.xlu1 %v4067_v4, %s6903_s1  ;;  %v10112_v4 = vld [vmem:[#allocation39_spill] sm:$0xff] }
 0x84e   :  { %v3681_v54 = vmul.f32 %v10112_v4, %v10111_v34  ;;  %v10124_v34 = vld [vmem:[#allocation108_spill] sm:$0xff] }
 0x84f   :  { %v3726_v6 = vpop.permute.xlu1 %3725  ;;  %v5195_v4 = vmul.f32 -1.442695, %v10124_v34 }
 0x850   :  { %v3773_v0 = vadd.f32 %v3726_v6, %v3677_v33  ;;  %v10114_v33 = vld [vmem:[#allocation118_spill] sm:$0xff]  ;;  %v10115_v6 = vld [vmem:[#allocation43_spill] sm:$0xff] }
 0x851   :  { %4114 = vrot.lane.b32.xlu1 %v4068_v19, %s6903_s1  ;;  %v3682_v19 = vmul.f32 %v10115_v6, %v10114_v33 }
 0x852   :  { %6598 = vtanh.f32 %v3773_v0  ;;  %v10116_v0 = vld [vmem:[#allocation101_spill] sm:$0xff] }
 0x853   :  { %v3728_v45 = vpop.permute.xlu1 %3727  ;;  %6600 = vpow2.f32 %v5187_v14 }
 0x854   :  { %v3774_v13 = vadd.f32 %v3728_v45, %v3678_v5  ;;  %6602 = vrcp.f32 %v3566_v49  ;;  %v5192_v49 = vmul.f32 -1.442695, %v10116_v0  ;;  %v10118_v5 = vld [vmem:[#allocation45_spill] sm:$0xff]  ;;  %v10128_v0 = vld [vmem:[#allocation107_spill] sm:$0xff] }
 0x855   :  { %4116 = vrot.lane.b32.xlu1 %v4069_v48, %s6903_s1  ;;  %v3683_v45 = vmul.f32 %v10118_v5, %v10117_v18  ;;  %v10129_v18 = vld [vmem:[#allocation114_spill] sm:$0xff] }
 0x856   :  { %6604 = vtanh.f32 %v3774_v13  ;;  %v10119_v13 = vld [vmem:[#allocation102_spill] sm:$0xff]  ;;  %v5197_v5 = vmul.f32 -1.442695, %v10129_v18 }
 0x857   :  { %v3730_v15 = vpop.permute.xlu1 %3729  ;;  %6606 = vpow2.f32 %v5188_v28 }
 0x858   :  { %v3775_v21 = vadd.f32 %v3730_v15, %v3679_v47  ;;  %6608 = vrcp.f32 %v3567_v26  ;;  %v5193_v26 = vmul.f32 -1.442695, %v10119_v13  ;;  %v10120_v15 = vld [vmem:[#allocation121_spill] sm:$0xff] }
 0x85a   :  { %6610 = vtanh.f32 %v3775_v21 }
 0x85b   :  { %v3732_v41 = vpop.permute.xlu1 %3731  ;;  %6612 = vpow2.f32 %v5189_v9  ;;  %v3684_v9 = vmul.f32 %v10121_v39, %v10120_v15 }
 0x85c   :  { %v6599_v10 = vpop.eup %6598  ;;  %v3776_v3 = vadd.f32 %v3732_v41, %v3680_v24  ;;  %6614 = vrcp.f32 %v3568_v56 }
 0x85d   :  { %v9202_v55 = vmul.f32 %v6599_v10, %v6597_v2  ;;  %v6601_v52 = vpop.eup %6600 }
 0x85e   :  { %6616 = vtanh.f32 %v3776_v3  ;;  %v6603_v31 = vpop.eup %6602  ;;  %v3570_v32 = vadd.f32 1.0, %v6601_v52 }
 0x85f   :  { %v3734_v40 = vpop.permute.xlu1 %3733  ;;  %6618 = vpow2.f32 %v5190_v30  ;;  %v3685_v30 = vmul.f32 %v10123_v61, %v8988_v42  ;;  %v10127_v42 = vld [vmem:[#allocation111_spill] sm:$0xff] }
 0x860   :  { %v6605_v25 = vpop.eup %6604  ;;  %v3777_v11 = vadd.f32 %v3734_v40, %v3681_v54  ;;  %6620 = vrcp.f32 %v3569_v29  ;;  %v5196_v6 = vmul.f32 -1.442695, %v10127_v42  ;;  %v10132_v61 = vld [vmem:[#allocation115_spill] sm:$0xff] }
 0x861   :  { %v9207_v62 = vmul.f32 %v6605_v25, %v6603_v31  ;;  %v6607_v7 = vpop.eup %6606 }
 0x862   :  { %6622 = vtanh.f32 %v3777_v11  ;;  %v6609_v8 = vpop.eup %6608  ;;  %v3571_v60 = vadd.f32 1.0, %v6607_v7 }
 0x863   :  { %v3736_v37 = vpop.permute.xlu1 %3735  ;;  %6624 = vpow2.f32 %v5191_v36  ;;  %v10126_v36 = vld [vmem:[#allocation104_spill] sm:$0xff] }
 0x864   :  { %v6611_v14 = vpop.eup %6610  ;;  %v3778_v57 = vadd.f32 %v3736_v37, %v3682_v19  ;;  %6626 = vrcp.f32 %v3570_v32  ;;  %v3686_v11 = vmul.f32 %v10126_v36, %v10125_v50 }
 0x865   :  { %v9212_v1 = vmul.f32 %v6611_v14, %v6609_v8  ;;  %v6613_v59 = vpop.eup %6612 }
 0x866   :  { %6628 = vtanh.f32 %v3778_v57  ;;  %v6615_v48 = vpop.eup %6614  ;;  %v3572_v58 = vadd.f32 1.0, %v6613_v59 }
 0x867   :  { %v3738_v27 = vpop.permute.xlu1 %3737  ;;  %6630 = vpow2.f32 %v5192_v49  ;;  %v3687_v49 = vmul.f32 %v10128_v0, %v9117_v16 }
 0x868   :  { %v6617_v28 = vpop.eup %6616  ;;  %v3779_v23 = vadd.f32 %v3738_v27, %v3683_v45  ;;  %6632 = vrcp.f32 %v3571_v60 }
 0x869   :  { %v9217_v12 = vmul.f32 %v6617_v28, %v6615_v48  ;;  %v6619_v47 = vpop.eup %6618  ;;  %v4134_v48 = vsel %vm581_vm0, %v9178_v44, 0.0 }
 0x86a   :  { %6634 = vtanh.f32 %v3779_v23  ;;  %v6621_v21 = vpop.eup %6620  ;;  %v3573_v2 = vadd.f32 1.0, %v6619_v47 }
 0x86b   :  { %v3740_v56 = vpop.permute.xlu1 %3739  ;;  %6636 = vpow2.f32 %v5193_v26  ;;  %v10130_v26 = vld [vmem:[#allocation110_spill] sm:$0xff] }
 0x86c   :  { %v6623_v46 = vpop.eup %6622  ;;  %v3780_v24 = vadd.f32 %v3740_v56, %v3684_v9  ;;  %6638 = vrcp.f32 %v3572_v58  ;;  %v3688_v16 = vmul.f32 %v10130_v26, %v9131_v22 }
 0x86d   :  { %v9222_v41 = vmul.f32 %v6623_v46, %v6621_v21  ;;  %v6625_v10 = vpop.eup %6624  ;;  %v10131_v21 = vld [vmem:[#allocation112_spill] sm:$0xff] }
 0x86e   :  { %6640 = vtanh.f32 %v3780_v24  ;;  %v6627_v3 = vpop.eup %6626  ;;  %v3574_v31 = vadd.f32 1.0, %v6625_v10  ;;  %v3689_v56 = vmul.f32 %v10131_v21, %v9142_v51 }
 0x86f   :  { %v3742_v29 = vpop.permute.xlu1 %3741  ;;  %6642 = vpow2.f32 %v5194_v17 }
 0x870   :  { %v6629_v52 = vpop.eup %6628  ;;  %v3781_v54 = vadd.f32 %v3742_v29, %v3685_v30  ;;  %6644 = vrcp.f32 %v3573_v2  ;;  %v3690_v30 = vmul.f32 %v10132_v61, %v9152_v35 }
 0x871   :  { %v9227_v40 = vmul.f32 %v6629_v52, %v6627_v3  ;;  %v6631_v25 = vpop.eup %6630 }
 0x872   :  { %6646 = vtanh.f32 %v3781_v54  ;;  %v6633_v32 = vpop.eup %6632  ;;  %v3575_v8 = vadd.f32 1.0, %v6631_v25 }
 0x873   :  { %v3744_v7 = vpop.permute.xlu1 %3743  ;;  %6648 = vpow2.f32 %v5195_v4 }
 0x874   :  { %v6635_v33 = vpop.eup %6634  ;;  %v3782_v19 = vadd.f32 %v3744_v7, %v3686_v11  ;;  %6650 = vrcp.f32 %v3574_v31  ;;  %v10133_v31 = vld [vmem:[#allocation117_spill] sm:$0xff] }
 0x875   :  { %v9232_v37 = vmul.f32 %v6635_v33, %v6633_v32  ;;  %v6637_v14 = vpop.eup %6636  ;;  %v3691_v25 = vmul.f32 %v10133_v31, %v9161_v38  ;;  %v10134_v33 = vld [vmem:[#allocation119_spill] sm:$0xff] }
 0x876   :  { %6652 = vtanh.f32 %v3782_v19  ;;  %v6639_v57 = vpop.eup %6638  ;;  %v3576_v27 = vadd.f32 1.0, %v6637_v14  ;;  %v3692_v42 = vmul.f32 %v10134_v33, %v9171_v43 }
 0x877   :  { %v3746_v60 = vpop.permute.xlu1 %3745  ;;  %6654 = vpow2.f32 %v5196_v6 }
 0x878   :  { %v6641_v59 = vpop.eup %6640  ;;  %v3783_v45 = vadd.f32 %v3746_v60, %v3687_v49  ;;  %6656 = vrcp.f32 %v3575_v8 }
 0x879   :  { %4135 = vadd.xlane.f32.xlu1 %v4134_v48  ;;  %v9239_v28 = vmul.f32 %v6641_v59, %v6639_v57  ;;  %v6643_v13 = vpop.eup %6642 }
 0x87a   :  { %6658 = vtanh.f32 %v3783_v45  ;;  %v6645_v23 = vpop.eup %6644  ;;  %v3577_v39 = vadd.f32 1.0, %v6643_v13 }
 0x87b   :  { %v3748_v58 = vpop.permute.xlu1 %3747  ;;  %6660 = vpow2.f32 %v5197_v5 }
 0x87c   :  { %v6647_v47 = vpop.eup %6646  ;;  %v3784_v15 = vadd.f32 %v3748_v58, %v3688_v16  ;;  %6662 = vrcp.f32 %v3576_v27 }
 0x87d   :  { %v9243_v9 = vmul.f32 %v6647_v47, %v6645_v23  ;;  %v6649_v44 = vpop.eup %6648 }
 0x87e   :  { %6664 = vtanh.f32 %v3784_v15  ;;  %v6651_v46 = vpop.eup %6650  ;;  %v3578_v22 = vadd.f32 1.0, %v6649_v44 }
 0x87f   :  { %v3750_v53 = vpop.permute.xlu1 %3749  ;;  %6666 = vrcp.f32 %v3577_v39 }
 0x880   :  { %v6653_v17 = vpop.eup %6652  ;;  %v3785_v24 = vadd.f32 %v3750_v53, %v3689_v56  ;;  %v3856_v56 = vmul.f32 %v8998_v63, %v9202_v55 }
 0x881   :  { %v9247_v2 = vmul.f32 %v6653_v17, %v6651_v46  ;;  %v6655_v10 = vpop.eup %6654  ;;  %v10135_v46 = vld [vmem:[#allocation51_spill] sm:$0xff] }
 0x882   :  { %6668 = vtanh.f32 %v3785_v24  ;;  %v6657_v3 = vpop.eup %6656  ;;  %v3579_v4 = vadd.f32 1.0, %v6655_v10  ;;  %v3832_v53 = vmul.f32 %v9000_v20, %v10135_v46  ;;  %v3857_v24 = vmul.f32 %v8998_v63, %v9207_v62  ;;  %v10138_v62 = vld [vmem:[#allocation74_spill] sm:$0xff] }
 0x883   :  { %v3752_v29 = vpop.permute.xlu1 %3751  ;;  %6670 = vrcp.f32 %v3578_v22  ;;  %v10136_v22 = vld [vmem:[#allocation72_spill] sm:$0xff] }
 0x884   :  { %v6659_v52 = vpop.eup %6658  ;;  %v3786_v34 = vadd.f32 %v3752_v29, %v3690_v30  ;;  %v3872_v17 = vadd.f32 %v3856_v56, %v3832_v53  ;;  %v3833_v10 = vmul.f32 %v9000_v20, %v10136_v22  ;;  %v3858_v30 = vmul.f32 %v8998_v63, %v9212_v1  ;;  %v10139_v1 = vld [vmem:[#allocation75_spill] sm:$0xff] }
 0x885   :  { %v9251_v51 = vmul.f32 %v6659_v52, %v6657_v3  ;;  %v6661_v54 = vpop.eup %6660  ;;  %v10137_v3 = vld [vmem:[#allocation73_spill] sm:$0xff]  ;;  %v3859_v52 = vmul.f32 %v8998_v63, %v9217_v12  ;;  %v3836_v31 = vmul.f32 %v9000_v20, %v10139_v1  ;;  %v10140_v12 = vld [vmem:[#allocation76_spill] sm:$0xff] }
 0x886   :  { %6672 = vtanh.f32 %v3786_v34  ;;  %v6663_v50 = vpop.eup %6662  ;;  %v3580_v7 = vadd.f32 1.0, %v6661_v54  ;;  %v3873_v61 = vadd.f32 %v3857_v24, %v3833_v10  ;;  %v3834_v55 = vmul.f32 %v9000_v20, %v10137_v3 }
 0x887   :  { %v3754_v36 = vpop.permute.xlu1 %3753  ;;  %6674 = vrcp.f32 %v3579_v4  ;;  %v3835_v34 = vmul.f32 %v9000_v20, %v10138_v62  ;;  %v3860_v54 = vmul.f32 %v8998_v63, %v9222_v41  ;;  %v10141_v41 = vld [vmem:[#allocation77_spill] sm:$0xff] }
 0x888   :  { %v6665_v11 = vpop.eup %6664  ;;  %v3787_v32 = vadd.f32 %v3754_v36, %v3691_v25  ;;  %v3874_v29 = vadd.f32 %v3858_v30, %v3834_v55  ;;  %v3837_v36 = vmul.f32 %v9000_v20, %v10140_v12 }
 0x889   :  { %v9255_v35 = vmul.f32 %v6665_v11, %v6663_v50  ;;  %v6667_v6 = vpop.eup %6666  ;;  %v3875_v4 = vadd.f32 %v3859_v52, %v3835_v34  ;;  %v3876_v25 = vadd.f32 %v3860_v54, %v3836_v31  ;;  %v3861_v50 = vmul.f32 %v8998_v63, %v9227_v40  ;;  %v10142_v40 = vld [vmem:[#allocation78_spill] sm:$0xff] }
 0x88a   :  { %6676 = vtanh.f32 %v3787_v32  ;;  %v3862_v32 = vmul.f32 %v8998_v63, %v9232_v37  ;;  %v10143_v37 = vld [vmem:[#allocation79_spill] sm:$0xff] }
 0x88b   :  { %v3756_v19 = vpop.permute.xlu1 %3755  ;;  %6678 = vrcp.f32 %v3580_v7  ;;  %v3877_v11 = vadd.f32 %v3861_v50, %v3837_v36  ;;  %v3838_v7 = vmul.f32 %v9000_v20, %v10141_v41 }
 0x88c   :  { %v6669_v8 = vpop.eup %6668  ;;  %v3788_v14 = vadd.f32 %v3756_v19, %v3692_v42  ;;  %v3863_v42 = vmul.f32 %v8998_v63, %v9239_v28  ;;  %v10144_v28 = vld [vmem:[#allocation80_spill] sm:$0xff] }
 0x88d   :  { %v9259_v0 = vmul.f32 %v6669_v8, %v6667_v6  ;;  %v6671_v38 = vpop.eup %6670  ;;  %v3878_v33 = vadd.f32 %v3862_v32, %v3838_v7  ;;  %v3839_v6 = vmul.f32 %v9000_v20, %v10142_v40  ;;  %v3864_v8 = vmul.f32 %v8998_v63, %v9243_v9  ;;  %v10145_v9 = vld [vmem:[#allocation81_spill] sm:$0xff] }
 0x88e   :  { %6680 = vtanh.f32 %v3788_v14  ;;  %v3840_v14 = vmul.f32 %v9000_v20, %v10143_v37 }
 0x88f   :  { %v4089_v49 = vpop.permute.xlu1 %4088  ;;  %v3879_v19 = vadd.f32 %v3863_v42, %v3839_v6 }
 0x890   :  { %v6673_v57 = vpop.eup %6672  ;;  %v4137_v60 = vsel %vm581_vm0, %v4089_v49, 0.0  ;;  %v3865_v49 = vmul.f32 %v8998_v63, %v9247_v2  ;;  %v10146_v2 = vld [vmem:[#allocation83_spill] sm:$0xff] }
 0x891   :  { %4138 = vadd.xlane.f32.xlu0 %v4137_v60  ;;  %v9262_v59 = vmul.f32 %v6673_v57, %v6671_v38  ;;  %v6675_v18 = vpop.eup %6674  ;;  %v3880_v38 = vadd.f32 %v3864_v8, %v3840_v14  ;;  %v3841_v57 = vmul.f32 %v9000_v20, %v10144_v28 }
 0x893   :  { %v4091_v5 = vpop.permute.xlu1 %4090  ;;  %v3881_v60 = vadd.f32 %v3865_v49, %v3841_v57 }
 0x894   :  { %v6677_v45 = vpop.eup %6676  ;;  %v4140_v43 = vsel %vm581_vm0, %v4091_v5, 0.0  ;;  %v3842_v5 = vmul.f32 %v9000_v20, %v10145_v9 }
 0x895   :  { %4141 = vadd.xlane.f32.xlu0 %v4140_v43  ;;  %v9265_v48 = vmul.f32 %v6677_v45, %v6675_v18  ;;  %v6679_v27 = vpop.eup %6678  ;;  %v3866_v18 = vmul.f32 %v8998_v63, %v9251_v51  ;;  %v3867_v43 = vmul.f32 %v8998_v63, %v9255_v35  ;;  %v10147_v51 = vld [vmem:[#allocation85_spill] sm:$0xff]  ;;  %v10148_v35 = vld [vmem:[#allocation87_spill] sm:$0xff] }
 0x897   :  { %v4093_v13 = vpop.permute.xlu1 %4092  ;;  %v3882_v45 = vadd.f32 %v3866_v18, %v3842_v5 }
 0x898   :  { %v6681_v26 = vpop.eup %6680  ;;  %v4143_v16 = vsel %vm581_vm0, %v4093_v13, 0.0 }
 0x899   :  { %4144 = vadd.xlane.f32.xlu0 %v4143_v16  ;;  %v9268_v23 = vmul.f32 %v6681_v26, %v6679_v27  ;;  %v3843_v27 = vmul.f32 %v9000_v20, %v10146_v2  ;;  %v3868_v26 = vmul.f32 %v8998_v63, %v9259_v0  ;;  %v3844_v16 = vmul.f32 %v9000_v20, %v10147_v51  ;;  %v10149_v0 = vld [vmem:[#allocation88_spill] sm:$0xff] }
 0x89b   :  { %v4095_v58 = vpop.permute.xlu1 %4094  ;;  %v3883_v13 = vadd.f32 %v3867_v43, %v3843_v27  ;;  %v3871_v46 = vmul.f32 %v8998_v63, %v9268_v23 }
 0x89c   :  { %v4146_v47 = vsel %vm581_vm0, %v4095_v58, 0.0  ;;  %v3884_v58 = vadd.f32 %v3868_v26, %v3844_v16 }
 0x89d   :  { %4147 = vadd.xlane.f32.xlu0 %v4146_v47  ;;  %v3869_v47 = vmul.f32 %v8998_v63, %v9262_v59  ;;  %v10150_v59 = vld [vmem:[#allocation90_spill] sm:$0xff] }
 0x89e   :  { %v3847_v53 = vmul.f32 %v9000_v20, %v10150_v59 }
 0x89f   :  { %v4097_v15 = vpop.permute.xlu1 %4096 }
 0x8a0   :  { %v4149_v39 = vsel %vm581_vm0, %v4097_v15, 0.0  ;;  %v3845_v15 = vmul.f32 %v9000_v20, %v10148_v35 }
 0x8a1   :  { %4150 = vadd.xlane.f32.xlu0 %v4149_v39 }
 0x8a2   :  { %v3885_v39 = vadd.f32 %v3869_v47, %v3845_v15 }
 0x8a3   :  { %v4099_v44 = vpop.permute.xlu1 %4098 }
 0x8a4   :  { %v4152_v21 = vsel %vm581_vm0, %v4099_v44, 0.0  ;;  %v3870_v44 = vmul.f32 %v8998_v63, %v9265_v48 }
 0x8a5   :  { %4153 = vadd.xlane.f32.xlu0 %v4152_v21  ;;  %v3846_v21 = vmul.f32 %v9000_v20, %v10149_v0  ;;  %v4598_v0 = vld [vmem:[#allocation11] sm:$0xff] }
 0x8a7   :  { %v3886_v56 = vadd.f32 %v3870_v44, %v3846_v21  ;;  %v4101_v24 = vpop.permute.xlu1 %4100  ;;  %v6905_v44 = vmov 0   ;;  %v4599_v21 = vld [vmem:[#allocation11 + $0x8] sm:$0xff] }
 0x8a8   :  { %v4155_v48 = vsel %vm581_vm0, %v4101_v24, 0.0  ;;  %5913 = vset.pattern.permute.xlu0 %v6905_v44  ;;  %5912 = vset.pattern.permute.xlu1 %v6905_v44 }
 0x8ab   :  { %v4103_v22 = vpop.permute.xlu1 %4102 }
 0x8ac   :  { %v4158_v10 = vsel %vm581_vm0, %v4103_v22, 0.0 }
 0x8af   :  { %v4105_v3 = vpop.permute.xlu1 %4104 }
 0x8b0   :  { %v4161_v31 = vsel %vm581_vm0, %v4105_v3, 0.0 }
 0x8bb   :  { %3904 = vrot.lane.b32.xlu0 %v3872_v17, %s6903_s1  ;;  %v3887_v17 = vadd.f32 %v3871_v46, %v3847_v53  ;;  %v9394_v53 = vld [vmem:[#allocation2] ss:$0 sm:$0xff] }
 0x8bf   :  { %3906 = vrot.lane.b32.xlu0 %v3873_v61, %s6903_s1 }
 0x8c3   :  { %3908 = vrot.lane.b32.xlu0 %v3874_v29, %s6903_s1  ;;  %v4107_v29 = vpop.permute.xlu1 %4106 }
 0x8c4   :  { %v4164_v36 = vsel %vm581_vm0, %v4107_v29, 0.0 }
 0x8c7   :  { %3910 = vrot.lane.b32.xlu0 %v3875_v4, %s6903_s1  ;;  %v4109_v54 = vpop.permute.xlu1 %4108 }
 0x8c8   :  { %v4167_v41 = vsel %vm581_vm0, %v4109_v54, 0.0 }
 0x8cb   :  { %3912 = vrot.lane.b32.xlu0 %v3876_v25, %s6903_s1  ;;  %v4111_v50 = vpop.permute.xlu1 %4110 }
 0x8cc   :  { %v4170_v40 = vsel %vm581_vm0, %v4111_v50, 0.0 }
 0x8cf   :  { %3914 = vrot.lane.b32.xlu0 %v3877_v11, %s6903_s1 }
 0x8d3   :  { %3916 = vrot.lane.b32.xlu0 %v3878_v33, %s6903_s1  ;;  %v4113_v33 = vpop.permute.xlu1 %4112 }
 0x8d4   :  { %v4173_v37 = vsel %vm581_vm0, %v4113_v33, 0.0 }
 0x8d7   :  { %3918 = vrot.lane.b32.xlu0 %v3879_v19, %s6903_s1  ;;  %v4115_v19 = vpop.permute.xlu1 %4114 }
 0x8d8   :  { %v4176_v49 = vsel %vm581_vm0, %v4115_v19, 0.0 }
 0x8db   :  { %3920 = vrot.lane.b32.xlu0 %v3880_v38, %s6903_s1  ;;  %v4117_v57 = vpop.permute.xlu1 %4116 }
 0x8dc   :  { %v4179_v18 = vsel %vm581_vm0, %v4117_v57, 0.0 }
 0x8df   :  { %3922 = vrot.lane.b32.xlu0 %v3881_v60, %s6903_s1 }
 0x8e3   :  { %3924 = vrot.lane.b32.xlu0 %v3882_v45, %s6903_s1 }
 0x8e7   :  { %3926 = vrot.lane.b32.xlu0 %v3883_v13, %s6903_s1 }
 0x8eb   :  { %3928 = vrot.lane.b32.xlu0 %v3884_v58, %s6903_s1 }
 0x8ef   :  { %3930 = vrot.lane.b32.xlu0 %v3885_v39, %s6903_s1 }
 0x8f3   :  { %3932 = vrot.lane.b32.xlu0 %v3886_v56, %s6903_s1  ;;  %v5820_v56 = vpack.c.bf16 %v4599_v21, %v4598_v0 }
 0x8f5   :  { %5821 = vmatprep.subr.bf16.mxu1 %v5820_v56 }
 0x8f6   :  { %5823 = vmatpush3.bf16.msra.mxu1 %v5820_v56 }
 0x8f7   :  { %3934 = vrot.lane.b32.xlu0 %v3887_v17, %s6903_s1 }
 0x906   :  { %v4136_v17 = vpop.xlane.xlu1 %4135 }
 0x916   :  { %4156 = vadd.xlane.f32.xlu0 %v4155_v48  ;;  %v4182_v48 = vadd.f32 %v9394_v53, %v4136_v17 }
 0x91a   :  { %4159 = vadd.xlane.f32.xlu0 %v4158_v10 }
 0x91e   :  { %v9355_v61 = vpop.xlane.xlu0 %4138 }
 0x91f   :  { %v4183_v29 = vadd.f32 %v9394_v53, %v9355_v61 }
 0x922   :  { %v9357_v30 = vpop.xlane.xlu0 %4141 }
 0x926   :  { %v9359_v63 = vpop.xlane.xlu0 %4144 }
 0x92a   :  { %v9361_v23 = vpop.xlane.xlu0 %4147 }
 0x92e   :  { %v9363_v20 = vpop.xlane.xlu0 %4150 }
 0x932   :  { %v9365_v55 = vpop.xlane.xlu0 %4153 }
 0x936   :  { %v3905_v52 = vpop.permute.xlu0 %3904 }
 0x937   :  { %v3952_v62 = vsel %vm581_vm0, %v3905_v52, 0.0 }
 0x938   :  { %3953 = vadd.xlane.f32.xlu0 %v3952_v62 }
 0x93a   :  { %v3907_v34 = vpop.permute.xlu0 %3906 }
 0x93b   :  { %v3955_v4 = vsel %vm581_vm0, %v3907_v34, 0.0 }
 0x93c   :  { %3956 = vadd.xlane.f32.xlu0 %v3955_v4 }
 0x93e   :  { %v3909_v1 = vpop.permute.xlu0 %3908 }
 0x93f   :  { %v3958_v25 = vsel %vm581_vm0, %v3909_v1, 0.0 }
 0x940   :  { %3959 = vadd.xlane.f32.xlu1 %v3958_v25  ;;  %4162 = vadd.xlane.f32.xlu0 %v4161_v31 }
 0x942   :  { %v3911_v12 = vpop.permute.xlu0 %3910 }
 0x943   :  { %v3961_v11 = vsel %vm581_vm0, %v3911_v12, 0.0  ;;  %v4184_v12 = vadd.f32 %v9394_v53, %v9357_v30 }
 0x944   :  { %3962 = vadd.xlane.f32.xlu1 %v3961_v11  ;;  %4165 = vadd.xlane.f32.xlu0 %v4164_v36 }
 0x946   :  { %v3913_v32 = vpop.permute.xlu0 %3912 }
 0x947   :  { %v3964_v7 = vsel %vm581_vm0, %v3913_v32, 0.0 }
 0x948   :  { %3965 = vadd.xlane.f32.xlu1 %v3964_v7  ;;  %4168 = vadd.xlane.f32.xlu0 %v4167_v41  ;;  %v4185_v7 = vadd.f32 %v9394_v53, %v9359_v63 }
 0x94a   :  { %v3915_v42 = vpop.permute.xlu0 %3914 }
 0x94b   :  { %v3967_v6 = vsel %vm581_vm0, %v3915_v42, 0.0 }
 0x94c   :  { %3968 = vadd.xlane.f32.xlu1 %v3967_v6  ;;  %4171 = vadd.xlane.f32.xlu0 %v4170_v40 }
 0x94e   :  { %v3917_v8 = vpop.permute.xlu0 %3916 }
 0x94f   :  { %v3970_v14 = vsel %vm581_vm0, %v3917_v8, 0.0 }
 0x950   :  { %3971 = vadd.xlane.f32.xlu1 %v3970_v14  ;;  %4174 = vadd.xlane.f32.xlu0 %v4173_v37  ;;  %v4186_v37 = vadd.f32 %v9394_v53, %v9361_v23 }
 0x952   :  { %v3919_v38 = vpop.permute.xlu0 %3918 }
 0x953   :  { %v3973_v28 = vsel %vm581_vm0, %v3919_v38, 0.0 }
 0x954   :  { %3974 = vadd.xlane.f32.xlu1 %v3973_v28  ;;  %4177 = vadd.xlane.f32.xlu0 %v4176_v49 }
 0x956   :  { %v3921_v60 = vpop.permute.xlu0 %3920 }
 0x957   :  { %v3976_v9 = vsel %vm581_vm0, %v3921_v60, 0.0 }
 0x958   :  { %3977 = vadd.xlane.f32.xlu1 %v3976_v9  ;;  %4180 = vadd.xlane.f32.xlu0 %v4179_v18 }
 0x95a   :  { %v3923_v5 = vpop.permute.xlu0 %3922 }
 0x95b   :  { %v3979_v45 = vsel %vm581_vm0, %v3923_v5, 0.0 }
 0x95c   :  { %3980 = vadd.xlane.f32.xlu1 %v3979_v45 }
 0x95e   :  { %v3925_v43 = vpop.permute.xlu0 %3924 }
 0x95f   :  { %v3982_v2 = vsel %vm581_vm0, %v3925_v43, 0.0 }
 0x960   :  { %3983 = vadd.xlane.f32.xlu1 %v3982_v2  ;;  %v4187_v2 = vadd.f32 %v9394_v53, %v9363_v20 }
 0x962   :  { %v3927_v27 = vpop.permute.xlu0 %3926 }
 0x963   :  { %v3985_v13 = vsel %vm581_vm0, %v3927_v27, 0.0 }
 0x964   :  { %3986 = vadd.xlane.f32.xlu1 %v3985_v13 }
 0x966   :  { %v3929_v26 = vpop.permute.xlu0 %3928 }
 0x967   :  { %v3988_v51 = vsel %vm581_vm0, %v3929_v26, 0.0 }
 0x968   :  { %3989 = vadd.xlane.f32.xlu1 %v3988_v51 }
 0x96a   :  { %v3931_v16 = vpop.permute.xlu0 %3930 }
 0x96b   :  { %v3991_v58 = vsel %vm581_vm0, %v3931_v16, 0.0 }
 0x96c   :  { %3992 = vadd.xlane.f32.xlu1 %v3991_v58 }
 0x96e   :  { %v3933_v47 = vpop.permute.xlu0 %3932 }
 0x96f   :  { %v3994_v35 = vsel %vm581_vm0, %v3933_v47, 0.0  ;;  %v4188_v47 = vadd.f32 %v9394_v53, %v9365_v55 }
 0x970   :  { %3995 = vadd.xlane.f32.xlu1 %v3994_v35 }
 0x972   :  { %v3935_v15 = vpop.permute.xlu0 %3934 }
 0x973   :  { %v3997_v39 = vsel %vm581_vm0, %v3935_v15, 0.0 }
 0x974   :  { %3998 = vadd.xlane.f32.xlu1 %v3997_v39 }
 0x9a3   :  { %v9390_v46 = vpop.xlane.xlu0 %4156 }
 0x9a4   :  { %v4189_v56 = vadd.f32 %v9394_v53, %v9390_v46 }
 0x9a7   :  { %v9392_v59 = vpop.xlane.xlu0 %4159 }
 0x9c5   :  { %v3954_v24 = vpop.xlane.xlu0 %3953 }
 0x9c6   :  { %v4006_v22 = vadd.f32 %v9394_v53, %v3954_v24 }
 0x9c8   :  { %v4198_v10 = vmax.f32 %v4006_v22, %v4182_v48 }
 0x9c9   :  { %v3957_v3 = vpop.xlane.xlu0 %3956 }
 0x9ca   :  { %v4214_v52 = vsub.f32 %v4006_v22, %v4198_v10  ;;  %v4262_v62 = vsub.f32 %v4182_v48, %v4198_v10  ;;  %v4007_v34 = vadd.f32 %v9394_v53, %v3957_v3 }
 0x9cc   :  { %v4230_v4 = vmul.f32 1.442695, %v4214_v52  ;;  %v4278_v54 = vmul.f32 1.442695, %v4262_v62  ;;  %v4199_v1 = vmax.f32 %v4007_v34, %v4183_v29 }
 0x9cd   :  { %v3960_v31 = vpop.xlane.xlu1 %3959  ;;  %v4163_v27 = vpop.xlane.xlu0 %4162 }
 0x9ce   :  { %6682 = vpow2.f32 %v4230_v4  ;;  %v4215_v25 = vsub.f32 %v4007_v34, %v4199_v1  ;;  %v4263_v50 = vsub.f32 %v4183_v29, %v4199_v1  ;;  %v4008_v36 = vadd.f32 %v9394_v53, %v3960_v31 }
 0x9cf   :  { %6684 = vpow2.f32 %v4278_v54 }
 0x9d0   :  { %v4232_v11 = vmul.f32 1.442695, %v4215_v25  ;;  %v4280_v32 = vmul.f32 1.442695, %v4263_v50  ;;  %v4200_v61 = vmax.f32 %v4008_v36, %v4184_v12 }
 0x9d1   :  { %v3963_v41 = vpop.xlane.xlu1 %3962  ;;  %v4166_v17 = vpop.xlane.xlu0 %4165 }
 0x9d2   :  { %6686 = vpow2.f32 %v4232_v11  ;;  %v4009_v33 = vadd.f32 %v9394_v53, %v3963_v41  ;;  %v4216_v42 = vsub.f32 %v4008_v36, %v4200_v61  ;;  %v4264_v40 = vsub.f32 %v4184_v12, %v4200_v61 }
 0x9d3   :  { %6688 = vpow2.f32 %v4280_v32  ;;  %v4190_v12 = vadd.f32 %v9394_v53, %v9392_v59 }
 0x9d4   :  { %v4201_v6 = vmax.f32 %v4009_v33, %v4185_v7  ;;  %v4234_v19 = vmul.f32 1.442695, %v4216_v42  ;;  %v4282_v8 = vmul.f32 1.442695, %v4264_v40 }
 0x9d5   :  { %v3966_v30 = vpop.xlane.xlu1 %3965  ;;  %v4169_v36 = vpop.xlane.xlu0 %4168 }
 0x9d6   :  { %v4217_v14 = vsub.f32 %v4009_v33, %v4201_v6  ;;  %v4265_v38 = vsub.f32 %v4185_v7, %v4201_v6  ;;  %v4010_v49 = vadd.f32 %v9394_v53, %v3966_v30  ;;  %6690 = vpow2.f32 %v4234_v19 }
 0x9d7   :  { %6692 = vpow2.f32 %v4282_v8  ;;  %v4191_v6 = vadd.f32 %v9394_v53, %v4163_v27 }
 0x9d8   :  { %v6683_v28 = vpop.eup %6682  ;;  %v4236_v63 = vmul.f32 1.442695, %v4217_v14  ;;  %v4202_v57 = vmax.f32 %v4010_v49, %v4186_v37  ;;  %v4284_v18 = vmul.f32 1.442695, %v4265_v38 }
 0x9d9   :  { %v6685_v60 = vpop.eup %6684  ;;  %v3969_v9 = vpop.xlane.xlu1 %3968 }
 0x9da   :  { %v4310_v5 = vadd.f32 %v6685_v60, %v6683_v28  ;;  %v4218_v45 = vsub.f32 %v4010_v49, %v4202_v57  ;;  %v4266_v43 = vsub.f32 %v4186_v37, %v4202_v57  ;;  %6694 = vpow2.f32 %v4236_v63  ;;  %v4601_v63 = vld [vmem:[#allocation11 + $0x18] sm:$0xff] }
 0x9db   :  { %v4011_v23 = vadd.f32 %v9394_v53, %v3969_v9 }
 0x9dc   :  { %v6687_v13 = vpop.eup %6686  ;;  %6696 = vrcp.f32 %v4310_v5  ;;  %v4238_v51 = vmul.f32 1.442695, %v4218_v45  ;;  %v4286_v15 = vmul.f32 1.442695, %v4266_v43 }
 0x9dd   :  { %v9413_v26 = vpop.eup %6688  ;;  %6698 = vpow2.f32 %v4284_v18  ;;  %v4203_v16 = vmax.f32 %v4011_v23, %v4187_v2  ;;  %v3972_v58 = vpop.xlane.xlu1 %3971 }
 0x9de   :  { %v4311_v35 = vadd.f32 %v9413_v26, %v6687_v13  ;;  %v4012_v20 = vadd.f32 %v9394_v53, %v3972_v58  ;;  %v4172_v18 = vpop.xlane.xlu0 %4171 }
 0x9df   :  { %v4219_v39 = vsub.f32 %v4011_v23, %v4203_v16  ;;  %v4267_v44 = vsub.f32 %v4187_v2, %v4203_v16  ;;  %v4603_v16 = vld [vmem:[#allocation11 + $0x28] sm:$0xff] }
 0x9e0   :  { %6700 = vrcp.f32 %v4311_v35  ;;  %v4204_v0 = vmax.f32 %v4012_v20, %v4188_v47  ;;  %v9419_v21 = vpop.eup %6690 }
 0x9e1   :  { %6702 = vpow2.f32 %v4238_v51  ;;  %v4240_v24 = vmul.f32 1.442695, %v4219_v39  ;;  %v4288_v48 = vmul.f32 1.442695, %v4267_v44  ;;  %v3975_v22 = vpop.xlane.xlu1 %3974  ;;  %v9423_v55 = vpop.eup %6692  ;;  %v4602_v51 = vld [vmem:[#allocation11 + $0x20] sm:$0xff] }
 0x9e2   :  { %6704 = vpow2.f32 %v4286_v15  ;;  %v4220_v10 = vsub.f32 %v4012_v20, %v4204_v0  ;;  %v4268_v3 = vsub.f32 %v4188_v47, %v4204_v0  ;;  %v4013_v29 = vadd.f32 %v9394_v53, %v3975_v22 }
 0x9e3   :  { %v4312_v52 = vadd.f32 %v9423_v55, %v9419_v21  ;;  %6706 = vpow2.f32 %v4240_v24  ;;  %v5828_v15 = vpack.c.bf16 %v4603_v16, %v4602_v51 }
 0x9e4   :  { %6708 = vpow2.f32 %v4288_v48  ;;  %v4242_v62 = vmul.f32 1.442695, %v4220_v10  ;;  %v4290_v34 = vmul.f32 1.442695, %v4268_v3  ;;  %v4205_v46 = vmax.f32 %v4013_v29, %v4189_v56  ;;  %v9428_v4 = vpop.eup %6694  ;;  %v4175_v3 = vpop.xlane.xlu0 %4174 }
 0x9e5   :  { %6710 = vrcp.f32 %v4312_v52  ;;  %v3978_v54 = vpop.xlane.xlu1 %3977  ;;  %v4193_v10 = vadd.f32 %v9394_v53, %v4169_v36 }
 0x9e6   :  { %v6697_v1 = vpop.eup %6696  ;;  %6712 = vpow2.f32 %v4242_v62  ;;  %v4221_v31 = vsub.f32 %v4013_v29, %v4205_v46  ;;  %v4269_v25 = vsub.f32 %v4189_v56, %v4205_v46  ;;  %v4014_v11 = vadd.f32 %v9394_v53, %v3978_v54  ;;  %v4604_v54 = vld [vmem:[#allocation11 + $0x30] sm:$0xff] }
 0x9e7   :  { %v9430_v50 = vpop.eup %6698  ;;  %6714 = vpow2.f32 %v4290_v34  ;;  %v4470_v32 = vmul.f32 %v6697_v1, %v6685_v60  ;;  %v4358_v7 = vmul.f32 %v6697_v1, %v6683_v28  ;;  %v4600_v28 = vld [vmem:[#allocation11 + $0x10] sm:$0xff]  ;;  %v4192_v60 = vadd.f32 %v9394_v53, %v4166_v17  ;;  %v4605_v1 = vld [vmem:[#allocation11 + $0x38] sm:$0xff] }
 0x9e8   :  { %v4244_v61 = vmul.f32 1.442695, %v4221_v31  ;;  %v4292_v41 = vmul.f32 1.442695, %v4269_v25  ;;  %v4206_v33 = vmax.f32 %v4014_v11, %v4190_v12  ;;  %v4313_v19 = vadd.f32 %v9430_v50, %v9428_v4 }
 0x9e9   :  { %4488 = vperm.xlu0 %5913, %v4470_v32   ;;  %v3981_v42 = vpop.xlane.xlu1 %3980  ;;  %4376 = vperm.xlu1 %5912, %v4358_v7   ;;  %v5824_v43 = vpack.c.bf16 %v4601_v63, %v4600_v28  ;;  %v5832_v36 = vpack.c.bf16 %v4605_v1, %v4604_v54 }
 0x9ea   :  { %v6701_v40 = vpop.eup %6700  ;;  %6716 = vpow2.f32 %v4244_v61  ;;  %v4015_v59 = vadd.f32 %v9394_v53, %v3981_v42  ;;  %v4222_v30 = vsub.f32 %v4014_v11, %v4206_v33  ;;  %v4270_v37 = vsub.f32 %v4190_v12, %v4206_v33 }
 0x9eb   :  { %v9439_v8 = vpop.eup %6702  ;;  %6718 = vpow2.f32 %v4292_v41  ;;  %v4359_v14 = vmul.f32 %v6701_v40, %v6687_v13  ;;  %v4471_v35 = vmul.f32 %v6701_v40, %v9413_v26  ;;  %5825 = vmatprep.subr.bf16.mxu1 %v5824_v43  ;;  %v4194_v11 = vadd.f32 %v9394_v53, %v4172_v18 }
 0x9ec   :  { %v9441_v38 = vpop.eup %6704  ;;  %v4207_v49 = vmax.f32 %v4015_v59, %v4191_v6  ;;  %v4246_v9 = vmul.f32 1.442695, %v4222_v30  ;;  %v4294_v5 = vmul.f32 1.442695, %v4270_v37  ;;  %6720 = vrcp.f32 %v4313_v19  ;;  %5827 = vmatpush3.bf16.msra.mxu1 %v5824_v43 }
 0x9ed   :  { %v9443_v57 = vpop.eup %6706  ;;  %v3984_v45 = vpop.xlane.xlu1 %3983  ;;  %4381 = vperm.xlu1 %5912, %v4359_v14   ;;  %v4314_v17 = vadd.f32 %v9441_v38, %v9439_v8  ;;  %5829 = vmatprep.subr.bf16.mxu1 %v5828_v15  ;;  %v4195_v14 = vadd.f32 %v9394_v53, %v4175_v3 }
 0x9ee   :  { %v9446_v2 = vpop.eup %6708  ;;  %v4223_v27 = vsub.f32 %v4015_v59, %v4207_v49  ;;  %v4271_v23 = vsub.f32 %v4191_v6, %v4207_v49  ;;  %v4016_v13 = vadd.f32 %v9394_v53, %v3984_v45  ;;  %6722 = vpow2.f32 %v4246_v9  ;;  %v4178_v6 = vpop.xlane.xlu0 %4177 }
 0x9ef   :  { %v6711_v58 = vpop.eup %6710  ;;  %v4315_v47 = vadd.f32 %v9446_v2, %v9443_v57  ;;  %6724 = vpow2.f32 %v4294_v5 }
 0x9f0   :  { %v9452_v20 = vpop.eup %6712  ;;  %v4248_v39 = vmul.f32 1.442695, %v4223_v27  ;;  %v4296_v44 = vmul.f32 1.442695, %v4271_v23  ;;  %v4208_v0 = vmax.f32 %v4016_v13, %v4192_v60  ;;  %v4360_v46 = vmul.f32 %v6711_v58, %v9419_v21  ;;  %5831 = vmatpush3.bf16.msra.mxu1 %v5828_v15 }
 0x9f1   :  { %v9454_v56 = vpop.eup %6714  ;;  %6726 = vrcp.f32 %v4315_v47  ;;  %v3987_v24 = vpop.xlane.xlu1 %3986  ;;  %4493 = vperm.xlu1 %5912, %v4471_v35   ;;  %5833 = vmatprep.subr.bf16.mxu1 %v5832_v36  ;;  %v4472_v42 = vmul.f32 %v6711_v58, %v9423_v55  ;;  %v4196_v35 = vadd.f32 %v9394_v53, %v4178_v6 }
 0x9f2   :  { %v4316_v26 = vadd.f32 %v9454_v56, %v9452_v20  ;;  %6728 = vpow2.f32 %v4248_v39  ;;  %v4224_v48 = vsub.f32 %v4016_v13, %v4208_v0  ;;  %v4272_v22 = vsub.f32 %v4192_v60, %v4208_v0  ;;  %v4181_v15 = vpop.xlane.xlu0 %4180 }
 0x9f3   :  { %6730 = vpow2.f32 %v4296_v44  ;;  %v4017_v29 = vadd.f32 %v9394_v53, %v3987_v24  ;;  %v4197_v3 = vadd.f32 %v9394_v53, %v4181_v15 }
 0x9f4   :  { %v9462_v52 = vpop.eup %6716  ;;  %6732 = vrcp.f32 %v4316_v26  ;;  %v4250_v62 = vmul.f32 1.442695, %v4224_v48  ;;  %v4298_v34 = vmul.f32 1.442695, %v4272_v22  ;;  %5835 = vmatpush3.bf16.msra.mxu1 %v5832_v36 }
 0x9f5   :  { %v9465_v31 = vpop.eup %6718  ;;  %6734 = vrcp.f32 %v4314_v17  ;;  %v4209_v25 = vmax.f32 %v4017_v29, %v4193_v10  ;;  %v3990_v12 = vpop.xlane.xlu1 %3989  ;;  %4386 = vperm.xlu1 %5912, %v4360_v46  }
 0x9f6   :  { %v4317_v32 = vadd.f32 %v9465_v31, %v9462_v52  ;;  %6736 = vpow2.f32 %v4250_v62  ;;  %v4018_v61 = vadd.f32 %v9394_v53, %v3990_v12  ;;  %v6721_v7 = vpop.eup %6720 }
 0x9f7   :  { %6738 = vpow2.f32 %v4298_v34  ;;  %v4225_v21 = vsub.f32 %v4017_v29, %v4209_v25  ;;  %v4273_v41 = vsub.f32 %v4193_v10, %v4209_v25  ;;  %v4361_v18 = vmul.f32 %v6721_v7, %v9428_v4 }
 0x9f8   :  { %6740 = vrcp.f32 %v4317_v32  ;;  %v4210_v33 = vmax.f32 %v4018_v61, %v4194_v11  ;;  %v9472_v40 = vpop.eup %6722  ;;  %v4473_v24 = vmul.f32 %v6721_v7, %v9430_v50 }
 0x9f9   :  { %v4252_v19 = vmul.f32 1.442695, %v4225_v21  ;;  %v4300_v59 = vmul.f32 1.442695, %v4273_v41  ;;  %v3993_v30 = vpop.xlane.xlu1 %3992  ;;  %v9474_v37 = vpop.eup %6724  ;;  %4498 = vperm.xlu1 %5912, %v4472_v42  }
 0x9fa   :  { %v4226_v49 = vsub.f32 %v4018_v61, %v4210_v33  ;;  %v4274_v28 = vsub.f32 %v4194_v11, %v4210_v33  ;;  %v4019_v63 = vadd.f32 %v9394_v53, %v3993_v30  ;;  %v4318_v55 = vadd.f32 %v9474_v37, %v9472_v40 }
 0x9fb   :  { %v9478_v60 = vpop.eup %6726  ;;  %6742 = vpow2.f32 %v4252_v19 }
 0x9fc   :  { %v9483_v9 = vpop.eup %6728  ;;  %6744 = vpow2.f32 %v4300_v59  ;;  %v4254_v5 = vmul.f32 1.442695, %v4226_v49  ;;  %v4302_v45 = vmul.f32 1.442695, %v4274_v28  ;;  %v4211_v43 = vmax.f32 %v4019_v63, %v4195_v14 }
 0x9fd   :  { %v9485_v27 = vpop.eup %6730  ;;  %6746 = vrcp.f32 %v4318_v55  ;;  %v4363_v23 = vmul.f32 %v9478_v60, %v9443_v57  ;;  %v3996_v13 = vpop.xlane.xlu1 %3995  ;;  %4391 = vperm.xlu1 %5912, %v4361_v18  }
 0x9fe   :  { %v9489_v51 = vpop.eup %6732  ;;  %v4319_v16 = vadd.f32 %v9485_v27, %v9483_v9  ;;  %6748 = vpow2.f32 %v4254_v5  ;;  %v4227_v4 = vsub.f32 %v4019_v63, %v4211_v43  ;;  %v4275_v58 = vsub.f32 %v4195_v14, %v4211_v43 }
 0x9ff   :  { %v6735_v47 = vpop.eup %6734  ;;  %6750 = vpow2.f32 %v4302_v45  ;;  %4401 = vperm.xlu0 %5913, %v4363_v23   ;;  %v4020_v39 = vadd.f32 %v9394_v53, %v3996_v13  ;;  %v4364_v57 = vmul.f32 %v9489_v51, %v9452_v20  ;;  %v4476_v28 = vmul.f32 %v9489_v51, %v9454_v56 }
 0xa00   :  { %v6737_v44 = vpop.eup %6736  ;;  %6752 = vrcp.f32 %v4319_v16  ;;  %v4256_v0 = vmul.f32 1.442695, %v4227_v4  ;;  %v4304_v17 = vmul.f32 1.442695, %v4275_v58  ;;  %v4362_v54 = vmul.f32 %v6735_v47, %v9439_v8 }
 0xa01   :  { %v9498_v26 = vpop.eup %6738  ;;  %v4212_v48 = vmax.f32 %v4020_v39, %v4196_v35  ;;  %v3999_v22 = vpop.xlane.xlu1 %3998  ;;  %4503 = vperm.xlu1 %5912, %v4473_v24   ;;  %v4474_v21 = vmul.f32 %v6735_v47, %v9441_v38  ;;  %v4475_v38 = vmul.f32 %v9478_v60, %v9446_v2 }
 0xa02   :  { %v6741_v10 = vpop.eup %6740  ;;  %v4320_v29 = vadd.f32 %v9498_v26, %v6737_v44  ;;  %6754 = vpow2.f32 %v4256_v0  ;;  %v4021_v62 = vadd.f32 %v9394_v53, %v3999_v22 }
 0xa03   :  { %6756 = vpow2.f32 %v4304_v17  ;;  %v4228_v20 = vsub.f32 %v4020_v39, %v4212_v48  ;;  %v4276_v34 = vsub.f32 %v4196_v35, %v4212_v48  ;;  %4406 = vperm.xlu0 %5913, %v4364_v57   ;;  %v4365_v46 = vmul.f32 %v6741_v10, %v9462_v52  ;;  %v10151_v17 = vld [vmem:[#allocation52_spill] sm:$0xff]  ;;  %v10152_v48 = vld [vmem:[#allocation15_spill] sm:$0xff] }
 0xa04   :  { %6758 = vrcp.f32 %v4320_v29  ;;  %v4213_v50 = vmax.f32 %v4021_v62, %v4197_v3  ;;  %v4477_v45 = vmul.f32 %v6741_v10, %v9465_v31 }
 0xa05   :  { %v6743_v1 = vpop.eup %6742  ;;  %v4258_v25 = vmul.f32 1.442695, %v4228_v20  ;;  %v4306_v12 = vmul.f32 1.442695, %v4276_v34  ;;  %4396 = vperm.xlu1 %5912, %v4362_v54   ;;  %v10154_v34 = vld [vmem:[#allocation53_spill] sm:$0xff] }
 0xa06   :  { %v9505_v36 = vpop.eup %6744  ;;  %v4229_v11 = vsub.f32 %v4021_v62, %v4213_v50  ;;  %v4277_v32 = vsub.f32 %v4197_v3, %v4213_v50  ;;  %v10153_v62 = vld [vmem:[#allocation16_spill] sm:$0xff] }
 0xa07   :  { %v6747_v61 = vpop.eup %6746  ;;  %v4321_v53 = vadd.f32 %v9505_v36, %v6743_v1  ;;  %6760 = vpow2.f32 %v4258_v25  ;;  %4411 = vperm.xlu0 %5913, %v4365_v46   ;;  %v10155_v25 = vld [vmem:[#allocation17_spill] sm:$0xff] }
 0xa08   :  { %v6749_v52 = vpop.eup %6748  ;;  %6762 = vpow2.f32 %v4306_v12  ;;  %v4260_v41 = vmul.f32 1.442695, %v4229_v11  ;;  %v4308_v7 = vmul.f32 1.442695, %v4277_v32  ;;  %v4366_v8 = vmul.f32 %v6747_v61, %v9472_v40 }
 0xa09   :  { %v6751_v33 = vpop.eup %6750  ;;  %6764 = vrcp.f32 %v4321_v53  ;;  %4508 = vperm.xlu1 %5912, %v4474_v21   ;;  %v4478_v56 = vmul.f32 %v6747_v61, %v9474_v37 }
 0xa0a   :  { %v6753_v42 = vpop.eup %6752  ;;  %v4322_v6 = vadd.f32 %v6751_v33, %v6749_v52  ;;  %6766 = vpow2.f32 %v4260_v41 }
 0xa0b   :  { %6768 = vpow2.f32 %v4308_v7  ;;  %4416 = vperm.xlu0 %5913, %v4366_v8   ;;  %v4367_v19 = vmul.f32 %v6753_v42, %v9483_v9  ;;  %v4479_v4 = vmul.f32 %v6753_v42, %v9485_v27  ;;  %v10158_v8 = vld [vmem:[#allocation55_spill] sm:$0xff] }
 0xa0c   :  { %v6755_v59 = vpop.eup %6754  ;;  %6770 = vrcp.f32 %v4322_v6 }
 0xa0d   :  { %v6757_v30 = vpop.eup %6756  ;;  %4513 = vperm.xlu1 %5912, %v4475_v38   ;;  %v10159_v38 = vld [vmem:[#allocation19_spill] sm:$0xff] }
 0xa0e   :  { %v6759_v14 = vpop.eup %6758  ;;  %v4323_v49 = vadd.f32 %v6757_v30, %v6755_v59 }
 0xa0f   :  { %4421 = vperm.xlu0 %5913, %v4367_v19   ;;  %v4368_v40 = vmul.f32 %v6759_v14, %v6737_v44  ;;  %v4480_v31 = vmul.f32 %v6759_v14, %v9498_v26 }
 0xa10   :  { %6772 = vrcp.f32 %v4323_v49  ;;  %v10160_v49 = vld [vmem:[#allocation56_spill] sm:$0xff] }
 0xa11   :  { %v6761_v63 = vpop.eup %6760  ;;  %4518 = vperm.xlu1 %5912, %v4476_v28  }
 0xa12   :  { %v6763_v55 = vpop.eup %6762 }
 0xa13   :  { %v6765_v18 = vpop.eup %6764  ;;  %v4324_v9 = vadd.f32 %v6763_v55, %v6761_v63  ;;  %4426 = vperm.xlu0 %5913, %v4368_v40  }
 0xa14   :  { %v6767_v5 = vpop.eup %6766  ;;  %v4369_v2 = vmul.f32 %v6765_v18, %v6743_v1  ;;  %v4481_v39 = vmul.f32 %v6765_v18, %v9505_v36  ;;  %v10156_v36 = vld [vmem:[#allocation54_spill] sm:$0xff] }
 0xa15   :  { %v6769_v60 = vpop.eup %6768  ;;  %6774 = vrcp.f32 %v4324_v9  ;;  %4523 = vperm.xlu1 %5912, %v4477_v45   ;;  %v10162_v9 = vld [vmem:[#allocation57_spill] sm:$0xff] }
 0xa16   :  { %v6771_v43 = vpop.eup %6770  ;;  %v4325_v23 = vadd.f32 %v6769_v60, %v6767_v5 }
 0xa17   :  { %4431 = vperm.xlu0 %5913, %v4369_v2   ;;  %v4370_v13 = vmul.f32 %v6771_v43, %v6749_v52  ;;  %v4482_v37 = vmul.f32 %v6771_v43, %v6751_v33  ;;  %v10157_v52 = vld [vmem:[#allocation18_spill] sm:$0xff]  ;;  %v10163_v43 = vld [vmem:[#allocation21_spill] sm:$0xff] }
 0xa18   :  { %6776 = vrcp.f32 %v4325_v23 }
 0xa19   :  { %4528 = vperm.xlu1 %5912, %v4478_v56  }
 0xa1a   :  { %v6773_v51 = vpop.eup %6772 }
 0xa1b   :  { %4436 = vperm.xlu0 %5913, %v4370_v13   ;;  %v4371_v16 = vmul.f32 %v6773_v51, %v6755_v59  ;;  %v4483_v57 = vmul.f32 %v6773_v51, %v6757_v30  ;;  %v10164_v13 = vld [vmem:[#allocation58_spill] sm:$0xff] }
 0xa1d   :  { %4533 = vperm.xlu1 %5912, %v4479_v4  }
 0xa1f   :  { %v6775_v58 = vpop.eup %6774  ;;  %4441 = vperm.xlu0 %5913, %v4371_v16  }
 0xa20   :  { %v4372_v47 = vmul.f32 %v6775_v58, %v6761_v63  ;;  %v4484_v44 = vmul.f32 %v6775_v58, %v6763_v55  ;;  %v10161_v55 = vld [vmem:[#allocation20_spill] sm:$0xff]  ;;  %v10165_v58 = vld [vmem:[#allocation22_spill] sm:$0xff] }
 0xa21   :  { %4538 = vperm.xlu1 %5912, %v4480_v31  }
 0xa22   :  { %v6777_v35 = vpop.eup %6776 }
 0xa23   :  { %4446 = vperm.xlu0 %5913, %v4372_v47   ;;  %v4373_v15 = vmul.f32 %v6777_v35, %v6767_v5  ;;  %v4485_v27 = vmul.f32 %v6777_v35, %v6769_v60  ;;  %v10166_v47 = vld [vmem:[#allocation59_spill] sm:$0xff] }
 0xa25   :  { %4543 = vperm.xlu1 %5912, %v4481_v39  }
 0xa27   :  { %4451 = vperm.xlu0 %5913, %v4373_v15  }
 0xa29   :  { %4548 = vperm.xlu1 %5912, %v4482_v37   ;;  %v10167_v37 = vld [vmem:[#allocation23_spill] sm:$0xff] }
 0xa2d   :  { %4553 = vperm.xlu1 %5912, %v4483_v57  }
 0xa31   :  { %4558 = vperm.xlu1 %5912, %v4484_v44   ;;  %v10168_v44 = vld [vmem:[#allocation60_spill] sm:$0xff] }
 0xa35   :  { %4563 = vperm.xlu1 %5912, %v4485_v27  }
 0xa68   :  { %v4489_v0 = vpop.permute.xlu0 %4488  ;;  %v4377_v26 = vpop.permute.xlu1 %4376 }
 0xa69   :  { %v4566_v24 = vmul.f32 %v4489_v0, %v10151_v17  ;;  %v4454_v22 = vmul.f32 %v4377_v26, %v10152_v48  ;;  %v10169_v26 = vld [vmem:[#allocation24_spill] sm:$0xff] }
 0xa6b   :  { %v4582_v10 = vadd.f32 %v4566_v24, %v4454_v22  ;;  %v10170_v22 = vld [vmem:[#allocation61_spill] sm:$0xff] }
 0xa6c   :  { %v4382_v3 = vpop.permute.xlu1 %4381 }
 0xa6d   :  { %5588 = vmatprep.mubr.msk.f32.mxu1 %vm581_vm0, %v4582_v10  ;;  %v4455_v20 = vmul.f32 %v4382_v3, %v10153_v62 }
 0xa70   :  { %v4494_v29 = vpop.permute.xlu1 %4493 }
 0xa71   :  { %v4567_v46 = vmul.f32 %v4494_v29, %v10154_v34 }
 0xa73   :  { %v4583_v50 = vadd.f32 %v4567_v46, %v4455_v20  ;;  %v10171_v20 = vld [vmem:[#allocation25_spill] sm:$0xff]  ;;  %v10172_v46 = vld [vmem:[#allocation62_spill] sm:$0xff] }
 0xa74   :  { %v4387_v54 = vpop.permute.xlu1 %4386 }
 0xa75   :  { %5589 = vmatmul.mubr.msk.f32.vlgmr.msra.gmra.mrb[80].mxu1 %vm581_vm0, %v4583_v50  ;;  %v4456_v12 = vmul.f32 %v4387_v54, %v10155_v25  ;;  %v10173_v25 = vld [vmem:[#allocation26_spill] sm:$0xff] }
 0xa78   :  { %v4499_v1 = vpop.permute.xlu1 %4498 }
 0xa79   :  { %v4568_v11 = vmul.f32 %v4499_v1, %v10156_v36  ;;  %v10174_v36 = vld [vmem:[#allocation63_spill] sm:$0xff] }
 0xa7b   :  { %v4584_v32 = vadd.f32 %v4568_v11, %v4456_v12 }
 0xa7c   :  { %v4392_v61 = vpop.permute.xlu1 %4391 }
 0xa7d   :  { %5591 = vmatprep.mubr.msk.f32.mxu1 %vm581_vm0, %v4584_v32  ;;  %v4457_v41 = vmul.f32 %v4392_v61, %v10157_v52 }
 0xa7e   :  { %v4402_v53 = vpop.permute.xlu0 %4401 }
 0xa7f   :  { %v4459_v18 = vmul.f32 %v4402_v53, %v10161_v55 }
 0xa80   :  { %v4504_v21 = vpop.permute.xlu1 %4503 }
 0xa81   :  { %v4569_v33 = vmul.f32 %v4504_v21, %v10158_v8  ;;  %v10175_v21 = vld [vmem:[#allocation27_spill] sm:$0xff] }
 0xa82   :  { %v4407_v7 = vpop.permute.xlu0 %4406 }
 0xa83   :  { %v4585_v42 = vadd.f32 %v4569_v33, %v4457_v41  ;;  %v4460_v23 = vmul.f32 %v4407_v7, %v10163_v43  ;;  %v10176_v41 = vld [vmem:[#allocation64_spill] sm:$0xff] }
 0xa84   :  { %v4397_v6 = vpop.permute.xlu1 %4396 }
 0xa85   :  { %5592 = vmatmul.mubr.msk.f32.gmra.mrb[82].mxu1 %vm581_vm0, %v4585_v42  ;;  %v4458_v30 = vmul.f32 %v4397_v6, %v10159_v38  ;;  %v10177_v6 = vld [vmem:[#allocation28_spill] sm:$0xff] }
 0xa86   :  { %v4412_v19 = vpop.permute.xlu0 %4411 }
 0xa87   :  { %v4461_v31 = vmul.f32 %v4412_v19, %v10165_v58 }
 0xa88   :  { %v4509_v59 = vpop.permute.xlu1 %4508 }
 0xa89   :  { %v4570_v40 = vmul.f32 %v4509_v59, %v10160_v49  ;;  %v10178_v59 = vld [vmem:[#allocation65_spill] sm:$0xff] }
 0xa8a   :  { %v4417_v14 = vpop.permute.xlu0 %4416  ;;  %v10179_v49 = vld [vmem:[#allocation29_spill] sm:$0xff] }
 0xa8b   :  { %v4586_v28 = vadd.f32 %v4570_v40, %v4458_v30  ;;  %v4462_v57 = vmul.f32 %v4417_v14, %v10167_v37 }
 0xa8c   :  { %v4514_v63 = vpop.permute.xlu1 %4513 }
 0xa8d   :  { %v4571_v5 = vmul.f32 %v4514_v63, %v10162_v9  ;;  %5594 = vmatprep.mubr.msk.f32.mxu1 %vm581_vm0, %v4586_v28  ;;  %v10180_v28 = vld [vmem:[#allocation66_spill] sm:$0xff] }
 0xa8e   :  { %v4422_v45 = vpop.permute.xlu0 %4421 }
 0xa8f   :  { %v4587_v2 = vadd.f32 %v4571_v5, %v4459_v18  ;;  %v4463_v48 = vmul.f32 %v4422_v45, %v10169_v26  ;;  %v10181_v5 = vld [vmem:[#allocation30_spill] sm:$0xff] }
 0xa90   :  { %v4519_v60 = vpop.permute.xlu1 %4518 }
 0xa91   :  { %v4572_v56 = vmul.f32 %v4519_v60, %v10164_v13  ;;  %5595 = vmatmul.mubr.msk.f32.gmra.mrb[84].mxu1 %vm581_vm0, %v4587_v2  ;;  %v10182_v2 = vld [vmem:[#allocation67_spill] sm:$0xff] }
 0xa92   :  { %v4427_v16 = vpop.permute.xlu0 %4426 }
 0xa93   :  { %v4588_v51 = vadd.f32 %v4572_v56, %v4460_v23  ;;  %v4464_v34 = vmul.f32 %v4427_v16, %v10171_v20  ;;  %v9571_v23 = vld [vmem:[%s9706_s16] ss:$0 sm:$0xff] }
 0xa94   :  { %v4524_v4 = vpop.permute.xlu1 %4523  ;;  %v9577_v16 = vld [vmem:[%s9707_s17] ss:$0 sm:$0xff] }
 0xa95   :  { %v4573_v35 = vmul.f32 %v4524_v4, %v10166_v47  ;;  %5597 = vmatprep.mubr.msk.f32.mxu1 %vm581_vm0, %v4588_v51 }
 0xa96   :  { %v4432_v0 = vpop.permute.xlu0 %4431 }
 0xa97   :  { %v4589_v15 = vadd.f32 %v4573_v35, %v4461_v31  ;;  %v4465_v12 = vmul.f32 %v4432_v0, %v10173_v25 }
 0xa98   :  { %v4529_v39 = vpop.permute.xlu1 %4528 }
 0xa99   :  { %v4574_v27 = vmul.f32 %v4529_v39, %v10168_v44  ;;  %5598 = vmatmul.mubr.msk.f32.gmra.mrb[86].mxu1 %vm581_vm0, %v4589_v15 }
 0xa9a   :  { %v4437_v29 = vpop.permute.xlu0 %4436 }
 0xa9b   :  { %v4590_v17 = vadd.f32 %v4574_v27, %v4462_v57  ;;  %v4466_v52 = vmul.f32 %v4437_v29, %v10175_v21 }
 0xa9c   :  { %v4534_v24 = vpop.permute.xlu1 %4533 }
 0xa9d   :  { %v4575_v10 = vmul.f32 %v4534_v24, %v10170_v22  ;;  %5600 = vmatprep.mubr.msk.f32.mxu1 %vm581_vm0, %v4590_v17 }
 0xa9e   :  { %v4442_v32 = vpop.permute.xlu0 %4441 }
 0xa9f   :  { %v4591_v3 = vadd.f32 %v4575_v10, %v4463_v48  ;;  %v4467_v19 = vmul.f32 %v4442_v32, %v10177_v6 }
 0xaa0   :  { %v4539_v62 = vpop.permute.xlu1 %4538 }
 0xaa1   :  { %v4576_v50 = vmul.f32 %v4539_v62, %v10172_v46  ;;  %5601 = vmatmul.mubr.msk.f32.gmra.mrb[88].mxu1 %vm581_vm0, %v4591_v3 }
 0xaa2   :  { %v4447_v33 = vpop.permute.xlu0 %4446 }
 0xaa3   :  { %v4592_v54 = vadd.f32 %v4576_v50, %v4464_v34  ;;  %v4468_v40 = vmul.f32 %v4447_v33, %v10179_v49 }
 0xaa4   :  { %v4544_v1 = vpop.permute.xlu1 %4543 }
 0xaa5   :  { %v4577_v11 = vmul.f32 %v4544_v1, %v10174_v36  ;;  %5603 = vmatprep.mubr.msk.f32.mxu1 %vm581_vm0, %v4592_v54 }
 0xaa6   :  { %v4452_v55 = vpop.permute.xlu0 %4451 }
 0xaa7   :  { %v4593_v61 = vadd.f32 %v4577_v11, %v4465_v12  ;;  %v4469_v45 = vmul.f32 %v4452_v55, %v10181_v5 }
 0xaa8   :  { %v4549_v53 = vpop.permute.xlu1 %4548 }
 0xaa9   :  { %v4578_v7 = vmul.f32 %v4549_v53, %v10176_v41  ;;  %5604 = vmatmul.mubr.msk.f32.gmra.mrb[90].mxu1 %vm581_vm0, %v4593_v61 }
 0xaab   :  { %v4594_v8 = vadd.f32 %v4578_v7, %v4466_v52 }
 0xaac   :  { %v4554_v42 = vpop.permute.xlu1 %4553 }
 0xaad   :  { %v4579_v38 = vmul.f32 %v4554_v42, %v10178_v59  ;;  %5606 = vmatprep.mubr.msk.f32.mxu1 %vm581_vm0, %v4594_v8 }
 0xaaf   :  { %v4595_v30 = vadd.f32 %v4579_v38, %v4467_v19 }
 0xab0   :  { %v4559_v14 = vpop.permute.xlu1 %4558 }
 0xab1   :  { %v4580_v63 = vmul.f32 %v4559_v14, %v10180_v28  ;;  %5607 = vmatmul.mubr.msk.f32.gmra.mrb[92].mxu1 %vm581_vm0, %v4595_v30 }
 0xab3   :  { %v4596_v18 = vadd.f32 %v4580_v63, %v4468_v40 }
 0xab4   :  { %v4564_v9 = vpop.permute.xlu1 %4563 }
 0xab5   :  { %v4581_v60 = vmul.f32 %v4564_v9, %v10182_v2  ;;  %5609 = vmatprep.mubr.msk.f32.mxu1 %vm581_vm0, %v4596_v18 }
 0xab7   :  { %v4597_v43 = vadd.f32 %v4581_v60, %v4469_v45 }
 0xab9   :  { %5610 = vmatmul.mubr.msk.f32.gmra.mrb[94].mxu1 %vm581_vm0, %v4597_v43 }
 0xb48   :  { %v5590_v13 = vpop.f32.mrb[80].mxu1 }
 0xb49   :  { %v4733_v56 = vadd.f32 %v5590_v13, %v9571_v23  ;;  %v4727_v51 = vpop.f32.mrb[81].mxu1 }
 0xb4a   :  { %v4728_v4 = vadd.f32 %v9571_v23, %v4727_v51 }
 0xb4b   :  { %v4807_v58 = vmax.f32 %v4733_v56, 0.0 }
 0xb4c   :  { %v4806_v31 = vmax.f32 %v4728_v4, 0.0 }
 0xb4d   :  { %v4830_v47 = vmul.f32 %v9577_v16, %v4807_v58 }
 0xb4e   :  { %v4829_v35 = vmul.f32 %v9577_v16, %v4806_v31 }
 0xb4f   :  { %v4848_v15 = vsel %vm581_vm0, %v4830_v47, 0.0 }
 0xb50   :  { %4849 = vadd.xlane.f32.xlu1 %v4848_v15  ;;  %v4845_v39 = vsel %vm581_vm0, %v4829_v35, 0.0 }
 0xb51   :  { %4846 = vadd.xlane.f32.xlu0 %v4845_v39 }
 0xb58   :  { %v5593_v37 = vpop.f32.mrb[82].mxu1 }
 0xb59   :  { %v4743_v57 = vadd.f32 %v5593_v37, %v9571_v23  ;;  %v4737_v44 = vpop.f32.mrb[83].mxu1 }
 0xb5a   :  { %v4738_v27 = vadd.f32 %v9571_v23, %v4737_v44 }
 0xb5b   :  { %v4809_v0 = vmax.f32 %v4743_v57, 0.0 }
 0xb5c   :  { %v4808_v17 = vmax.f32 %v4738_v27, 0.0 }
 0xb5d   :  { %v4832_v24 = vmul.f32 %v9577_v16, %v4809_v0 }
 0xb5e   :  { %v4831_v26 = vmul.f32 %v9577_v16, %v4808_v17 }
 0xb5f   :  { %v4854_v48 = vsel %vm581_vm0, %v4832_v24, 0.0 }
 0xb60   :  { %4855 = vadd.xlane.f32.xlu0 %v4854_v48  ;;  %v4851_v22 = vsel %vm581_vm0, %v4831_v26, 0.0  ;;  %v5219_v48 = vld [vmem:[#allocation3] ss:$0 sm:$0xff] }
 0xb64   :  { %4852 = vadd.xlane.f32.xlu0 %v4851_v22  ;;  %v5596_v10 = vpop.f32.mrb[84].mxu1 }
 0xb65   :  { %v4753_v3 = vadd.f32 %v5596_v10, %v9571_v23  ;;  %v4747_v29 = vpop.f32.mrb[85].mxu1 }
 0xb66   :  { %v4748_v62 = vadd.f32 %v9571_v23, %v4747_v29 }
 0xb67   :  { %v4811_v20 = vmax.f32 %v4753_v3, 0.0 }
 0xb68   :  { %v4810_v34 = vmax.f32 %v4748_v62, 0.0 }
 0xb69   :  { %v4834_v46 = vmul.f32 %v9577_v16, %v4811_v20 }
 0xb6a   :  { %v4833_v50 = vmul.f32 %v9577_v16, %v4810_v34 }
 0xb6b   :  { %v4860_v54 = vsel %vm581_vm0, %v4834_v46, 0.0 }
 0xb6c   :  { %4861 = vadd.xlane.f32.xlu0 %v4860_v54  ;;  %v5599_v1 = vpop.f32.mrb[86].mxu1  ;;  %v4857_v25 = vsel %vm581_vm0, %v4833_v50, 0.0 }
 0xb6d   :  { %v4763_v12 = vadd.f32 %v5599_v1, %v9571_v23  ;;  %4858 = vadd.xlane.f32.xlu1 %v4857_v25  ;;  %v4757_v36 = vpop.f32.mrb[87].mxu1 }
 0xb6e   :  { %v4758_v11 = vadd.f32 %v9571_v23, %v4757_v36 }
 0xb6f   :  { %v4813_v32 = vmax.f32 %v4763_v12, 0.0 }
 0xb70   :  { %v4812_v61 = vmax.f32 %v4758_v11, 0.0 }
 0xb71   :  { %v4836_v53 = vmul.f32 %v9577_v16, %v4813_v32 }
 0xb72   :  { %v4835_v21 = vmul.f32 %v9577_v16, %v4812_v61 }
 0xb73   :  { %v4866_v52 = vsel %vm581_vm0, %v4836_v53, 0.0 }
 0xb74   :  { %4867 = vadd.xlane.f32.xlu0 %v4866_v52  ;;  %v5602_v41 = vpop.f32.mrb[88].mxu1  ;;  %v4863_v7 = vsel %vm581_vm0, %v4835_v21, 0.0 }
 0xb75   :  { %v4773_v8 = vadd.f32 %v5602_v41, %v9571_v23  ;;  %4864 = vadd.xlane.f32.xlu1 %v4863_v7  ;;  %v4767_v33 = vpop.f32.mrb[89].mxu1 }
 0xb76   :  { %v4768_v42 = vadd.f32 %v9571_v23, %v4767_v33 }
 0xb77   :  { %v4815_v6 = vmax.f32 %v4773_v8, 0.0 }
 0xb78   :  { %v4814_v19 = vmax.f32 %v4768_v42, 0.0 }
 0xb79   :  { %v4838_v59 = vmul.f32 %v9577_v16, %v4815_v6 }
 0xb7a   :  { %v4837_v38 = vmul.f32 %v9577_v16, %v4814_v19 }
 0xb7b   :  { %v4872_v30 = vsel %vm581_vm0, %v4838_v59, 0.0 }
 0xb7c   :  { %4873 = vadd.xlane.f32.xlu0 %v4872_v30  ;;  %v5605_v14 = vpop.f32.mrb[90].mxu1  ;;  %v4869_v49 = vsel %vm581_vm0, %v4837_v38, 0.0 }
 0xb7d   :  { %v4783_v40 = vadd.f32 %v5605_v14, %v9571_v23  ;;  %4870 = vadd.xlane.f32.xlu1 %v4869_v49  ;;  %v4777_v28 = vpop.f32.mrb[91].mxu1 }
 0xb7e   :  { %v4778_v63 = vadd.f32 %v9571_v23, %v4777_v28 }
 0xb7f   :  { %v4817_v55 = vmax.f32 %v4783_v40, 0.0 }
 0xb80   :  { %v4816_v18 = vmax.f32 %v4778_v63, 0.0 }
 0xb81   :  { %v4840_v9 = vmul.f32 %v9577_v16, %v4817_v55 }
 0xb82   :  { %v4839_v5 = vmul.f32 %v9577_v16, %v4816_v18 }
 0xb83   :  { %v4878_v45 = vsel %vm581_vm0, %v4840_v9, 0.0 }
 0xb84   :  { %4879 = vadd.xlane.f32.xlu0 %v4878_v45  ;;  %v5608_v2 = vpop.f32.mrb[92].mxu1  ;;  %v4875_v60 = vsel %vm581_vm0, %v4839_v5, 0.0 }
 0xb85   :  { %v4793_v43 = vadd.f32 %v5608_v2, %v9571_v23  ;;  %4876 = vadd.xlane.f32.xlu1 %v4875_v60  ;;  %v4787_v13 = vpop.f32.mrb[93].mxu1 }
 0xb86   :  { %v4788_v56 = vadd.f32 %v9571_v23, %v4787_v13 }
 0xb87   :  { %v4819_v51 = vmax.f32 %v4793_v43, 0.0 }
 0xb88   :  { %v4818_v4 = vmax.f32 %v4788_v56, 0.0 }
 0xb89   :  { %v4842_v58 = vmul.f32 %v9577_v16, %v4819_v51 }
 0xb8a   :  { %v4841_v31 = vmul.f32 %v9577_v16, %v4818_v4 }
 0xb8b   :  { %v4884_v47 = vsel %vm581_vm0, %v4842_v58, 0.0 }
 0xb8c   :  { %4885 = vadd.xlane.f32.xlu0 %v4884_v47  ;;  %v5611_v35 = vpop.f32.mrb[94].mxu1  ;;  %v4881_v15 = vsel %vm581_vm0, %v4841_v31, 0.0 }
 0xb8d   :  { %v4803_v39 = vadd.f32 %v5611_v35, %v9571_v23  ;;  %4882 = vadd.xlane.f32.xlu1 %v4881_v15  ;;  %v4797_v37 = vpop.f32.mrb[95].mxu1 }
 0xb8e   :  { %v4798_v57 = vadd.f32 %v9571_v23, %v4797_v37 }
 0xb8f   :  { %v4821_v44 = vmax.f32 %v4803_v39, 0.0 }
 0xb90   :  { %v4820_v27 = vmax.f32 %v4798_v57, 0.0 }
 0xb91   :  { %v4844_v0 = vmul.f32 %v9577_v16, %v4821_v44 }
 0xb92   :  { %v4843_v17 = vmul.f32 %v9577_v16, %v4820_v27 }
 0xb93   :  { %v4890_v24 = vsel %vm581_vm0, %v4844_v0, 0.0 }
 0xb94   :  { %4891 = vadd.xlane.f32.xlu0 %v4890_v24  ;;  %v4887_v26 = vsel %vm581_vm0, %v4843_v17, 0.0 }
 0xb95   :  { %4888 = vadd.xlane.f32.xlu1 %v4887_v26 }
 0xbdd   :  { %v4850_v22 = vpop.xlane.xlu1 %4849 }
 0xbde   :  { %v4901_v10 = vadd.f32 %v5219_v48, %v4850_v22  ;;  %v4847_v3 = vpop.xlane.xlu0 %4846 }
 0xbdf   :  { %v4900_v29 = vadd.f32 %v5219_v48, %v4847_v3 }
 0xbe0   :  { %v4917_v62 = vmax.f32 %v4901_v10, 0.0 }
 0xbe1   :  { %v4916_v23 = vmax.f32 %v4900_v29, 0.0 }
 0xbe2   :  { %4934 = vst.msk [vmem:[%s9708_s19 + $0x8] sm:$0xff] %vm4932_vm1, %v4917_v62 }
 0xbe3   :  { %4933 = vst.msk [vmem:[%s9708_s19] sm:$0xff] %vm4932_vm1, %v4916_v23 }
 0xbed   :  { %v4856_v16 = vpop.xlane.xlu0 %4855 }
 0xbee   :  { %v4903_v20 = vadd.f32 %v5219_v48, %v4856_v16 }
 0xbf0   :  { %v4919_v34 = vmax.f32 %v4903_v20, 0.0 }
 0xbf1   :  { %v4853_v46 = vpop.xlane.xlu0 %4852 }
 0xbf2   :  { %4936 = vst.msk [vmem:[%s9708_s19 + $0x18] sm:$0xff] %vm4932_vm1, %v4919_v34  ;;  %v4902_v50 = vadd.f32 %v5219_v48, %v4853_v46 }
 0xbf4   :  { %v4918_v54 = vmax.f32 %v4902_v50, 0.0 }
 0xbf6   :  { %4935 = vst.msk [vmem:[%s9708_s19 + $0x10] sm:$0xff] %vm4932_vm1, %v4918_v54 }
 0xbf9   :  { %v4862_v1 = vpop.xlane.xlu0 %4861 }
 0xbfa   :  { %v4905_v25 = vadd.f32 %v5219_v48, %v4862_v1  ;;  %v4859_v12 = vpop.xlane.xlu1 %4858 }
 0xbfb   :  { %v4904_v36 = vadd.f32 %v5219_v48, %v4859_v12 }
 0xbfc   :  { %v4921_v11 = vmax.f32 %v4905_v25, 0.0 }
 0xbfd   :  { %v4920_v32 = vmax.f32 %v4904_v36, 0.0 }
 0xbfe   :  { %4938 = vst.msk [vmem:[%s9708_s19 + $0x28] sm:$0xff] %vm4932_vm1, %v4921_v11 }
 0xbff   :  { %4937 = vst.msk [vmem:[%s9708_s19 + $0x20] sm:$0xff] %vm4932_vm1, %v4920_v32 }
 0xc01   :  { %v4868_v61 = vpop.xlane.xlu0 %4867 }
 0xc02   :  { %v4907_v53 = vadd.f32 %v5219_v48, %v4868_v61  ;;  %v4865_v21 = vpop.xlane.xlu1 %4864 }
 0xc03   :  { %v4906_v52 = vadd.f32 %v5219_v48, %v4865_v21 }
 0xc04   :  { %v4923_v41 = vmax.f32 %v4907_v53, 0.0 }
 0xc05   :  { %v4922_v7 = vmax.f32 %v4906_v52, 0.0 }
 0xc06   :  { %4940 = vst.msk [vmem:[%s9708_s19 + $0x38] sm:$0xff] %vm4932_vm1, %v4923_v41 }
 0xc07   :  { %4939 = vst.msk [vmem:[%s9708_s19 + $0x30] sm:$0xff] %vm4932_vm1, %v4922_v7 }
 0xc09   :  { %v4874_v8 = vpop.xlane.xlu0 %4873 }
 0xc0a   :  { %v4909_v33 = vadd.f32 %v5219_v48, %v4874_v8  ;;  %v4871_v42 = vpop.xlane.xlu1 %4870 }
 0xc0b   :  { %v4908_v6 = vadd.f32 %v5219_v48, %v4871_v42 }
 0xc0c   :  { %v4925_v19 = vmax.f32 %v4909_v33, 0.0 }
 0xc0d   :  { %v4924_v59 = vmax.f32 %v4908_v6, 0.0 }
 0xc0e   :  { %4942 = vst.msk [vmem:[%s9708_s19 + $0x48] sm:$0xff] %vm4932_vm1, %v4925_v19 }
 0xc0f   :  { %4941 = vst.msk [vmem:[%s9708_s19 + $0x40] sm:$0xff] %vm4932_vm1, %v4924_v59 }
 0xc11   :  { %v4880_v38 = vpop.xlane.xlu0 %4879 }
 0xc12   :  { %v4911_v30 = vadd.f32 %v5219_v48, %v4880_v38  ;;  %v4877_v14 = vpop.xlane.xlu1 %4876 }
 0xc13   :  { %v4910_v49 = vadd.f32 %v5219_v48, %v4877_v14 }
 0xc14   :  { %v4927_v40 = vmax.f32 %v4911_v30, 0.0 }
 0xc15   :  { %v4926_v28 = vmax.f32 %v4910_v49, 0.0 }
 0xc16   :  { %4944 = vst.msk [vmem:[%s9708_s19 + $0x58] sm:$0xff] %vm4932_vm1, %v4927_v40 }
 0xc17   :  { %4943 = vst.msk [vmem:[%s9708_s19 + $0x50] sm:$0xff] %vm4932_vm1, %v4926_v28 }
 0xc19   :  { %v4886_v63 = vpop.xlane.xlu0 %4885 }
 0xc1a   :  { %v4913_v55 = vadd.f32 %v5219_v48, %v4886_v63  ;;  %v4883_v18 = vpop.xlane.xlu1 %4882 }
 0xc1b   :  { %v4912_v9 = vadd.f32 %v5219_v48, %v4883_v18 }
 0xc1c   :  { %v4929_v5 = vmax.f32 %v4913_v55, 0.0 }
 0xc1d   :  { %v4928_v45 = vmax.f32 %v4912_v9, 0.0 }
 0xc1e   :  { %4946 = vst.msk [vmem:[%s9708_s19 + $0x68] sm:$0xff] %vm4932_vm1, %v4929_v5 }
 0xc1f   :  { %4945 = vst.msk [vmem:[%s9708_s19 + $0x60] sm:$0xff] %vm4932_vm1, %v4928_v45 }
 0xc21   :  { %v4892_v2 = vpop.xlane.xlu0 %4891 }
 0xc22   :  { %v4915_v60 = vadd.f32 %v5219_v48, %v4892_v2  ;;  %v4889_v43 = vpop.xlane.xlu1 %4888 }
 0xc23   :  { %v4914_v13 = vadd.f32 %v5219_v48, %v4889_v43 }
 0xc24   :  { %v4931_v56 = vmax.f32 %v4915_v60, 0.0 }
 0xc25   :  { %v4930_v51 = vmax.f32 %v4914_v13, 0.0 }
 0xc26   :  { %4948 = vst.msk [vmem:[%s9708_s19 + $0x78] sm:$0xff] %vm4932_vm1, %v4931_v56 }
 0xc27   :  { %4947 = vst.msk [vmem:[%s9708_s19 + $0x70] sm:$0xff] %vm4932_vm1, %v4930_v51 }
 0xc28   :  { %4953 = vsyncpa [#allocation5], 1 }
 0xc29   :  { %4954 = vsyncpa [#allocation7], 1 }
 0xc2a   :  { %4955 = vsyncpa [#allocation10], 1 }

</bundles_post_ra>
